<compile_context>
chip_gen: v7x
topology: tpu7x:2x2x1
jax: 0.10.0
libtpu: 0.0.40
codegen_flags: <defaults>
</compile_context>

<pallas_src>
import numpy as np
import jax
import jax.numpy as jnp
from jax.experimental import pallas as pl
from jax.experimental.pallas import tpu as pltpu

NEG_SLOPE = 0.01  # nn.LeakyReLU default negative_slope

# max(x, a*x) == leaky_relu(x) for 0 < a < 1 (one VALU op cheaper than where()).
def _leaky_relu(x):
    return jnp.maximum(x, x * NEG_SLOPE)


_TAPS = tuple((dy, dx) for dy in range(3) for dx in range(3))


# ------------------------------ Pallas kernel ------------------------------

def _resblock_down_kernel(a_pad_ref, xpool_ref, wl_ref, bl_ref,
                          wr1_ref, br1_ref, wr2_ref, br2_ref,
                          out_ref, h1_scr, s2_scr):
    """Fused ResBlockDown forward for one batch element.

    a_pad_ref : (1, H+2, W+2, Cin)  leaky_relu(x), zero padded (right branch)
    xpool_ref : (1, Hp*Wp, Cin)     2x2 avg-pooled raw x (left branch)
    wl_ref    : (Cin, Cout)         conv_l1 (1x1) weight
    wr1_ref   : (9, Cin, Cout)      conv_r1 weight, tap-major
    wr2_ref   : (9, Cout, Cout)     conv_r2 weight, tap-major
    b*_ref    : (1, Cout) f32       biases
    out_ref   : (1, Hp*Wp, Cout) f32
    h1_scr    : VMEM (H+2, W+2, Cout) f32   zero-padded stage-1 activation
    s2_scr    : VMEM (H*W, Cout) f32        stage-2 conv output, pre-pool
    """
    _, Hpad, Wpad, Cin = a_pad_ref.shape
    H, W = Hpad - 2, Wpad - 2
    Hp, Wp = H // 2, W // 2
    Cout = wl_ref.shape[1]
    mm_dtype = wr1_ref.dtype

    # ---- left branch: pool(conv_l1(x)) == pool(x) @ wl (1x1 conv is linear) ----
    left = jnp.dot(xpool_ref[0], wl_ref[...],
                   preferred_element_type=jnp.float32) + bl_ref[...]      # (Hp*Wp, Cout)

    # ---- right branch, stage 1: 3x3 conv as 9 shifted MXU matmuls ----
    acc1 = jnp.zeros((H * W, Cout), jnp.float32)
    for t, (dy, dx) in enumerate(_TAPS):
        win = a_pad_ref[0, dy:dy + H, dx:dx + W, :].reshape(H * W, Cin)
        acc1 = acc1 + jnp.dot(win, wr1_ref[t],
                              preferred_element_type=jnp.float32)
    h1 = _leaky_relu(acc1 + br1_ref[...])                                 # (H*W, Cout) f32

    # Stage-1 activation stays in VMEM, zero-padded for the next conv
    # (no HBM round trip, no im2col).
    h1_scr[...] = jnp.zeros_like(h1_scr)
    h1_scr[1:H + 1, 1:W + 1, :] = h1.reshape(H, W, Cout)

    # ---- right branch, stage 2: 3x3 conv, again 9 shifted matmuls ----
    acc2 = jnp.zeros((H * W, Cout), jnp.float32)
    for t, (dy, dx) in enumerate(_TAPS):
        win = h1_scr[dy:dy + H, dx:dx + W, :].reshape(H * W, Cout).astype(mm_dtype)
        acc2 = acc2 + jnp.dot(win, wr2_ref[t],
                              preferred_element_type=jnp.float32)

    # ---- 2x2 average pool on the VPU (replaces the dense (HW/4, HW) matmul) ----
    # W direction: flattened rows 2k / 2k+1 are W-neighbours -> strided loads.
    s2_scr[...] = acc2
    wsum = (s2_scr[pl.ds(0, H * Wp, stride=2), :]
            + s2_scr[pl.ds(1, H * Wp, stride=2), :])                      # (H*Wp, Cout)
    # H direction: rows of wsum are y*Wp + j; pair y = 2i / 2i+1 via an aligned
    # (Hp, 2*Wp, Cout) reshape and two unit-stride half slices.
    wsum3 = wsum.reshape(Hp, 2 * Wp, Cout)
    pooled = 0.25 * (wsum3[:, :Wp, :] + wsum3[:, Wp:, :])                 # (Hp, Wp, Cout)
    right = pooled.reshape(Hp * Wp, Cout) + br2_ref[...]

    out_ref[0] = (left + right).astype(out_ref.dtype)


# ------------------------------- wrapper ------------------------------------

def resblock_down_forward(x_nchw, params, conv_size=3, padding_size=1,
                          compute_dtype=jnp.bfloat16):
    assert conv_size == 3 and padding_size == 1, "kernel specialized to 3x3 / pad=1"
    N, Cin, H, W = x_nchw.shape
    assert H % 2 == 0 and W % 2 == 0, "2x2 avg-pool needs even spatial dims"
    Cout = params["wl"].shape[0]
    Hp, Wp = H // 2, W // 2
    HWp = Hp * Wp

    x = jnp.transpose(x_nchw, (0, 2, 3, 1)).astype(jnp.float32)           # NHWC

    # Right-branch input: leaky_relu exactly once per element, then zero pad
    # (exact because leaky_relu(0) == 0); XLA fuses the relu into the pad.
    a_pad = jnp.pad(_leaky_relu(x), ((0, 0), (1, 1), (1, 1), (0, 0)))
    a_pad = a_pad.astype(compute_dtype)

    # Left-branch input: pool commutes with the 1x1 conv -> pool x down to
    # Hp*Wp rows first (4x fewer MXU rows for the left matmul).
    x_pool = x.reshape(N, Hp, 2, Wp, 2, Cin).mean(axis=(2, 4))
    x_pool = x_pool.reshape(N, HWp, Cin).astype(compute_dtype)

    # Conv weights in tap-major matmul layout.
    wl_mat = params["wl"].reshape(Cout, Cin).T.astype(compute_dtype)      # (Cin, Cout)
    wr1_mat = jnp.transpose(params["wr1"], (2, 3, 1, 0)).reshape(9, Cin, Cout)
    wr1_mat = wr1_mat.astype(compute_dtype)
    wr2_mat = jnp.transpose(params["wr2"], (2, 3, 1, 0)).reshape(9, Cout, Cout)
    wr2_mat = wr2_mat.astype(compute_dtype)
    bl = params["bl"].reshape(1, Cout).astype(jnp.float32)
    br1 = params["br1"].reshape(1, Cout).astype(jnp.float32)
    br2 = params["br2"].reshape(1, Cout).astype(jnp.float32)

    out = pl.pallas_call(
        _resblock_down_kernel,
        out_shape=jax.ShapeDtypeStruct((N, HWp, Cout), jnp.float32),
        grid=(N,),
        in_specs=[
            pl.BlockSpec((1, H + 2, W + 2, Cin), lambda b: (b, 0, 0, 0)),
            pl.BlockSpec((1, HWp, Cin), lambda b: (b, 0, 0)),
            pl.BlockSpec((Cin, Cout), lambda b: (0, 0)),
            pl.BlockSpec((1, Cout), lambda b: (0, 0)),
            pl.BlockSpec((9, Cin, Cout), lambda b: (0, 0, 0)),
            pl.BlockSpec((1, Cout), lambda b: (0, 0)),
            pl.BlockSpec((9, Cout, Cout), lambda b: (0, 0, 0)),
            pl.BlockSpec((1, Cout), lambda b: (0, 0)),
        ],
        out_specs=pl.BlockSpec((1, HWp, Cout), lambda b: (b, 0, 0)),
        scratch_shapes=[
            pltpu.VMEM((H + 2, W + 2, Cout), jnp.float32),   # padded stage-1 act
            pltpu.VMEM((H * W, Cout), jnp.float32),          # stage-2 pre-pool
        ],
        compiler_params=pltpu.CompilerParams(
            dimension_semantics=("parallel",),
            vmem_limit_bytes=64 * 1024 * 1024,
        ),
    )(a_pad, x_pool, wl_mat, bl, wr1_mat, br1, wr2_mat, br2)

    out = out.reshape(N, Hp, Wp, Cout)
    return jnp.transpose(out, (0, 3, 1, 2))                               # NCHW


# --------------------------- parameter generation ---------------------------

def _spectral_normalize(w, n_iter=30):
    """Forward-time reparameterization of nn.utils.spectral_norm: w / sigma_max."""
    w_mat = w.reshape(w.shape[0], -1)
    u = jax.random.normal(jax.random.PRNGKey(123), (w_mat.shape[0],), jnp.float32)
    u = u / (jnp.linalg.norm(u) + 1e-12)
    v = w_mat.T @ u
    for _ in range(n_iter):
        v = w_mat.T @ u
        v = v / (jnp.linalg.norm(v) + 1e-12)
        u = w_mat @ v
        u = u / (jnp.linalg.norm(u) + 1e-12)
    sigma = jnp.dot(u, w_mat @ v)
    return w / sigma


def init_params(key, in_channel, out_channel, conv_size=3):
    """Deterministic synthetic parameters matching the nn.Conv2d shapes."""
    ks = jax.random.split(key, 6)
    wl = jax.random.normal(ks[0], (out_channel, in_channel, 1, 1), jnp.float32) * 0.2
    bl = jax.random.normal(ks[1], (out_channel,), jnp.float32) * 0.1
    wr1 = jax.random.normal(ks[2], (out_channel, in_channel, conv_size, conv_size),
                            jnp.float32) * 0.2
    br1 = jax.random.normal(ks[3], (out_channel,), jnp.float32) * 0.1
    wr2 = jax.random.normal(ks[4], (out_channel, out_channel, conv_size, conv_size),
                            jnp.float32) * 0.2
    br2 = jax.random.normal(ks[5], (out_channel,), jnp.float32) * 0.1
    return dict(
        wl=_spectral_normalize(wl), bl=bl,
        wr1=_spectral_normalize(wr1), br1=br1,
        wr2=_spectral_normalize(wr2), br2=br2,
    )


# ------------------------- pure-JAX reference check --------------------------

def _ref_forward(x_nchw, params):
    x = jnp.transpose(x_nchw, (0, 2, 3, 1)).astype(jnp.float32)

    def conv(h, w, b, pad):
        w_hwio = jnp.transpose(w, (2, 3, 1, 0))
        y = jax.lax.conv_general_dilated(
            h, w_hwio, window_strides=(1, 1),
            padding=[(pad, pad), (pad, pad)],
            dimension_numbers=("NHWC", "HWIO", "NHWC"))
        return y + b

    def avgpool2(h):
        N, H, W, C = h.shape
        return h.reshape(N, H // 2, 2, W // 2, 2, C).mean(axis=(2, 4))

    left = avgpool2(conv(x, params["wl"], params["bl"], 0))
    h = _leaky_relu(x)
    h = _leaky_relu(conv(h, params["wr1"], params["br1"], 1))
    h = avgpool2(conv(h, params["wr2"], params["br2"], 1))
    out = left + h
    return jnp.transpose(out, (0, 3, 1, 2))


if __name__ == "__main__":
    N, Cin, Cout, H, W = 2, 4, 8, 16, 16
    key = jax.random.PRNGKey(0)
    kx, kp = jax.random.split(key)
    x = jax.random.normal(kx, (N, Cin, H, W), jnp.float32)
    params = init_params(kp, Cin, Cout)

    out = resblock_down_forward(x, params, compute_dtype=jnp.bfloat16)
    out = jax.block_until_ready(out)

    ref = _ref_forward(x, params)
    assert out.shape == (N, Cout, H // 2, W // 2)
    # bf16 MXU inputs with f32 accumulation -> loose-but-meaningful tolerance
    # (any structural bug produces O(0.1..1) errors, far above this bound).
    np.testing.assert_allclose(np.asarray(out), np.asarray(ref),
                               rtol=5e-2, atol=5e-2)
    print("KERNEL_OK")
</pallas_src>

<mosaic_0001>
module attributes {stable_mosaic.version = 11 : i64} {
  func.func @_resblock_down_kernel(%arg0: i32, %arg1: memref<1x18x18x4xbf16, #tpu.memory_space<vmem>>, %arg2: memref<1x64x4xbf16, #tpu.memory_space<vmem>>, %arg3: memref<4x8xbf16, #tpu.memory_space<vmem>>, %arg4: memref<1x8xf32, #tpu.memory_space<vmem>>, %arg5: memref<9x4x8xbf16, #tpu.memory_space<vmem>>, %arg6: memref<1x8xf32, #tpu.memory_space<vmem>>, %arg7: memref<9x8x8xbf16, #tpu.memory_space<vmem>>, %arg8: memref<1x8xf32, #tpu.memory_space<vmem>>, %arg9: memref<1x64x8xf32, #tpu.memory_space<vmem>>, %arg10: memref<18x18x8xf32, #tpu.memory_space<vmem>>, %arg11: memref<256x8xf32, #tpu.memory_space<vmem>>) attributes {dimension_semantics = [#tpu.dimension_semantics<parallel>], iteration_bounds = array<i64: 2>, scalar_prefetch = 0 : i64, scratch_operands = 2 : i64, tpu.core_type = #tpu.core_type<tc>, window_params = [{transform_indices = @transform_0, window_bounds = array<i64: 1, 18, 18, 4>}, {transform_indices = @transform_1, window_bounds = array<i64: 1, 64, 4>}, {pipeline_mode = #tpu.pipeline_mode<synchronous>, transform_indices = @transform_2, window_bounds = array<i64: 4, 8>}, {pipeline_mode = #tpu.pipeline_mode<synchronous>, transform_indices = @transform_3, window_bounds = array<i64: 1, 8>}, {pipeline_mode = #tpu.pipeline_mode<synchronous>, transform_indices = @transform_4, window_bounds = array<i64: 9, 4, 8>}, {pipeline_mode = #tpu.pipeline_mode<synchronous>, transform_indices = @transform_5, window_bounds = array<i64: 1, 8>}, {pipeline_mode = #tpu.pipeline_mode<synchronous>, transform_indices = @transform_6, window_bounds = array<i64: 9, 8, 8>}, {pipeline_mode = #tpu.pipeline_mode<synchronous>, transform_indices = @transform_7, window_bounds = array<i64: 1, 8>}, {transform_indices = @transform_8, window_bounds = array<i64: 1, 64, 8>}]} {
    %c0 = arith.constant 0 : index
    %c0_0 = arith.constant 0 : index
    %c0_1 = arith.constant 0 : index
    %0 = vector.load %arg2[%c0, %c0_0, %c0_1] : memref<1x64x4xbf16, #tpu.memory_space<vmem>>, vector<1x64x4xbf16>
    %1 = vector.shape_cast %0 : vector<1x64x4xbf16> to vector<64x4xbf16>
    %c0_2 = arith.constant 0 : index
    %c0_3 = arith.constant 0 : index
    %2 = vector.load %arg3[%c0_2, %c0_3] : memref<4x8xbf16, #tpu.memory_space<vmem>>, vector<4x8xbf16>
    %cst = arith.constant dense<0.000000e+00> : vector<64x8xf32>
    %3 = tpu.matmul %1, %2, %cst {dimension_numbers = #tpu.dot_dimension_numbers<[1], [0], [0], [1], [0, 0, 1, 1], [], []>} : vector<64x4xbf16>, vector<4x8xbf16>, vector<64x8xf32> -> vector<64x8xf32>
    %c0_4 = arith.constant 0 : index
    %c0_5 = arith.constant 0 : index
    %4 = vector.load %arg4[%c0_4, %c0_5] : memref<1x8xf32, #tpu.memory_space<vmem>>, vector<1x8xf32>
    %5 = vector.broadcast %4 : vector<1x8xf32> to vector<64x8xf32>
    %6 = arith.addf %3, %5 : vector<64x8xf32>
    %cst_6 = arith.constant 0.000000e+00 : f32
    %7 = vector.broadcast %cst_6 : f32 to vector<256x8xf32>
    %c0_7 = arith.constant 0 : index
    %c0_8 = arith.constant 0 : index
    %c0_9 = arith.constant 0 : index
    %c0_10 = arith.constant 0 : index
    %8 = vector.load %arg1[%c0_7, %c0_8, %c0_9, %c0_10] : memref<1x18x18x4xbf16, #tpu.memory_space<vmem>>, vector<1x16x16x4xbf16>
    %9 = vector.shape_cast %8 : vector<1x16x16x4xbf16> to vector<16x16x4xbf16>
    %10 = vector.shape_cast %9 : vector<16x16x4xbf16> to vector<256x4xbf16>
    %c0_11 = arith.constant 0 : index
    %c0_12 = arith.constant 0 : index
    %c0_13 = arith.constant 0 : index
    %11 = vector.load %arg5[%c0_11, %c0_12, %c0_13] : memref<9x4x8xbf16, #tpu.memory_space<vmem>>, vector<1x4x8xbf16>
    %12 = vector.shape_cast %11 : vector<1x4x8xbf16> to vector<4x8xbf16>
    %cst_14 = arith.constant dense<0.000000e+00> : vector<256x8xf32>
    %13 = tpu.matmul %10, %12, %cst_14 {dimension_numbers = #tpu.dot_dimension_numbers<[1], [0], [0], [1], [0, 0, 1, 1], [], []>} : vector<256x4xbf16>, vector<4x8xbf16>, vector<256x8xf32> -> vector<256x8xf32>
    %14 = arith.addf %7, %13 : vector<256x8xf32>
    %c0_15 = arith.constant 0 : index
    %c0_16 = arith.constant 0 : index
    %c1 = arith.constant 1 : index
    %c0_17 = arith.constant 0 : index
    %15 = vector.load %arg1[%c0_15, %c0_16, %c1, %c0_17] : memref<1x18x18x4xbf16, #tpu.memory_space<vmem>>, vector<1x16x16x4xbf16>
    %16 = vector.shape_cast %15 : vector<1x16x16x4xbf16> to vector<16x16x4xbf16>
    %17 = vector.shape_cast %16 : vector<16x16x4xbf16> to vector<256x4xbf16>
    %c1_18 = arith.constant 1 : index
    %c0_19 = arith.constant 0 : index
    %c0_20 = arith.constant 0 : index
    %18 = vector.load %arg5[%c1_18, %c0_19, %c0_20] : memref<9x4x8xbf16, #tpu.memory_space<vmem>>, vector<1x4x8xbf16>
    %19 = vector.shape_cast %18 : vector<1x4x8xbf16> to vector<4x8xbf16>
    %cst_21 = arith.constant dense<0.000000e+00> : vector<256x8xf32>
    %20 = tpu.matmul %17, %19, %cst_21 {dimension_numbers = #tpu.dot_dimension_numbers<[1], [0], [0], [1], [0, 0, 1, 1], [], []>} : vector<256x4xbf16>, vector<4x8xbf16>, vector<256x8xf32> -> vector<256x8xf32>
    %21 = arith.addf %14, %20 : vector<256x8xf32>
    %c0_22 = arith.constant 0 : index
    %c0_23 = arith.constant 0 : index
    %c2 = arith.constant 2 : index
    %c0_24 = arith.constant 0 : index
    %22 = vector.load %arg1[%c0_22, %c0_23, %c2, %c0_24] : memref<1x18x18x4xbf16, #tpu.memory_space<vmem>>, vector<1x16x16x4xbf16>
    %23 = vector.shape_cast %22 : vector<1x16x16x4xbf16> to vector<16x16x4xbf16>
    %24 = vector.shape_cast %23 : vector<16x16x4xbf16> to vector<256x4xbf16>
    %c2_25 = arith.constant 2 : index
    %c0_26 = arith.constant 0 : index
    %c0_27 = arith.constant 0 : index
    %25 = vector.load %arg5[%c2_25, %c0_26, %c0_27] : memref<9x4x8xbf16, #tpu.memory_space<vmem>>, vector<1x4x8xbf16>
    %26 = vector.shape_cast %25 : vector<1x4x8xbf16> to vector<4x8xbf16>
    %cst_28 = arith.constant dense<0.000000e+00> : vector<256x8xf32>
    %27 = tpu.matmul %24, %26, %cst_28 {dimension_numbers = #tpu.dot_dimension_numbers<[1], [0], [0], [1], [0, 0, 1, 1], [], []>} : vector<256x4xbf16>, vector<4x8xbf16>, vector<256x8xf32> -> vector<256x8xf32>
    %28 = arith.addf %21, %27 : vector<256x8xf32>
    %c0_29 = arith.constant 0 : index
    %c1_30 = arith.constant 1 : index
    %c0_31 = arith.constant 0 : index
    %c0_32 = arith.constant 0 : index
    %29 = vector.load %arg1[%c0_29, %c1_30, %c0_31, %c0_32] : memref<1x18x18x4xbf16, #tpu.memory_space<vmem>>, vector<1x16x16x4xbf16>
    %30 = vector.shape_cast %29 : vector<1x16x16x4xbf16> to vector<16x16x4xbf16>
    %31 = vector.shape_cast %30 : vector<16x16x4xbf16> to vector<256x4xbf16>
    %c3 = arith.constant 3 : index
    %c0_33 = arith.constant 0 : index
    %c0_34 = arith.constant 0 : index
    %32 = vector.load %arg5[%c3, %c0_33, %c0_34] : memref<9x4x8xbf16, #tpu.memory_space<vmem>>, vector<1x4x8xbf16>
    %33 = vector.shape_cast %32 : vector<1x4x8xbf16> to vector<4x8xbf16>
    %cst_35 = arith.constant dense<0.000000e+00> : vector<256x8xf32>
    %34 = tpu.matmul %31, %33, %cst_35 {dimension_numbers = #tpu.dot_dimension_numbers<[1], [0], [0], [1], [0, 0, 1, 1], [], []>} : vector<256x4xbf16>, vector<4x8xbf16>, vector<256x8xf32> -> vector<256x8xf32>
    %35 = arith.addf %28, %34 : vector<256x8xf32>
    %c0_36 = arith.constant 0 : index
    %c1_37 = arith.constant 1 : index
    %c1_38 = arith.constant 1 : index
    %c0_39 = arith.constant 0 : index
    %36 = vector.load %arg1[%c0_36, %c1_37, %c1_38, %c0_39] : memref<1x18x18x4xbf16, #tpu.memory_space<vmem>>, vector<1x16x16x4xbf16>
    %37 = vector.shape_cast %36 : vector<1x16x16x4xbf16> to vector<16x16x4xbf16>
    %38 = vector.shape_cast %37 : vector<16x16x4xbf16> to vector<256x4xbf16>
    %c4 = arith.constant 4 : index
    %c0_40 = arith.constant 0 : index
    %c0_41 = arith.constant 0 : index
    %39 = vector.load %arg5[%c4, %c0_40, %c0_41] : memref<9x4x8xbf16, #tpu.memory_space<vmem>>, vector<1x4x8xbf16>
    %40 = vector.shape_cast %39 : vector<1x4x8xbf16> to vector<4x8xbf16>
    %cst_42 = arith.constant dense<0.000000e+00> : vector<256x8xf32>
    %41 = tpu.matmul %38, %40, %cst_42 {dimension_numbers = #tpu.dot_dimension_numbers<[1], [0], [0], [1], [0, 0, 1, 1], [], []>} : vector<256x4xbf16>, vector<4x8xbf16>, vector<256x8xf32> -> vector<256x8xf32>
    %42 = arith.addf %35, %41 : vector<256x8xf32>
    %c0_43 = arith.constant 0 : index
    %c1_44 = arith.constant 1 : index
    %c2_45 = arith.constant 2 : index
    %c0_46 = arith.constant 0 : index
    %43 = vector.load %arg1[%c0_43, %c1_44, %c2_45, %c0_46] : memref<1x18x18x4xbf16, #tpu.memory_space<vmem>>, vector<1x16x16x4xbf16>
    %44 = vector.shape_cast %43 : vector<1x16x16x4xbf16> to vector<16x16x4xbf16>
    %45 = vector.shape_cast %44 : vector<16x16x4xbf16> to vector<256x4xbf16>
    %c5 = arith.constant 5 : index
    %c0_47 = arith.constant 0 : index
    %c0_48 = arith.constant 0 : index
    %46 = vector.load %arg5[%c5, %c0_47, %c0_48] : memref<9x4x8xbf16, #tpu.memory_space<vmem>>, vector<1x4x8xbf16>
    %47 = vector.shape_cast %46 : vector<1x4x8xbf16> to vector<4x8xbf16>
    %cst_49 = arith.constant dense<0.000000e+00> : vector<256x8xf32>
    %48 = tpu.matmul %45, %47, %cst_49 {dimension_numbers = #tpu.dot_dimension_numbers<[1], [0], [0], [1], [0, 0, 1, 1], [], []>} : vector<256x4xbf16>, vector<4x8xbf16>, vector<256x8xf32> -> vector<256x8xf32>
    %49 = arith.addf %42, %48 : vector<256x8xf32>
    %c0_50 = arith.constant 0 : index
    %c2_51 = arith.constant 2 : index
    %c0_52 = arith.constant 0 : index
    %c0_53 = arith.constant 0 : index
    %50 = vector.load %arg1[%c0_50, %c2_51, %c0_52, %c0_53] : memref<1x18x18x4xbf16, #tpu.memory_space<vmem>>, vector<1x16x16x4xbf16>
    %51 = vector.shape_cast %50 : vector<1x16x16x4xbf16> to vector<16x16x4xbf16>
    %52 = vector.shape_cast %51 : vector<16x16x4xbf16> to vector<256x4xbf16>
    %c6 = arith.constant 6 : index
    %c0_54 = arith.constant 0 : index
    %c0_55 = arith.constant 0 : index
    %53 = vector.load %arg5[%c6, %c0_54, %c0_55] : memref<9x4x8xbf16, #tpu.memory_space<vmem>>, vector<1x4x8xbf16>
    %54 = vector.shape_cast %53 : vector<1x4x8xbf16> to vector<4x8xbf16>
    %cst_56 = arith.constant dense<0.000000e+00> : vector<256x8xf32>
    %55 = tpu.matmul %52, %54, %cst_56 {dimension_numbers = #tpu.dot_dimension_numbers<[1], [0], [0], [1], [0, 0, 1, 1], [], []>} : vector<256x4xbf16>, vector<4x8xbf16>, vector<256x8xf32> -> vector<256x8xf32>
    %56 = arith.addf %49, %55 : vector<256x8xf32>
    %c0_57 = arith.constant 0 : index
    %c2_58 = arith.constant 2 : index
    %c1_59 = arith.constant 1 : index
    %c0_60 = arith.constant 0 : index
    %57 = vector.load %arg1[%c0_57, %c2_58, %c1_59, %c0_60] : memref<1x18x18x4xbf16, #tpu.memory_space<vmem>>, vector<1x16x16x4xbf16>
    %58 = vector.shape_cast %57 : vector<1x16x16x4xbf16> to vector<16x16x4xbf16>
    %59 = vector.shape_cast %58 : vector<16x16x4xbf16> to vector<256x4xbf16>
    %c7 = arith.constant 7 : index
    %c0_61 = arith.constant 0 : index
    %c0_62 = arith.constant 0 : index
    %60 = vector.load %arg5[%c7, %c0_61, %c0_62] : memref<9x4x8xbf16, #tpu.memory_space<vmem>>, vector<1x4x8xbf16>
    %61 = vector.shape_cast %60 : vector<1x4x8xbf16> to vector<4x8xbf16>
    %cst_63 = arith.constant dense<0.000000e+00> : vector<256x8xf32>
    %62 = tpu.matmul %59, %61, %cst_63 {dimension_numbers = #tpu.dot_dimension_numbers<[1], [0], [0], [1], [0, 0, 1, 1], [], []>} : vector<256x4xbf16>, vector<4x8xbf16>, vector<256x8xf32> -> vector<256x8xf32>
    %63 = arith.addf %56, %62 : vector<256x8xf32>
    %c0_64 = arith.constant 0 : index
    %c2_65 = arith.constant 2 : index
    %c2_66 = arith.constant 2 : index
    %c0_67 = arith.constant 0 : index
    %64 = vector.load %arg1[%c0_64, %c2_65, %c2_66, %c0_67] : memref<1x18x18x4xbf16, #tpu.memory_space<vmem>>, vector<1x16x16x4xbf16>
    %65 = vector.shape_cast %64 : vector<1x16x16x4xbf16> to vector<16x16x4xbf16>
    %66 = vector.shape_cast %65 : vector<16x16x4xbf16> to vector<256x4xbf16>
    %c8 = arith.constant 8 : index
    %c0_68 = arith.constant 0 : index
    %c0_69 = arith.constant 0 : index
    %67 = vector.load %arg5[%c8, %c0_68, %c0_69] : memref<9x4x8xbf16, #tpu.memory_space<vmem>>, vector<1x4x8xbf16>
    %68 = vector.shape_cast %67 : vector<1x4x8xbf16> to vector<4x8xbf16>
    %cst_70 = arith.constant dense<0.000000e+00> : vector<256x8xf32>
    %69 = tpu.matmul %66, %68, %cst_70 {dimension_numbers = #tpu.dot_dimension_numbers<[1], [0], [0], [1], [0, 0, 1, 1], [], []>} : vector<256x4xbf16>, vector<4x8xbf16>, vector<256x8xf32> -> vector<256x8xf32>
    %70 = arith.addf %63, %69 : vector<256x8xf32>
    %c0_71 = arith.constant 0 : index
    %c0_72 = arith.constant 0 : index
    %71 = vector.load %arg6[%c0_71, %c0_72] : memref<1x8xf32, #tpu.memory_space<vmem>>, vector<1x8xf32>
    %72 = vector.broadcast %71 : vector<1x8xf32> to vector<256x8xf32>
    %73 = arith.addf %70, %72 : vector<256x8xf32>
    %cst_73 = arith.constant 0.00999999977 : f32
    %74 = vector.broadcast %cst_73 : f32 to vector<256x8xf32>
    %75 = arith.mulf %73, %74 : vector<256x8xf32>
    %76 = arith.maximumf %73, %75 : vector<256x8xf32>
    %cst_74 = arith.constant 0.000000e+00 : f32
    %77 = vector.broadcast %cst_74 : f32 to vector<18x18x8xf32>
    %c0_75 = arith.constant 0 : index
    %c0_76 = arith.constant 0 : index
    %c0_77 = arith.constant 0 : index
    %78 = vector.load %arg10[%c0_75, %c0_76, %c0_77] : memref<18x18x8xf32, #tpu.memory_space<vmem>>, vector<18x18x8xf32>
    tpu.vector_store %arg10[%c0_75, %c0_76, %c0_77], %77 {strides = array<i32>} : memref<18x18x8xf32, #tpu.memory_space<vmem>>, vector<18x18x8xf32>,
    %79 = vector.shape_cast %76 : vector<256x8xf32> to vector<16x16x8xf32>
    %c1_78 = arith.constant 1 : index
    %c1_79 = arith.constant 1 : index
    %c0_80 = arith.constant 0 : index
    %80 = vector.load %arg10[%c1_78, %c1_79, %c0_80] : memref<18x18x8xf32, #tpu.memory_space<vmem>>, vector<16x16x8xf32>
    tpu.vector_store %arg10[%c1_78, %c1_79, %c0_80], %79 {strides = array<i32>} : memref<18x18x8xf32, #tpu.memory_space<vmem>>, vector<16x16x8xf32>,
    %cst_81 = arith.constant 0.000000e+00 : f32
    %81 = vector.broadcast %cst_81 : f32 to vector<256x8xf32>
    %c0_82 = arith.constant 0 : index
    %c0_83 = arith.constant 0 : index
    %c0_84 = arith.constant 0 : index
    %82 = vector.load %arg10[%c0_82, %c0_83, %c0_84] : memref<18x18x8xf32, #tpu.memory_space<vmem>>, vector<16x16x8xf32>
    %83 = vector.shape_cast %82 : vector<16x16x8xf32> to vector<256x8xf32>
    %84 = arith.truncf %83 : vector<256x8xf32> to vector<256x8xbf16>
    %c0_85 = arith.constant 0 : index
    %c0_86 = arith.constant 0 : index
    %c0_87 = arith.constant 0 : index
    %85 = vector.load %arg7[%c0_85, %c0_86, %c0_87] : memref<9x8x8xbf16, #tpu.memory_space<vmem>>, vector<1x8x8xbf16>
    %86 = vector.shape_cast %85 : vector<1x8x8xbf16> to vector<8x8xbf16>
    %cst_88 = arith.constant dense<0.000000e+00> : vector<256x8xf32>
    %87 = tpu.matmul %84, %86, %cst_88 {dimension_numbers = #tpu.dot_dimension_numbers<[1], [0], [0], [1], [0, 0, 1, 1], [], []>} : vector<256x8xbf16>, vector<8x8xbf16>, vector<256x8xf32> -> vector<256x8xf32>
    %88 = arith.addf %81, %87 : vector<256x8xf32>
    %c0_89 = arith.constant 0 : index
    %c1_90 = arith.constant 1 : index
    %c0_91 = arith.constant 0 : index
    %89 = vector.load %arg10[%c0_89, %c1_90, %c0_91] : memref<18x18x8xf32, #tpu.memory_space<vmem>>, vector<16x16x8xf32>
    %90 = vector.shape_cast %89 : vector<16x16x8xf32> to vector<256x8xf32>
    %91 = arith.truncf %90 : vector<256x8xf32> to vector<256x8xbf16>
    %c1_92 = arith.constant 1 : index
    %c0_93 = arith.constant 0 : index
    %c0_94 = arith.constant 0 : index
    %92 = vector.load %arg7[%c1_92, %c0_93, %c0_94] : memref<9x8x8xbf16, #tpu.memory_space<vmem>>, vector<1x8x8xbf16>
    %93 = vector.shape_cast %92 : vector<1x8x8xbf16> to vector<8x8xbf16>
    %cst_95 = arith.constant dense<0.000000e+00> : vector<256x8xf32>
    %94 = tpu.matmul %91, %93, %cst_95 {dimension_numbers = #tpu.dot_dimension_numbers<[1], [0], [0], [1], [0, 0, 1, 1], [], []>} : vector<256x8xbf16>, vector<8x8xbf16>, vector<256x8xf32> -> vector<256x8xf32>
    %95 = arith.addf %88, %94 : vector<256x8xf32>
    %c0_96 = arith.constant 0 : index
    %c2_97 = arith.constant 2 : index
    %c0_98 = arith.constant 0 : index
    %96 = vector.load %arg10[%c0_96, %c2_97, %c0_98] : memref<18x18x8xf32, #tpu.memory_space<vmem>>, vector<16x16x8xf32>
    %97 = vector.shape_cast %96 : vector<16x16x8xf32> to vector<256x8xf32>
    %98 = arith.truncf %97 : vector<256x8xf32> to vector<256x8xbf16>
    %c2_99 = arith.constant 2 : index
    %c0_100 = arith.constant 0 : index
    %c0_101 = arith.constant 0 : index
    %99 = vector.load %arg7[%c2_99, %c0_100, %c0_101] : memref<9x8x8xbf16, #tpu.memory_space<vmem>>, vector<1x8x8xbf16>
    %100 = vector.shape_cast %99 : vector<1x8x8xbf16> to vector<8x8xbf16>
    %cst_102 = arith.constant dense<0.000000e+00> : vector<256x8xf32>
    %101 = tpu.matmul %98, %100, %cst_102 {dimension_numbers = #tpu.dot_dimension_numbers<[1], [0], [0], [1], [0, 0, 1, 1], [], []>} : vector<256x8xbf16>, vector<8x8xbf16>, vector<256x8xf32> -> vector<256x8xf32>
    %102 = arith.addf %95, %101 : vector<256x8xf32>
    %c1_103 = arith.constant 1 : index
    %c0_104 = arith.constant 0 : index
    %c0_105 = arith.constant 0 : index
    %103 = vector.load %arg10[%c1_103, %c0_104, %c0_105] : memref<18x18x8xf32, #tpu.memory_space<vmem>>, vector<16x16x8xf32>
    %104 = vector.shape_cast %103 : vector<16x16x8xf32> to vector<256x8xf32>
    %105 = arith.truncf %104 : vector<256x8xf32> to vector<256x8xbf16>
    %c3_106 = arith.constant 3 : index
    %c0_107 = arith.constant 0 : index
    %c0_108 = arith.constant 0 : index
    %106 = vector.load %arg7[%c3_106, %c0_107, %c0_108] : memref<9x8x8xbf16, #tpu.memory_space<vmem>>, vector<1x8x8xbf16>
    %107 = vector.shape_cast %106 : vector<1x8x8xbf16> to vector<8x8xbf16>
    %cst_109 = arith.constant dense<0.000000e+00> : vector<256x8xf32>
    %108 = tpu.matmul %105, %107, %cst_109 {dimension_numbers = #tpu.dot_dimension_numbers<[1], [0], [0], [1], [0, 0, 1, 1], [], []>} : vector<256x8xbf16>, vector<8x8xbf16>, vector<256x8xf32> -> vector<256x8xf32>
    %109 = arith.addf %102, %108 : vector<256x8xf32>
    %c1_110 = arith.constant 1 : index
    %c1_111 = arith.constant 1 : index
    %c0_112 = arith.constant 0 : index
    %110 = vector.load %arg10[%c1_110, %c1_111, %c0_112] : memref<18x18x8xf32, #tpu.memory_space<vmem>>, vector<16x16x8xf32>
    %111 = vector.shape_cast %110 : vector<16x16x8xf32> to vector<256x8xf32>
    %112 = arith.truncf %111 : vector<256x8xf32> to vector<256x8xbf16>
    %c4_113 = arith.constant 4 : index
    %c0_114 = arith.constant 0 : index
    %c0_115 = arith.constant 0 : index
    %113 = vector.load %arg7[%c4_113, %c0_114, %c0_115] : memref<9x8x8xbf16, #tpu.memory_space<vmem>>, vector<1x8x8xbf16>
    %114 = vector.shape_cast %113 : vector<1x8x8xbf16> to vector<8x8xbf16>
    %cst_116 = arith.constant dense<0.000000e+00> : vector<256x8xf32>
    %115 = tpu.matmul %112, %114, %cst_116 {dimension_numbers = #tpu.dot_dimension_numbers<[1], [0], [0], [1], [0, 0, 1, 1], [], []>} : vector<256x8xbf16>, vector<8x8xbf16>, vector<256x8xf32> -> vector<256x8xf32>
    %116 = arith.addf %109, %115 : vector<256x8xf32>
    %c1_117 = arith.constant 1 : index
    %c2_118 = arith.constant 2 : index
    %c0_119 = arith.constant 0 : index
    %117 = vector.load %arg10[%c1_117, %c2_118, %c0_119] : memref<18x18x8xf32, #tpu.memory_space<vmem>>, vector<16x16x8xf32>
    %118 = vector.shape_cast %117 : vector<16x16x8xf32> to vector<256x8xf32>
    %119 = arith.truncf %118 : vector<256x8xf32> to vector<256x8xbf16>
    %c5_120 = arith.constant 5 : index
    %c0_121 = arith.constant 0 : index
    %c0_122 = arith.constant 0 : index
    %120 = vector.load %arg7[%c5_120, %c0_121, %c0_122] : memref<9x8x8xbf16, #tpu.memory_space<vmem>>, vector<1x8x8xbf16>
    %121 = vector.shape_cast %120 : vector<1x8x8xbf16> to vector<8x8xbf16>
    %cst_123 = arith.constant dense<0.000000e+00> : vector<256x8xf32>
    %122 = tpu.matmul %119, %121, %cst_123 {dimension_numbers = #tpu.dot_dimension_numbers<[1], [0], [0], [1], [0, 0, 1, 1], [], []>} : vector<256x8xbf16>, vector<8x8xbf16>, vector<256x8xf32> -> vector<256x8xf32>
    %123 = arith.addf %116, %122 : vector<256x8xf32>
    %c2_124 = arith.constant 2 : index
    %c0_125 = arith.constant 0 : index
    %c0_126 = arith.constant 0 : index
    %124 = vector.load %arg10[%c2_124, %c0_125, %c0_126] : memref<18x18x8xf32, #tpu.memory_space<vmem>>, vector<16x16x8xf32>
    %125 = vector.shape_cast %124 : vector<16x16x8xf32> to vector<256x8xf32>
    %126 = arith.truncf %125 : vector<256x8xf32> to vector<256x8xbf16>
    %c6_127 = arith.constant 6 : index
    %c0_128 = arith.constant 0 : index
    %c0_129 = arith.constant 0 : index
    %127 = vector.load %arg7[%c6_127, %c0_128, %c0_129] : memref<9x8x8xbf16, #tpu.memory_space<vmem>>, vector<1x8x8xbf16>
    %128 = vector.shape_cast %127 : vector<1x8x8xbf16> to vector<8x8xbf16>
    %cst_130 = arith.constant dense<0.000000e+00> : vector<256x8xf32>
    %129 = tpu.matmul %126, %128, %cst_130 {dimension_numbers = #tpu.dot_dimension_numbers<[1], [0], [0], [1], [0, 0, 1, 1], [], []>} : vector<256x8xbf16>, vector<8x8xbf16>, vector<256x8xf32> -> vector<256x8xf32>
    %130 = arith.addf %123, %129 : vector<256x8xf32>
    %c2_131 = arith.constant 2 : index
    %c1_132 = arith.constant 1 : index
    %c0_133 = arith.constant 0 : index
    %131 = vector.load %arg10[%c2_131, %c1_132, %c0_133] : memref<18x18x8xf32, #tpu.memory_space<vmem>>, vector<16x16x8xf32>
    %132 = vector.shape_cast %131 : vector<16x16x8xf32> to vector<256x8xf32>
    %133 = arith.truncf %132 : vector<256x8xf32> to vector<256x8xbf16>
    %c7_134 = arith.constant 7 : index
    %c0_135 = arith.constant 0 : index
    %c0_136 = arith.constant 0 : index
    %134 = vector.load %arg7[%c7_134, %c0_135, %c0_136] : memref<9x8x8xbf16, #tpu.memory_space<vmem>>, vector<1x8x8xbf16>
    %135 = vector.shape_cast %134 : vector<1x8x8xbf16> to vector<8x8xbf16>
    %cst_137 = arith.constant dense<0.000000e+00> : vector<256x8xf32>
    %136 = tpu.matmul %133, %135, %cst_137 {dimension_numbers = #tpu.dot_dimension_numbers<[1], [0], [0], [1], [0, 0, 1, 1], [], []>} : vector<256x8xbf16>, vector<8x8xbf16>, vector<256x8xf32> -> vector<256x8xf32>
    %137 = arith.addf %130, %136 : vector<256x8xf32>
    %c2_138 = arith.constant 2 : index
    %c2_139 = arith.constant 2 : index
    %c0_140 = arith.constant 0 : index
    %138 = vector.load %arg10[%c2_138, %c2_139, %c0_140] : memref<18x18x8xf32, #tpu.memory_space<vmem>>, vector<16x16x8xf32>
    %139 = vector.shape_cast %138 : vector<16x16x8xf32> to vector<256x8xf32>
    %140 = arith.truncf %139 : vector<256x8xf32> to vector<256x8xbf16>
    %c8_141 = arith.constant 8 : index
    %c0_142 = arith.constant 0 : index
    %c0_143 = arith.constant 0 : index
    %141 = vector.load %arg7[%c8_141, %c0_142, %c0_143] : memref<9x8x8xbf16, #tpu.memory_space<vmem>>, vector<1x8x8xbf16>
    %142 = vector.shape_cast %141 : vector<1x8x8xbf16> to vector<8x8xbf16>
    %cst_144 = arith.constant dense<0.000000e+00> : vector<256x8xf32>
    %143 = tpu.matmul %140, %142, %cst_144 {dimension_numbers = #tpu.dot_dimension_numbers<[1], [0], [0], [1], [0, 0, 1, 1], [], []>} : vector<256x8xbf16>, vector<8x8xbf16>, vector<256x8xf32> -> vector<256x8xf32>
    %144 = arith.addf %137, %143 : vector<256x8xf32>
    %c0_145 = arith.constant 0 : index
    %c0_146 = arith.constant 0 : index
    %145 = vector.load %arg11[%c0_145, %c0_146] : memref<256x8xf32, #tpu.memory_space<vmem>>, vector<256x8xf32>
    tpu.vector_store %arg11[%c0_145, %c0_146], %144 {strides = array<i32>} : memref<256x8xf32, #tpu.memory_space<vmem>>, vector<256x8xf32>,
    %c0_147 = arith.constant 0 : index
    %c0_148 = arith.constant 0 : index
    %146 = tpu.strided_load %arg11[%c0_147, %c0_148] {strides = array<i32: 2, 1>} : memref<256x8xf32, #tpu.memory_space<vmem>>, vector<128x8xf32>
    %c1_149 = arith.constant 1 : index
    %c0_150 = arith.constant 0 : index
    %147 = tpu.strided_load %arg11[%c1_149, %c0_150] {strides = array<i32: 2, 1>} : memref<256x8xf32, #tpu.memory_space<vmem>>, vector<128x8xf32>
    %148 = arith.addf %146, %147 : vector<128x8xf32>
    %149 = vector.shape_cast %148 : vector<128x8xf32> to vector<8x16x8xf32>
    %150 = vector.extract_strided_slice %149 {offsets = [0, 0, 0], sizes = [8, 8, 8], strides = [1, 1, 1]} : vector<8x16x8xf32> to vector<8x8x8xf32>
    %151 = vector.extract_strided_slice %149 {offsets = [0, 8, 0], sizes = [8, 8, 8], strides = [1, 1, 1]} : vector<8x16x8xf32> to vector<8x8x8xf32>
    %152 = arith.addf %150, %151 : vector<8x8x8xf32>
    %cst_151 = arith.constant 2.500000e-01 : f32
    %153 = vector.broadcast %cst_151 : f32 to vector<8x8x8xf32>
    %154 = arith.mulf %153, %152 : vector<8x8x8xf32>
    %155 = vector.shape_cast %154 : vector<8x8x8xf32> to vector<64x8xf32>
    %c0_152 = arith.constant 0 : index
    %c0_153 = arith.constant 0 : index
    %156 = vector.load %arg8[%c0_152, %c0_153] : memref<1x8xf32, #tpu.memory_space<vmem>>, vector<1x8xf32>
    %157 = vector.broadcast %156 : vector<1x8xf32> to vector<64x8xf32>
    %158 = arith.addf %155, %157 : vector<64x8xf32>
    %159 = arith.addf %6, %158 : vector<64x8xf32>
    %c0_154 = arith.constant 0 : index
    %c0_155 = arith.constant 0 : index
    %c0_156 = arith.constant 0 : index
    %160 = vector.load %arg9[%c0_154, %c0_155, %c0_156] : memref<1x64x8xf32, #tpu.memory_space<vmem>>, vector<1x64x8xf32>
    %161 = vector.shape_cast %160 : vector<1x64x8xf32> to vector<64x8xf32>
    %162 = vector.shape_cast %159 : vector<64x8xf32> to vector<1x64x8xf32>
    tpu.vector_store %arg9[%c0_154, %c0_155, %c0_156], %162 {strides = array<i32>} : memref<1x64x8xf32, #tpu.memory_space<vmem>>, vector<1x64x8xf32>,
    return
  }
  func.func @transform_0(%arg0: i32) -> (i32, i32, i32, i32) {
    %c0_i32 = arith.constant 0 : i32
    %c0_i32_0 = arith.constant 0 : i32
    %c0_i32_1 = arith.constant 0 : i32
    %c0_i32_2 = arith.constant 0 : i32
    return %arg0, %c0_i32, %c0_i32_0, %c0_i32_1 : i32, i32, i32, i32
  }
  func.func @transform_1(%arg0: i32) -> (i32, i32, i32) {
    %c0_i32 = arith.constant 0 : i32
    %c0_i32_0 = arith.constant 0 : i32
    %c0_i32_1 = arith.constant 0 : i32
    return %arg0, %c0_i32, %c0_i32_0 : i32, i32, i32
  }
  func.func @transform_2(%arg0: i32) -> (i32, i32) {
    %c0_i32 = arith.constant 0 : i32
    %c0_i32_0 = arith.constant 0 : i32
    %c0_i32_1 = arith.constant 0 : i32
    return %c0_i32, %c0_i32_0 : i32, i32
  }
  func.func @transform_3(%arg0: i32) -> (i32, i32) {
    %c0_i32 = arith.constant 0 : i32
    %c0_i32_0 = arith.constant 0 : i32
    %c0_i32_1 = arith.constant 0 : i32
    return %c0_i32, %c0_i32_0 : i32, i32
  }
  func.func @transform_4(%arg0: i32) -> (i32, i32, i32) {
    %c0_i32 = arith.constant 0 : i32
    %c0_i32_0 = arith.constant 0 : i32
    %c0_i32_1 = arith.constant 0 : i32
    %c0_i32_2 = arith.constant 0 : i32
    return %c0_i32, %c0_i32_0, %c0_i32_1 : i32, i32, i32
  }
  func.func @transform_5(%arg0: i32) -> (i32, i32) {
    %c0_i32 = arith.constant 0 : i32
    %c0_i32_0 = arith.constant 0 : i32
    %c0_i32_1 = arith.constant 0 : i32
    return %c0_i32, %c0_i32_0 : i32, i32
  }
  func.func @transform_6(%arg0: i32) -> (i32, i32, i32) {
    %c0_i32 = arith.constant 0 : i32
    %c0_i32_0 = arith.constant 0 : i32
    %c0_i32_1 = arith.constant 0 : i32
    %c0_i32_2 = arith.constant 0 : i32
    return %c0_i32, %c0_i32_0, %c0_i32_1 : i32, i32, i32
  }
  func.func @transform_7(%arg0: i32) -> (i32, i32) {
    %c0_i32 = arith.constant 0 : i32
    %c0_i32_0 = arith.constant 0 : i32
    %c0_i32_1 = arith.constant 0 : i32
    return %c0_i32, %c0_i32_0 : i32, i32
  }
  func.func @transform_8(%arg0: i32) -> (i32, i32, i32) {
    %c0_i32 = arith.constant 0 : i32
    %c0_i32_0 = arith.constant 0 : i32
    %c0_i32_1 = arith.constant 0 : i32
    return %arg0, %c0_i32, %c0_i32_0 : i32, i32, i32
  }
}

</mosaic_0001>

<bundles_post_ra>
// kernel: tpu_custom_call.1
= control target key start
LH: loop header
LB: loop body
LE: loop exit
PB: predicated region body
PF: predicated region fallthrough
CT: control target
= control target key end

     0   :  { %s13677_s0 = inlined_call_operand.hbm [shape: bf16[2,18,18,4], index: 0, kind: input, shape index: {}]   ;;  %s13678_s1 = inlined_call_operand.hbm [shape: bf16[2,64,4], index: 1, kind: input, shape index: {}]   ;;  %s13679_s2 = inlined_call_operand.hbm [shape: bf16[4,8], index: 2, kind: input, shape index: {}]   ;;  %s13680_s3 = inlined_call_operand.hbm [shape: f32[1,8], index: 3, kind: input, shape index: {}]   ;;  %s13681_s4 = inlined_call_operand.hbm [shape: bf16[9,4,8], index: 4, kind: input, shape index: {}]   ;;  %s13682_s5 = inlined_call_operand.hbm [shape: f32[1,8], index: 5, kind: input, shape index: {}]   ;;  %s13683_s6 = inlined_call_operand.hbm [shape: bf16[9,8,8], index: 6, kind: input, shape index: {}]   ;;  %s13684_s7 = inlined_call_operand.hbm [shape: f32[1,8], index: 7, kind: input, shape index: {}]   ;;  %s13685_s8 = inlined_call_operand.hbm [shape: f32[2,64,8], index: 8, kind: output, shape index: {}]  }
   0x1   :  { %13718 = sst [smem:[#allocation39_spill]] %s13677_s0 }
   0x2   :  { %13719 = sst [smem:[#allocation40_spill]] %s13679_s2 }
   0x3   :  { %13720 = sst [smem:[#allocation41_spill]] %s13680_s3 }
   0x4   :  { %13721 = sst [smem:[#allocation42_spill]] %s13681_s4 }
   0x5   :  { %13722 = sst [smem:[#allocation43_spill]] %s13682_s5 }
   0x6   :  { %13723 = sst [smem:[#allocation44_spill]] %s13683_s6 }
   0x7   :  { %13 = vsyncpa [#allocation5], 0 }
   0x8   :  { %15 = vsyncpa [#allocation5 + $0x1], 0 }
   0x9   :  { %16 = vsyncpa [#allocation8], 0 }
   0xa   :  { %18 = vsyncpa [#allocation8 + $0x1], 0 }
   0xb   :  { %19 = vsyncpa [#allocation11], 0 }
   0xc   :  { %20 = vsyncpa [#allocation14], 0 }
   0xd   :  { %21 = vsyncpa [#allocation17], 0 }
   0xe   :  { %22 = vsyncpa [#allocation6], 0 }
   0xf   :  { %24 = vsyncpa [#allocation6 + $0x1], 0  ;;  %s10955_s27 = smov 0   ;;  %s10957_s28 = smov 0  }
  0x10   :  { %s10959_s29 = smov 0   ;;  %s10961_s30 = smov 0  }
  0x11 LB: > { %s10894_s9 = smov [#allocation9]   ;;  %s10976_s11 = sadd.s32 4294967295, %s10892_s30   ;;  %s10892_s30 = sphi %s10961_s30, %s13847_s30   ;;  %s10888_s29 = sphi %s10959_s29, %s13846_s29   ;;  %s10884_s28 = sphi %s10957_s28, %s13845_s28   ;;  %s10880_s27 = sphi %s10955_s27, %s13844_s27  }
  0x12   : > { %s252_s10 = sshll.u32 %s10894_s9, 4  ;;  %p8220_p0 = scmp.ge.s32.totalorder %s10892_s30, 1  ;;  %s10981_s10 = int_to_ptr.vmem [resolvable:$true] %s252_s10 }
  0x13   : > { %p13686_p1 = scmp.eq.s32.totalorder %s10976_s11, 0  ;;  %p239_p2 = scmp.lt.s32.totalorder %s10892_s30, 3 }
  0x14   : > { %s10895_s13 = smov [#allocation10]   ;;  %s10896_s15 = smov [#allocation13]  }
  0x15   : > { %p10983_p3 = pnand %p8220_p0, %p239_p2  ;;  %s263_s14 = sshll.u32 %s10895_s13, 4  ;;  %s10990_s14 = int_to_ptr.vmem [resolvable:$true] %s263_s14 }
  0x16   : > { %s287_s16 = sshll.u32 %s10896_s15, 4  ;;  %s10897_s18 = smov [#allocation12]   ;;  %s10998_s16 = int_to_ptr.vmem [resolvable:$true] %s287_s16 }
  0x17   : > { %s13724_s12 = scalar_select %p10983_p3, 1, 0 }
  0x18   : > { %p10431_p5 = pneg %p10983_p3  ;;  %s11000_s19 = sshll.u32 %s10897_s18, 4  ;;  %s274_s19 = int_to_ptr.vmem [resolvable:$true] %s11000_s19 }
  0x19   : > { %s13726_s2 = sld [smem:[#allocation40_spill]] }
  0x1a   : > { %p10994_p6 = pnand %p10431_p5, %p13686_p1 }
  0x1c   : > { %p11010_p8 = pneg %p10994_p6 }
  0x1f   : > { %s10578_s22 = scalar_lea.hbm %s13726_s2, 32 }
  0x20   : > { %p10579_p7 = scmp.ne.s32.totalorder %s13726_s2, %s10578_s22  ;;  %p10585_p11 = scmp.lt.u32.totalorder %s10578_s22, %s13726_s2 }
  0x22   : > { %p10581_p9 = pnand %p11010_p8, %p10579_p7 }
  0x24   : > { %p10582_p10 = pneg %p10581_p9 }
  0x26   : > { %p10587_p12 = pnand %p10585_p11, %p10582_p10 }
  0x28   : > { %10590 = shalt.err (!%p10587_p12)
}
  0x29   : > { %s10591_s13 = scalar_lea.vmem %s10981_s10, 32  ;;  %p10599_p5 = scmp.lt.s32.totalorder %s10981_s10, %s10981_s10 }
  0x2a   : > { %p10592_p13 = scmp.ne.s32.totalorder %s10981_s10, %s10591_s13  ;;  %p10600_p4 = scmp.lt.s32.totalorder %s10591_s13, %s10591_s13 }
  0x2c   : > { %p10594_p0 = pnand %p10592_p13, %p11010_p8  ;;  %p10601_p7 = por %p10600_p4, %p10599_p5 }
  0x2e   : > { %p10595_p2 = pneg %p10594_p0 }
  0x30   : > { %p10602_p9 = pnand %p10601_p7, %p10595_p2 }
  0x32   : > { %10605 = shalt.err (!%p10602_p9)
}
  0x33   : > { %10434 = dma.hbm_to_vmem [thread:$0]  (!%p10994_p6), %s13726_s2, 32, %s10981_s10, [#allocation8]  }
  0x34   : > { %s13728_s3 = sld [smem:[#allocation41_spill]] }
  0x3a   : > { %s10606_s22 = scalar_lea.hbm %s13728_s3, 16 }
  0x3b   : > { %p10607_p10 = scmp.ne.s32.totalorder %s13728_s3, %s10606_s22  ;;  %p10613_p12 = scmp.lt.u32.totalorder %s10606_s22, %s13728_s3 }
  0x3d   : > { %p10609_p4 = pnand %p10607_p10, %p11010_p8 }
  0x3f   : > { %p10610_p11 = pneg %p10609_p4 }
  0x41   : > { %p10615_p13 = pnand %p10613_p12, %p10610_p11 }
  0x43   : > { %10618 = shalt.err (!%p10615_p13)
}
  0x44   : > { %s10619_s10 = scalar_lea.vmem %s10990_s14, 16  ;;  %s10626_s13 = scalar_lea.vmem %s10990_s14, 32 }
  0x45   : > { %p10620_p0 = scmp.ne.s32.totalorder %s10990_s14, %s10619_s10  ;;  %p10627_p7 = scmp.lt.s32.totalorder %s10990_s14, %s10990_s14 }
  0x46   : > { %p10628_p9 = scmp.lt.s32.totalorder %s10626_s13, %s10619_s10 }
  0x47   : > { %p10622_p2 = pnand %p10620_p0, %p11010_p8 }
  0x48   : > { %p10629_p10 = por %p10628_p9, %p10627_p7 }
  0x49   : > { %p10623_p5 = pneg %p10622_p2 }
  0x4b   : > { %p10630_p4 = pnand %p10629_p10, %p10623_p5 }
  0x4d   : > { %10633 = shalt.err (!%p10630_p4)
}
  0x4e   : > { %10437 = dma.hbm_to_vmem [thread:$0]  (!%p10994_p6), %s13728_s3, 16, %s10990_s14, [#allocation11]  }
  0x4f   : > { %s13729_s5 = sld [smem:[#allocation43_spill]] }
  0x55   : > { %s10634_s22 = scalar_lea.hbm %s13729_s5, 16 }
  0x56   : > { %p10635_p11 = scmp.ne.s32.totalorder %s13729_s5, %s10634_s22  ;;  %p10641_p0 = scmp.lt.u32.totalorder %s10634_s22, %s13729_s5 }
  0x58   : > { %p10637_p12 = pnand %p10635_p11, %p11010_p8 }
  0x5a   : > { %p10638_p13 = pneg %p10637_p12 }
  0x5c   : > { %p10643_p2 = pnand %p10641_p0, %p10638_p13 }
  0x5e   : > { %10646 = shalt.err (!%p10643_p2)
}
  0x5f   : > { %s10647_s14 = scalar_lea.vmem %s10998_s16, 16  ;;  %s10654_s10 = scalar_lea.vmem %s10998_s16, 32 }
  0x60   : > { %p10648_p5 = scmp.ne.s32.totalorder %s10998_s16, %s10647_s14  ;;  %p10655_p10 = scmp.lt.s32.totalorder %s10998_s16, %s10998_s16 }
  0x61   : > { %p10656_p4 = scmp.lt.s32.totalorder %s10654_s10, %s10647_s14 }
  0x62   : > { %p10650_p7 = pnand %p10648_p5, %p11010_p8 }
  0x63   : > { %p10657_p11 = por %p10656_p4, %p10655_p10 }
  0x64   : > { %p10651_p9 = pneg %p10650_p7 }
  0x66   : > { %p10658_p12 = pnand %p10657_p11, %p10651_p9 }
  0x68   : > { %10661 = shalt.err (!%p10658_p12)
}
  0x69   : > { %10443 = dma.hbm_to_vmem [thread:$0]  (!%p10994_p6), %s13729_s5, 16, %s10998_s16, [#allocation14]  }
  0x6a   : > { %s13730_s4 = sld [smem:[#allocation42_spill]] }
  0x70   : > { %s10662_s21 = scalar_lea.hbm %s13730_s4, 288 }
  0x71   : > { %p10663_p13 = scmp.ne.s32.totalorder %s13730_s4, %s10662_s21  ;;  %p10669_p5 = scmp.lt.u32.totalorder %s10662_s21, %s13730_s4 }
  0x73   : > { %p10665_p0 = pnand %p10663_p13, %p11010_p8 }
  0x75   : > { %p10666_p2 = pneg %p10665_p0 }
  0x77   : > { %p10671_p7 = pnand %p10669_p5, %p10666_p2 }
  0x79   : > { %10674 = shalt.err (!%p10671_p7)
}
  0x7a   : > { %s10675_s9 = scalar_lea.vmem %s274_s19, 288  ;;  %p10683_p11 = scmp.lt.s32.totalorder %s274_s19, %s274_s19 }
  0x7b   : > { %p10676_p9 = scmp.ne.s32.totalorder %s274_s19, %s10675_s9  ;;  %p10684_p12 = scmp.lt.s32.totalorder %s10675_s9, %s10675_s9 }
  0x7d   : > { %p10678_p10 = pnand %p10676_p9, %p11010_p8  ;;  %p10685_p1 = por %p10684_p12, %p10683_p11 }
  0x7f   : > { %p10679_p4 = pneg %p10678_p10 }
  0x81   : > { %p10686_p3 = pnand %p10685_p1, %p10679_p4 }
  0x83   : > { %10689 = shalt.err (!%p10686_p3)
}
  0x84   : > { %s10898_s16 = smov 32   ;;  %s10899_s14 = smov 2  }
  0x85   : > { %10440 = dma.hbm_to_vmem [thread:$0]  (!%p10994_p6), %s13730_s4, 288, %s274_s19, [#allocation11], %s10898_s16, %s10898_s16, %s10899_s14  }
  0x86   : > { %s10900_s15 = smov [#allocation15]   ;;  %s13731_s6 = sld [smem:[#allocation44_spill]] }
  0x87   : > { %s297_s18 = sshll.u32 %s10900_s15, 4  ;;  %s298_s18 = int_to_ptr.vmem [resolvable:$true] %s297_s18 }
  0x8c   : > { %s10690_s22 = scalar_lea.hbm %s13731_s6, 576 }
  0x8d   : > { %p10691_p1 = scmp.ne.s32.totalorder %s13731_s6, %s10690_s22  ;;  %p10697_p0 = scmp.lt.u32.totalorder %s10690_s22, %s13731_s6 }
  0x8f   : > { %p10693_p3 = pnand %p10691_p1, %p11010_p8 }
  0x91   : > { %p10694_p13 = pneg %p10693_p3 }
  0x93   : > { %p10699_p2 = pnand %p10697_p0, %p10694_p13 }
  0x95   : > { %10702 = shalt.err (!%p10699_p2)
}
  0x96   : > { %s10703_s19 = scalar_lea.vmem %s298_s18, 576  ;;  %p10711_p10 = scmp.lt.s32.totalorder %s298_s18, %s298_s18 }
  0x97   : > { %p10704_p5 = scmp.ne.s32.totalorder %s298_s18, %s10703_s19  ;;  %p10712_p4 = scmp.lt.s32.totalorder %s10703_s19, %s10703_s19 }
  0x99   : > { %p10706_p7 = pnand %p10704_p5, %p11010_p8  ;;  %p10713_p11 = por %p10712_p4, %p10711_p10 }
  0x9b   : > { %p10707_p9 = pneg %p10706_p7 }
  0x9d   : > { %p10714_p12 = pnand %p10713_p11, %p10707_p9 }
  0x9f   : > { %10717 = shalt.err (!%p10714_p12)
}
  0xa0   : > { %s13688_s16 = smov 64   ;;  %s13690_s14 = smov 4  }
  0xa1   : > { %10446 = dma.hbm_to_vmem [thread:$0]  (!%p10994_p6), %s13731_s6, 576, %s298_s18, [#allocation14], %s13688_s16, %s13688_s16, %s13690_s14  }
  0xa2   : > { %s10903_s15 = smov [#allocation16]   ;;  %s10718_s23 = scalar_lea.hbm %s13684_s7, 16 }
  0xa3   : > { %s311_s20 = sshll.u32 %s10903_s15, 4  ;;  %p10719_p1 = scmp.ne.s32.totalorder %s13684_s7, %s10718_s23  ;;  %s312_s20 = int_to_ptr.vmem [resolvable:$true] %s311_s20 }
  0xa4   : > { %p10725_p0 = scmp.lt.u32.totalorder %s10718_s23, %s13684_s7 }
  0xa5   : > { %p10721_p3 = pnand %p10719_p1, %p11010_p8 }
  0xa7   : > { %p10722_p13 = pneg %p10721_p3 }
  0xa9   : > { %p10727_p2 = pnand %p10725_p0, %p10722_p13 }
  0xab   : > { %10730 = shalt.err (!%p10727_p2)
}
  0xac   : > { %s10731_s18 = scalar_lea.vmem %s312_s20, 16  ;;  %s10738_s10 = scalar_lea.vmem %s312_s20, 32 }
  0xad   : > { %p10732_p5 = scmp.ne.s32.totalorder %s312_s20, %s10731_s18  ;;  %p10739_p10 = scmp.lt.s32.totalorder %s312_s20, %s312_s20 }
  0xae   : > { %p10740_p4 = scmp.lt.s32.totalorder %s10738_s10, %s10731_s18 }
  0xaf   : > { %p10734_p7 = pnand %p10732_p5, %p11010_p8 }
  0xb0   : > { %p10741_p11 = por %p10740_p4, %p10739_p10 }
  0xb1   : > { %p10735_p9 = pneg %p10734_p7 }
  0xb3   : > { %p10742_p12 = pnand %p10741_p11, %p10735_p9 }
  0xb5   : > { %10745 = shalt.err (!%p10742_p12)
}
  0xb6   : > { %10449 = dma.hbm_to_vmem [thread:$0]  (!%p10994_p6), %s13684_s7, 16, %s312_s20, [#allocation17]  }
  0xb7   : > { %s8219_s25 = sadd.s32 4294967294, %s10892_s30   ;;  %s11139_s17 = sadd.s32 1, %s10892_s30  }
  0xb8   : > { %s34_s21 = ssub.s32 %s10892_s30, %s11139_s17  ;;  %s37_s22 = sadd.s32 1, %s10888_s29 }
  0xb9   : > { %p35_p8 = scmp.eq.s32.totalorder %s34_s21, 0  ;;  %p44_p1 = scmp.ne.s32.totalorder %s10888_s29, %s10884_s28 }
  0xba   : > { %p45_p3 = scmp.eq.s32.totalorder %s10892_s30, 0  ;;  %p50_p13 = scmp.ne.s32.totalorder %s10884_s28, %s10880_s27 }
  0xbb   : > { %s11150_s23 = scalar_select %p35_p8, %s10888_s29, %s37_s22  }
  0xbc   : > { %p46_p0 = por %p45_p3, %p44_p1  ;;  %p13732_p2 = scmp.eq.s32.totalorder %s10976_s11, 0 }
  0xbd   : > { %p226_p6 = scmp.eq.s32.totalorder %s10976_s11, 1  ;;  %p232_p7 = scmp.eq.s32.totalorder %s8219_s25, 1 }
  0xbe   : > { %p11154_p5 = por %p13732_p2, %p50_p13  ;;  %p10467_p9 = scmp.lt.s32.totalorder %s10892_s30, 2 }
  0xbf   : > { %s11161_s20 = sand.u32 1, %s10888_s29   ;;  %p11163_p10 = por %p226_p6, %p44_p1 }
  0xc0   : > { %p11167_p4 = por %p232_p7, %p50_p13  ;;  %s10398_s19 = smul.u32 216, %s11161_s20 }
  0xc1   : > { %s13734_s26 = scalar_select %p11163_p10, 1, 0 }
  0xc2   : > { %s13735_s9 = scalar_select %p11167_p4, 1, 0 }
  0xc3   : > { %s10399_s18 = smul.u32 3456, %s10892_s30  ;;  %p11173_p11 = pnand %p10467_p9, %p46_p0 }
  0xc4   : > { %s13737_s0 = sld [smem:[#allocation39_spill]]  ;;  %s326_s22 = scalar_lea.vmem [#allocation4], %s10398_s19 }
  0xc5   : > { %s333_s16 = sshll.u32 %s326_s22, 4  ;;  %s323_s14 = scalar_lea.sflag [#allocation5], %s11161_s20  ;;  %s11183_s16 = int_to_ptr.vmem [resolvable:$true] %s333_s16 }
  0xc6   : > { %p10748_p8 = pneg %p11173_p11 }
  0xca   : > { %s11181_s21 = scalar_lea.hbm %s13737_s0, %s10399_s18  ;;  %s10751_s25 = scalar_lea.hbm %s13737_s0, 6912 }
  0xcb   : > { %s10746_s2 = scalar_lea.hbm %s11181_s21, 3456  ;;  %p10752_p13 = scmp.lt.u32.totalorder %s11181_s21, %s13737_s0 }
  0xcc   : > { %p10747_p12 = scmp.ne.s32.totalorder %s11181_s21, %s10746_s2  ;;  %p10753_p0 = scmp.lt.u32.totalorder %s10751_s25, %s10746_s2 }
  0xcd   : > { %p10755_p6 = scmp.lt.u32.totalorder %s10746_s2, %s11181_s21 }
  0xce   : > { %p10749_p1 = pnand %p10748_p8, %p10747_p12  ;;  %p10754_p2 = por %p10753_p0, %p10752_p13 }
  0xd0   : > { %p10750_p3 = pneg %p10749_p1  ;;  %p10756_p7 = por %p10755_p6, %p10754_p2 }
  0xd2   : > { %p10757_p9 = pnand %p10756_p7, %p10750_p3 }
  0xd4   : > { %10760 = shalt.err (!%p10757_p9)
}
  0xd5   : > { %s10761_s19 = scalar_lea.vmem %s11183_s16, 3456  ;;  %s10904_s22 = smov [#allocation4]  }
  0xd6   : > { %p10762_p12 = scmp.ne.s32.totalorder %s11183_s16, %s10761_s19  ;;  %s10766_s15 = sshll.u32 %s10904_s22, 4  ;;  %s10767_s15 = int_to_ptr.vmem [resolvable:$false] %s10766_s15 }
  0xd7   : > { %s10768_s3 = scalar_lea.vmem %s10767_s15, 6912  ;;  %p10769_p10 = scmp.lt.s32.totalorder %s11183_s16, %s10767_s15 }
  0xd8   : > { %p10764_p1 = pnand %p10762_p12, %p10748_p8  ;;  %p10770_p13 = scmp.lt.s32.totalorder %s10768_s3, %s10761_s19 }
  0xda   : > { %p10765_p4 = pneg %p10764_p1  ;;  %p10771_p0 = por %p10770_p13, %p10769_p10 }
  0xdc   : > { %p10772_p2 = pnand %p10771_p0, %p10765_p4 }
  0xde   : > { %10775 = shalt.err (!%p10772_p2)
}
  0xdf   : > { %s13738_s2 = smov 4   ;;  %s13739_s13 = smov 64  }
  0xe0   : > { %10453 = dma.hbm_to_vmem [thread:$0]  (!%p11173_p11), %s11181_s21, 3456, %s11183_s16, %s323_s14, %s13739_s13, %s13739_s13, %s13738_s2  }
  0xe1   : > { %s8229_s18 = sshll.u32 %s11161_s20, 5  ;;  %s8929_s25 = sshll.u32 %s10892_s30, 9 }
  0xe2   : > { %s11221_s15 = scalar_lea.hbm %s13678_s1, %s8929_s25  ;;  %s347_s3 = scalar_lea.vmem [#allocation7], %s8229_s18 }
  0xe3   : > { %s354_s0 = sshll.u32 %s347_s3, 4  ;;  %s13740_s4 = sand.u32 1, %s10892_s30   ;;  %s11223_s0 = int_to_ptr.vmem [resolvable:$true] %s354_s0 }
  0xe4   : > { %s11227_s5 = scalar_lea.sflag [#allocation8], %s13740_s4  ;;  %s10776_s6 = scalar_lea.hbm %s11221_s15, 512 }
  0xe5   : > { %p10777_p10 = scmp.ne.s32.totalorder %s11221_s15, %s10776_s6  ;;  %s10781_s20 = scalar_lea.hbm %s13678_s1, 1024 }
  0xe6   : > { %p10782_p6 = scmp.lt.u32.totalorder %s11221_s15, %s13678_s1  ;;  %p10783_p7 = scmp.lt.u32.totalorder %s10781_s20, %s10776_s6 }
  0xe7   : > { %p10779_p4 = pnand %p10777_p10, %p10748_p8  ;;  %p10785_p12 = scmp.lt.u32.totalorder %s10776_s6, %s11221_s15 }
  0xe8   : > { %p10784_p9 = por %p10783_p7, %p10782_p6 }
  0xe9   : > { %p10780_p3 = pneg %p10779_p4 }
  0xea   : > { %p10786_p1 = por %p10785_p12, %p10784_p9 }
  0xec   : > { %p10787_p13 = pnand %p10786_p1, %p10780_p3 }
  0xee   : > { %10790 = shalt.err (!%p10787_p13)
}
  0xef   : > { %s10791_s4 = scalar_lea.vmem %s11223_s0, 512  ;;  %s10905_s18 = smov [#allocation7]  }
  0xf0   : > { %p10792_p0 = scmp.ne.s32.totalorder %s11223_s0, %s10791_s4  ;;  %s10796_s19 = sshll.u32 %s10905_s18, 4  ;;  %s10797_s19 = int_to_ptr.vmem [resolvable:$false] %s10796_s19 }
  0xf1   : > { %s10798_s22 = scalar_lea.vmem %s10797_s19, 1024  ;;  %p10799_p4 = scmp.lt.s32.totalorder %s11223_s0, %s10797_s19 }
  0xf2   : > { %p10794_p2 = pnand %p10792_p0, %p10748_p8  ;;  %p10800_p6 = scmp.lt.s32.totalorder %s10798_s22, %s10791_s4 }
  0xf4   : > { %p10795_p10 = pneg %p10794_p2  ;;  %p10801_p7 = por %p10800_p6, %p10799_p4 }
  0xf6   : > { %p10802_p9 = pnand %p10801_p7, %p10795_p10 }
  0xf8   : > { %10805 = shalt.err (!%p10802_p9)
}
  0xf9   : > { %10456 = dma.hbm_to_vmem [thread:$0]  (!%p11173_p11), %s11221_s15, 512, %s11223_s0, %s11227_s5, %s13739_s13, %s13739_s13, %s13738_s2  }
  0xfa   : > { %p13741_p8 = scmp.ne.s32.totalorder %s13724_s12, 0 }
  0xfc   : > { %366 = sbr.rel (%p13741_p8) target bundleno = 1861 (0x745), region = 52 }
 0x103   : > { %s11259_s6 = sand.u32 1, %s10884_s28  }
 0x104   : > { %s10400_s3 = smul.u32 216, %s11259_s6  ;;  %s369_s16 = scalar_lea.sflag [#allocation5], %s11259_s6 }
 0x106   : > { %s11263_s14 = scalar_lea.vmem [#allocation4], %s10400_s3 }
 0x107   : > { %10851 = dma.done.wait (%p11154_p5), %s369_s16, 3456  }
 0x108   : > { %10853 = vsyncadd (%p11154_p5), %s369_s16, 4294963840  ;;  %s377_s0 = sand.u32 1, %s10976_s11   ;;  %s8233_s5 = sshll.u32 %s11259_s6, 5 }
 0x109   : > { %s378_s12 = scalar_lea.sflag [#allocation8], %s377_s0  ;;  %s11271_s10 = scalar_lea.vmem [#allocation7], %s8233_s5 }
 0x10a   : > { %10855 = dma.done.wait (%p11154_p5), %s378_s12, 512  }
 0x10b   : > { %10857 = vsyncadd (%p11154_p5), %s378_s12, 4294966784  ;;  %p13742_p11 = scmp.eq.s32.totalorder %s10976_s11, 0 }
 0x10d   : > { %10859 = dma.done.wait (%p13742_p11), [#allocation8], 32   ;;  %p13743_p3 = pmov %p13742_p11 }
 0x10f   : > { %10861 = vsyncadd (%p13743_p3), [#allocation8], 4294967264  ;;  %p13744_p12 = pmov %p13743_p3 }
 0x110   : > { %p13745_p1 = pmov %p13743_p3 }
 0x111   : > { %10863 = dma.done.wait (%p13744_p12), [#allocation11], 304  }
 0x112   : > { %10865 = vsyncadd (%p13745_p1), [#allocation11], 4294966992  ;;  %p13746_p13 = pmov %p13745_p1 }
 0x113   : > { %p13747_p0 = pmov %p13745_p1 }
 0x114   : > { %10867 = dma.done.wait (%p13746_p13), [#allocation14], 592  }
 0x115   : > { %10869 = vsyncadd (%p13747_p0), [#allocation14], 4294966704  ;;  %p13748_p5 = pmov %p13747_p0 }
 0x116   : > { %p13749_p2 = pmov %p13747_p0 }
 0x117   : > { %10871 = dma.done.wait (%p13748_p5), [#allocation17], 16  }
 0x118   : > { %10873 = vsyncadd (%p13749_p2), [#allocation17], 4294967280  ;;  %vm493_vm0 = vcmask 1041408   ;;  %vm480_vm1 = vcmask 31744   ;;  %vm611_vm2 = vsmask.f32 3328 }
 0x119   : > { %vm612_vm3 = vsmask.f32 7440  ;;  %v452_v0 = vld [vmem:[#allocation9] sm:$0x3]  ;;  %v10520_v2 = vld [vmem:[%s11271_s10 + $0x10] sm:$0xff]   ;;  %v10521_v3 = vld [vmem:[%s11271_s10 + $0x18] sm:$0xff]  }
 0x11a   : > { %10379 = vmatprep.subr.msk.bf16.mxu1 %vm493_vm0, %v452_v0  ;;  %v495_v1 = vsel %vm493_vm0, %v452_v0, 0  ;;  %10378 = vmatprep.subr.msk.bf16.mxu0 %vm493_vm0, %v452_v0  ;;  %v999_v4 = vld [vmem:[#allocation12 + $0x2] sm:$0x3]  ;;  %v11299_v5 = vld [vmem:[%s11263_s14] sm:$0xf]  ;;  %vm11333_vm4 = vmor %vm611_vm2, %vm612_vm3  ;;  %vm1600_vm5 = vcmask 1042432  }
 0x11b   : > { %9865 = vmatpush3.bf16.msra.mxu1 %v495_v1  ;;  %9243 = vmatpush3.bf16.msra.mxu0 %v495_v1  ;;  %v1097_v6 = vsel %vm493_vm0, %v999_v4, 0  ;;  %v11305_v7 = vld [vmem:[%s11263_s14 + $0x4] sm:$0xf]  ;;  %v595_v8 = vld [vmem:[%s11263_s14 + $0x8] sm:$0x1]  ;;  %v615_v9 = vshrl.u32 %v11299_v5, 16 }
 0x11c   : > { %9248 = vmatprep.mubr.msk.bf16.mxu1 %vm480_vm1, %v10520_v2  ;;  %10380 = vmatprep.subr.msk.bf16.mxu1 %vm493_vm0, %v999_v4  ;;  %v618_v10 = vshll.u32 %v11299_v5, 16  ;;  %v624_v11 = vshll.u32 %v11305_v7, 16  ;;  %v628_v12 = vshrl.u32 %v11305_v7, 16  ;;  %v634_v13 = vshll.u32 %v595_v8, 16  ;;  %v11313_v14 = vld [vmem:[%s11263_s14 + $0xc] sm:$0xf] }
 0x11d   : > { %v617_v15 = vrot.slane %v615_v9, 4  ;;  %v11317_v16 = vld [vmem:[%s11263_s14 + $0x10] sm:$0xf]  ;;  %v596_v17 = vld [vmem:[%s11263_s14 + $0x14] sm:$0x1]  ;;  %v639_v18 = vshrl.u32 %v11313_v14, 16 }
 0x11e   : > { %9249 = vmatmul.mubr.msk.bf16.vlgmr.msra.gmra.mrb[0].mxu1 %vm480_vm1, %v10521_v3  ;;  %v620_v19 = vrot.slane %v618_v10, 5  ;;  %v626_v20 = vrot.slane %v624_v11, 5  ;;  %v630_v21 = vrot.slane %v628_v12, 4  ;;  %v594_v22 = vld [vmem:[#allocation12] sm:$0x3]  ;;  %v642_v24 = vshll.u32 %v11313_v14, 16 }
 0x11f   : > { %9253 = vmatpush3.bf16.msra.mxu1 %v1097_v6  ;;  %v641_v23 = vrot.slane %v639_v18, 4  ;;  %v648_v25 = vshll.u32 %v11317_v16, 16  ;;  %v652_v26 = vshrl.u32 %v11317_v16, 16  ;;  %v11326_v27 = vld [vmem:[%s11263_s14 + $0x18] sm:$0xf]  ;;  %v636_v30 = vrot.slane %v634_v13, 5 }
 0x120   : > { %10381 = vmatprep.subr.msk.bf16.mxu1 %vm493_vm0, %v594_v22  ;;  %v621_v28 = vor.u32 %v620_v19, %v617_v15  ;;  %v631_v29 = vor.u32 %v630_v21, %v626_v20  ;;  %v658_v31 = vshll.u32 %v596_v17, 16  ;;  %v11329_v32 = vld [vmem:[%s11263_s14 + $0x1c] sm:$0xf]  ;;  %v644_v34 = vrot.slane %v642_v24, 5  ;;  %v597_v44 = vld [vmem:[%s11263_s14 + $0x20] sm:$0x1] }
 0x121   : > { %v650_v35 = vrot.slane %v648_v25, 5  ;;  %v654_v36 = vrot.slane %v652_v26, 4  ;;  %v1389_v37 = vsel %vm493_vm0, %v594_v22, 0  ;;  %v663_v41 = vshrl.u32 %v11326_v27, 16  ;;  %v11343_v47 = vld [vmem:[%s11263_s14 + $0x24] sm:$0xf] }
 0x122   : > { %v622_v38 = vrot.slane %v621_v28, 4  ;;  %v632_v39 = vrot.slane %v631_v29, 4  ;;  %v660_v40 = vrot.slane %v658_v31, 5  ;;  %v645_v42 = vor.u32 %v644_v34, %v641_v23  ;;  %v11351_v59 = vld [vmem:[%s11263_s14 + $0x28] sm:$0xf]  ;;  %s8240_s24 = sshll.u32 %s11259_s6, 6 }
 0x123   : > { %v655_v43 = vor.u32 %v654_v36, %v650_v35  ;;  %v666_v45 = vshll.u32 %v11326_v27, 16  ;;  %v672_v46 = vshll.u32 %v11329_v32, 16  ;;  %v665_v50 = vrot.slane %v663_v41, 4  ;;  %v11360_v0 = vld [vmem:[%s11263_s14 + $0x2c] sm:$0x1]  ;;  %s13567_s2 = scalar_lea.vmem [#allocation18], %s8240_s24 }
 0x124   : > { %v627_v48 = vsel %vm11333_vm4, %v622_v38, %v626_v20  ;;  %v637_v49 = vsel %vm11333_vm4, %v632_v39, %v636_v30  ;;  %v676_v51 = vshrl.u32 %v11329_v32, 16  ;;  %v646_v53 = vrot.slane %v645_v42, 4  ;;  %v11364_v2 = vld [vmem:[%s11263_s14 + $0x30] sm:$0xf]  ;;  %v11371_v17 = vld [vmem:[%s11263_s14 + $0x34] sm:$0xf] }
 0x125   : > { %v8250_v52 = vcombine.low %v627_v48, %v637_v49  ;;  %v656_v54 = vrot.slane %v655_v43, 4  ;;  %v668_v55 = vrot.slane %v666_v45, 5  ;;  %v674_v56 = vrot.slane %v672_v46, 5  ;;  %v11378_v24 = vld [vmem:[%s11263_s14 + $0x38] sm:$0x1]  ;;  %s8930_s13 = sshll.u32 %s10976_s11, 10 }
 0x126   : > { %v678_v57 = vrot.slane %v676_v51, 4  ;;  %v682_v58 = vshll.u32 %v597_v44, 16  ;;  %v687_v60 = vshrl.u32 %v11343_v47, 16  ;;  %v651_v61 = vsel %vm11333_vm4, %v646_v53, %v650_v35  ;;  %v11381_v25 = vld [vmem:[%s11263_s14 + $0x3c] sm:$0xf]  ;;  %s8066_s15 = sshll.u32 %s13567_s2, 4  ;;  %s13629_s25 = scalar_lea.hbm %s13685_s8, %s8930_s13  ;;  %s13631_s15 = int_to_ptr.vmem [resolvable:$true] %s8066_s15 }
 0x127   : > { %9254 = vmatprep.mubr.msk.bf16.mxu1 %vm480_vm1, %v8250_v52  ;;  %v661_v62 = vsel %vm11333_vm4, %v656_v54, %v660_v40  ;;  %v669_v63 = vor.u32 %v668_v55, %v665_v50  ;;  %v690_v1 = vshll.u32 %v11343_v47, 16  ;;  %v696_v11 = vshll.u32 %v11351_v59, 16  ;;  %v11389_v40 = vld [vmem:[%s11263_s14 + $0x40] sm:$0xf]  ;;  %v11396_v45 = vld [vmem:[%s11263_s14 + $0x44] sm:$0x1] }
 0x128   : > { %v8251_v3 = vcombine.low %v651_v61, %v661_v62  ;;  %v679_v4 = vor.u32 %v678_v57, %v674_v56  ;;  %v684_v6 = vrot.slane %v682_v58, 5  ;;  %v689_v8 = vrot.slane %v687_v60, 4  ;;  %v11400_v52 = vld [vmem:[%s11263_s14 + $0x48] sm:$0xf]  ;;  %v11407_v57 = vld [vmem:[%s11263_s14 + $0x4c] sm:$0xf] }
 0x129   : > { %v670_v9 = vrot.slane %v669_v63, 4  ;;  %v692_v10 = vrot.slane %v690_v1, 5  ;;  %v700_v12 = vshrl.u32 %v11351_v59, 16  ;;  %v706_v15 = vshll.u32 %v11360_v0, 16  ;;  %s8053_s11 = scalar_lea.sflag [#allocation6], %s11259_s6  ;;  %s10806_s4 = scalar_lea.vmem %s13631_s15, 1024 }
 0x12a   : > { %9255 = vmatmul.mubr.msk.bf16.vlgmr.msra.gmra.mrb[4].mxu1 %vm480_vm1, %v8251_v3  ;;  %v680_v13 = vrot.slane %v679_v4, 4  ;;  %v711_v18 = vshrl.u32 %v11364_v2, 16  ;;  %v714_v19 = vshll.u32 %v11364_v2, 16  ;;  %v698_v22 = vrot.slane %v696_v11, 5  ;;  %v11413_v4 = vld [vmem:[%s11263_s14 + $0x50] sm:$0x1]  ;;  %p10807_p10 = scmp.ne.s32.totalorder %s13631_s15, %s10806_s4 }
 0x12b   : > { %9287 = vmatpush3.bf16.msra.mxu1 %v1389_v37  ;;  %v675_v20 = vsel %vm11333_vm4, %v670_v9, %v674_v56  ;;  %v693_v21 = vor.u32 %v692_v10, %v689_v8  ;;  %v702_v23 = vrot.slane %v700_v12, 4  ;;  %v708_v28 = vrot.slane %v706_v15, 5  ;;  %p13841_p4 = scmp.ne.s32.totalorder %s13734_s26, 0  ;;  %s10907_s18 = smov [#allocation18]  }
 0x12c   : > { %v685_v26 = vsel %vm11333_vm4, %v680_v13, %v684_v6  ;;  %v713_v29 = vrot.slane %v711_v18, 4  ;;  %v716_v30 = vrot.slane %v714_v19, 5  ;;  %v720_v36 = vshll.u32 %v11371_v17, 16  ;;  %v11421_v19 = vld [vmem:[%s11263_s14 + $0x54] sm:$0xf]  ;;  %s10810_s19 = sshll.u32 %s10907_s18, 4  ;;  %s10811_s19 = int_to_ptr.vmem [resolvable:$false] %s10810_s19 }
 0x12d   : > { %v8252_v31 = vcombine.low %v675_v20, %v685_v26  ;;  %v694_v34 = vrot.slane %v693_v21, 4  ;;  %v703_v35 = vor.u32 %v702_v23, %v698_v22  ;;  %v724_v38 = vshrl.u32 %v11371_v17, 16  ;;  %v11427_v26 = vld [vmem:[%s11263_s14 + $0x58] sm:$0xf]  ;;  %p10808_p6 = pnand %p10807_p10, %p13841_p4  ;;  %s10812_s22 = scalar_lea.vmem %s10811_s19, 2048 }
 0x12e   : > { %v717_v37 = vor.u32 %v716_v30, %v713_v29  ;;  %v730_v39 = vshll.u32 %v11378_v24, 16  ;;  %v735_v41 = vshrl.u32 %v11381_v25, 16  ;;  %v722_v44 = vrot.slane %v720_v36, 5  ;;  %v11432_v36 = vld [vmem:[%s11263_s14 + $0x5c] sm:$0x1]  ;;  %p10813_p9 = scmp.lt.s32.totalorder %s13631_s15, %s10811_s19  ;;  %p10814_p8 = scmp.lt.s32.totalorder %s10812_s22, %s10806_s4 }
 0x12f   : > { %9258 = vmatprep.mubr.msk.bf16.mxu1 %vm480_vm1, %v8252_v31  ;;  %v699_v42 = vsel %vm11333_vm4, %v694_v34, %v698_v22  ;;  %v704_v43 = vrot.slane %v703_v35, 4  ;;  %v738_v46 = vshll.u32 %v11381_v25, 16  ;;  %v726_v49 = vrot.slane %v724_v38, 4  ;;  %p10809_p7 = pneg %p10808_p6 }
 0x130   : > { %v718_v48 = vrot.slane %v717_v37, 4  ;;  %v732_v50 = vrot.slane %v730_v39, 5  ;;  %v737_v51 = vrot.slane %v735_v41, 4  ;;  %v744_v55 = vshll.u32 %v11389_v40, 16  ;;  %p10815_p11 = por %p10814_p8, %p10813_p9 }
 0x131   : > { %v709_v53 = vsel %vm11333_vm4, %v704_v43, %v708_v28  ;;  %v740_v54 = vrot.slane %v738_v46, 5  ;;  %v748_v56 = vshrl.u32 %v11389_v40, 16  ;;  %v727_v61 = vor.u32 %v726_v49, %v722_v44 }
 0x132   : > { %v8253_v58 = vcombine.low %v699_v42, %v709_v53  ;;  %v723_v60 = vsel %vm11333_vm4, %v718_v48, %v722_v44  ;;  %v754_v62 = vshll.u32 %v11396_v45, 16  ;;  %v746_v1 = vrot.slane %v744_v55, 5  ;;  %v11442_v44 = vld [vmem:[%s11263_s14 + $0x60] sm:$0xf]  ;;  %p10816_p3 = pnand %p10815_p11, %p10809_p7 }
 0x133   : > { %v741_v63 = vor.u32 %v740_v54, %v737_v51  ;;  %v750_v3 = vrot.slane %v748_v56, 4  ;;  %v759_v6 = vshrl.u32 %v11400_v52, 16  ;;  %v728_v8 = vrot.slane %v727_v61, 4  ;;  %v11445_v51 = vld [vmem:[%s11263_s14 + $0x64] sm:$0xf] }
 0x134   : > { %9259 = vmatmul.mubr.msk.bf16.gmra.mrb[8].mxu1 %vm480_vm1, %v8253_v58  ;;  %v756_v9 = vrot.slane %v754_v62, 5  ;;  %v762_v10 = vshll.u32 %v11400_v52, 16  ;;  %v768_v11 = vshll.u32 %v11407_v57, 16  ;;  %v772_v18 = vshrl.u32 %v11407_v57, 16  ;;  %v11452_v61 = vld [vmem:[%s11263_s14 + $0x68] sm:$0x1] }
 0x135   : > { %v742_v12 = vrot.slane %v741_v63, 4  ;;  %v751_v13 = vor.u32 %v750_v3, %v746_v1  ;;  %v761_v15 = vrot.slane %v759_v6, 4  ;;  %v733_v20 = vsel %vm11333_vm4, %v728_v8, %v732_v50  ;;  %13752 = vst [vmem:[#allocation26_spill] sm:$0xff] %v11452_v61 }
 0x136   : > { %v764_v21 = vrot.slane %v762_v10, 5  ;;  %v770_v22 = vrot.slane %v768_v11, 5  ;;  %v778_v23 = vshll.u32 %v11413_v4, 16  ;;  %v8254_v28 = vcombine.low %v723_v60, %v733_v20  ;;  %v11462_v10 = vld [vmem:[#allocation12 + $0x4] sm:$0x3] }
 0x137   : > { %v747_v29 = vsel %vm11333_vm4, %v742_v12, %v746_v1  ;;  %v752_v30 = vrot.slane %v751_v13, 4  ;;  %v774_v31 = vrot.slane %v772_v18, 4  ;;  %v783_v37 = vshrl.u32 %v11421_v19, 16  ;;  %v11465_v18 = vld [vmem:[%s11263_s14 + $0x70] sm:$0xf]  ;;  %10382 = vmatprep.subr.msk.bf16.mxu1 %vm493_vm0, %v11462_v10 }
 0x138   : > { %v765_v34 = vor.u32 %v764_v21, %v761_v15  ;;  %v780_v35 = vrot.slane %v778_v23, 5  ;;  %v786_v38 = vshll.u32 %v11421_v19, 16  ;;  %9262 = vmatprep.mubr.msk.bf16.mxu1 %vm480_vm1, %v8254_v28  ;;  %v792_v42 = vshll.u32 %v11427_v26, 16 }
 0x139   : > { %v757_v39 = vsel %vm11333_vm4, %v752_v30, %v756_v9  ;;  %v775_v41 = vor.u32 %v774_v31, %v770_v22  ;;  %v796_v43 = vshrl.u32 %v11427_v26, 16  ;;  %v785_v49 = vrot.slane %v783_v37, 4  ;;  %v11460_v9 = vld [vmem:[%s11263_s14 + $0x6c] sm:$0xf]  ;;  %v11475_v30 = vld [vmem:[%s11263_s14 + $0x74] sm:$0x1] }
 0x13a   : > { %v8255_v46 = vcombine.low %v747_v29, %v757_v39  ;;  %v766_v48 = vrot.slane %v765_v34, 4  ;;  %v788_v50 = vrot.slane %v786_v38, 5  ;;  %v794_v54 = vrot.slane %v792_v42, 5  ;;  %13753 = vst [vmem:[#allocation27_spill] sm:$0xff] %v11475_v30 }
 0x13b   : > { %v776_v53 = vrot.slane %v775_v41, 4  ;;  %v798_v55 = vrot.slane %v796_v43, 4  ;;  %v802_v56 = vshll.u32 %v11432_v36, 16  ;;  %v807_v62 = vshrl.u32 %v11442_v44, 16  ;;  %v11483_v41 = vld [vmem:[%s11263_s14 + $0x78] sm:$0xf] }
 0x13c   : > { %9263 = vmatmul.mubr.msk.bf16.gmra.mrb[12].mxu1 %vm480_vm1, %v8255_v46  ;;  %v771_v58 = vsel %vm11333_vm4, %v766_v48, %v770_v22  ;;  %v789_v60 = vor.u32 %v788_v50, %v785_v49  ;;  %v810_v63 = vshll.u32 %v11442_v44, 16  ;;  %v816_v8 = vshll.u32 %v11445_v51, 16  ;;  %v11486_v49 = vld [vmem:[%s11263_s14 + $0x7c] sm:$0xf] }
 0x13d   : > { %v781_v1 = vsel %vm11333_vm4, %v776_v53, %v780_v35  ;;  %v799_v3 = vor.u32 %v798_v55, %v794_v54  ;;  %v804_v6 = vrot.slane %v802_v56, 5  ;;  %v809_v13 = vrot.slane %v807_v62, 4 }
 0x13e   : > { %v8256_v11 = vcombine.low %v771_v58, %v781_v1  ;;  %v790_v12 = vrot.slane %v789_v60, 4  ;;  %v812_v15 = vrot.slane %v810_v63, 5  ;;  %v818_v21 = vrot.slane %v816_v8, 5  ;;  %v11494_v60 = vld [vmem:[%s11263_s14 + $0x80] sm:$0x1] }
 0x13f   : > { %v800_v20 = vrot.slane %v799_v3, 4  ;;  %v820_v22 = vshrl.u32 %v11445_v51, 16  ;;  %v826_v23 = vshll.u32 %v11452_v61, 16  ;;  %v831_v31 = vshrl.u32 %v11460_v9, 16  ;;  %13754 = vst [vmem:[#allocation28_spill] sm:$0xff] %v11494_v60 }
 0x140   : > { %9266 = vmatprep.mubr.msk.bf16.mxu1 %vm480_vm1, %v8256_v11  ;;  %v795_v28 = vsel %vm11333_vm4, %v790_v12, %v794_v54  ;;  %v813_v29 = vor.u32 %v812_v15, %v809_v13  ;;  %v834_v34 = vshll.u32 %v11460_v9, 16  ;;  %v840_v39 = vshll.u32 %v11465_v18, 16  ;;  %v11499_v1 = vld [vmem:[%s11263_s14 + $0x84] sm:$0xf] }
 0x141   : > { %v805_v35 = vsel %vm11333_vm4, %v800_v20, %v804_v6  ;;  %v822_v37 = vrot.slane %v820_v22, 4  ;;  %v828_v38 = vrot.slane %v826_v23, 5  ;;  %v833_v46 = vrot.slane %v831_v31, 4  ;;  %v11510_v31 = vld [vmem:[%s11263_s14 + $0x8c] sm:$0x1] }
 0x142   : > { %v8257_v42 = vcombine.low %v795_v28, %v805_v35  ;;  %v814_v43 = vrot.slane %v813_v29, 4  ;;  %v836_v48 = vrot.slane %v834_v34, 5  ;;  %v842_v53 = vrot.slane %v840_v39, 5  ;;  %13755 = vst [vmem:[#allocation29_spill] sm:$0xff] %v11510_v31 }
 0x143   : > { %v823_v50 = vor.u32 %v822_v37, %v818_v21  ;;  %v844_v54 = vshrl.u32 %v11465_v18, 16  ;;  %v850_v55 = vshll.u32 %v11475_v30, 16  ;;  %v855_v62 = vshrl.u32 %v11483_v41, 16 }
 0x144   : > { %9267 = vmatmul.mubr.msk.bf16.gmra.mrb[16].mxu1 %vm480_vm1, %v8257_v42  ;;  %v819_v56 = vsel %vm11333_vm4, %v814_v43, %v818_v21  ;;  %v837_v58 = vor.u32 %v836_v48, %v833_v46  ;;  %v858_v63 = vshll.u32 %v11483_v41, 16  ;;  %v864_v11 = vshll.u32 %v11486_v49, 16  ;;  %v11504_v21 = vld [vmem:[%s11263_s14 + $0x88] sm:$0xf]  ;;  %v11515_v42 = vld [vmem:[%s11263_s14 + $0x90] sm:$0xf] }
 0x145   : > { %v824_v3 = vrot.slane %v823_v50, 4  ;;  %v846_v6 = vrot.slane %v844_v54, 4  ;;  %v852_v8 = vrot.slane %v850_v55, 5  ;;  %v857_v13 = vrot.slane %v855_v62, 4  ;;  %v11520_v50 = vld [vmem:[%s11263_s14 + $0x94] sm:$0xf] }
 0x146   : > { %v838_v12 = vrot.slane %v837_v58, 4  ;;  %v860_v15 = vrot.slane %v858_v63, 5  ;;  %v868_v20 = vshrl.u32 %v11486_v49, 16  ;;  %v866_v28 = vrot.slane %v864_v11, 5 }
 0x147   : > { %v829_v22 = vsel %vm11333_vm4, %v824_v3, %v828_v38  ;;  %v847_v23 = vor.u32 %v846_v6, %v842_v53  ;;  %v874_v29 = vshll.u32 %v11494_v60, 16  ;;  %v879_v48 = vshrl.u32 %v11499_v1, 16  ;;  %v11529_v6 = vld [vmem:[%s11263_s14 + $0x98] sm:$0x1] }
 0x148   : > { %v8258_v34 = vcombine.low %v819_v56, %v829_v22  ;;  %v843_v35 = vsel %vm11333_vm4, %v838_v12, %v842_v53  ;;  %v861_v37 = vor.u32 %v860_v15, %v857_v13  ;;  %v870_v39 = vrot.slane %v868_v20, 4  ;;  %13756 = vst [vmem:[#allocation30_spill] sm:$0xff] %v11529_v6 }
 0x149   : > { %v848_v43 = vrot.slane %v847_v23, 4  ;;  %v876_v46 = vrot.slane %v874_v29, 5  ;;  %v882_v38 = vshll.u32 %v11499_v1, 16  ;;  %v888_v56 = vshll.u32 %v11504_v21, 16 }
 0x14a   : > { %9270 = vmatprep.mubr.msk.bf16.mxu1 %vm480_vm1, %v8258_v34  ;;  %v862_v54 = vrot.slane %v861_v37, 4  ;;  %v871_v55 = vor.u32 %v870_v39, %v866_v28  ;;  %v892_v53 = vshrl.u32 %v11504_v21, 16  ;;  %v881_v62 = vrot.slane %v879_v48, 4  ;;  %v11541_v37 = vld [vmem:[%s11263_s14 + $0x9c] sm:$0xf] }
 0x14b   : > { %v853_v58 = vsel %vm11333_vm4, %v848_v43, %v852_v8  ;;  %v884_v63 = vrot.slane %v882_v38, 5  ;;  %v898_v3 = vshll.u32 %v11510_v31, 16  ;;  %v890_v15 = vrot.slane %v888_v56, 5  ;;  %v11566_v31 = vld [vmem:[%s11263_s14 + $0xb0] sm:$0x1] }
 0x14c   : > { %v8259_v11 = vcombine.low %v843_v35, %v853_v58  ;;  %v867_v12 = vsel %vm11333_vm4, %v862_v54, %v866_v28  ;;  %v872_v13 = vrot.slane %v871_v55, 4  ;;  %v894_v22 = vrot.slane %v892_v53, 4  ;;  %v11544_v54 = vld [vmem:[%s11263_s14 + $0xa0] sm:$0xf]  ;;  %v11548_v58 = vld [vmem:[%s11263_s14 + $0xa4] sm:$0x1] }
 0x14d   : > { %v885_v20 = vor.u32 %v884_v63, %v881_v62  ;;  %v900_v23 = vrot.slane %v898_v3, 5  ;;  %v903_v29 = vshrl.u32 %v11515_v42, 16  ;;  %v906_v34 = vshll.u32 %v11515_v42, 16  ;;  %13757 = vst [vmem:[#allocation31_spill] sm:$0xff] %v11548_v58  ;;  %v11551_v62 = vld [vmem:[%s11263_s14 + $0xa8] sm:$0xf] }
 0x14e   : > { %9271 = vmatmul.mubr.msk.bf16.gmra.mrb[20].mxu1 %vm480_vm1, %v8259_v11  ;;  %v877_v8 = vsel %vm11333_vm4, %v872_v13, %v876_v46  ;;  %v912_v35 = vshll.u32 %v11520_v50, 16  ;;  %v916_v28 = vshrl.u32 %v11520_v50, 16  ;;  %v895_v48 = vor.u32 %v894_v22, %v890_v15  ;;  %v11559_v13 = vld [vmem:[%s11263_s14 + $0xac] sm:$0xf]  ;;  %13758 = vst [vmem:[#allocation32_spill] sm:$0xff] %v11566_v31 }
 0x14f   : > { %v8260_v39 = vcombine.low %v867_v12, %v877_v8  ;;  %v886_v43 = vrot.slane %v885_v20, 4  ;;  %v905_v38 = vrot.slane %v903_v29, 4  ;;  %v908_v55 = vrot.slane %v906_v34, 5 }
 0x150   : > { %v914_v56 = vrot.slane %v912_v35, 5  ;;  %v918_v53 = vrot.slane %v916_v28, 4  ;;  %v922_v46 = vshll.u32 %v11529_v6, 16  ;;  %v896_v3 = vrot.slane %v895_v48, 4 }
 0x151   : > { %9274 = vmatprep.mubr.msk.bf16.mxu1 %vm480_vm1, %v8260_v39  ;;  %v891_v63 = vsel %vm11333_vm4, %v886_v43, %v890_v15  ;;  %v927_v11 = vshrl.u32 %v11541_v37, 16  ;;  %v930_v12 = vshll.u32 %v11541_v37, 16  ;;  %v909_v20 = vor.u32 %v908_v55, %v905_v38 }
 0x152   : > { %v919_v22 = vor.u32 %v918_v53, %v914_v56  ;;  %v924_v29 = vrot.slane %v922_v46, 5  ;;  %v936_v8 = vshll.u32 %v11544_v54, 16  ;;  %v901_v34 = vsel %vm11333_vm4, %v896_v3, %v900_v23 }
 0x153   : > { %v929_v35 = vrot.slane %v927_v11, 4  ;;  %v932_v28 = vrot.slane %v930_v12, 5  ;;  %v940_v15 = vshrl.u32 %v11544_v54, 16  ;;  %v8261_v39 = vcombine.low %v891_v63, %v901_v34  ;;  %v11578_v12 = vld [vmem:[%s11263_s14 + $0xb4] sm:$0xf] }
 0x154   : > { %v910_v43 = vrot.slane %v909_v20, 4  ;;  %v920_v48 = vrot.slane %v919_v22, 4  ;;  %v938_v6 = vrot.slane %v936_v8, 5  ;;  %v946_v53 = vshll.u32 %v11548_v58, 16 }
 0x155   : > { %v933_v38 = vor.u32 %v932_v28, %v929_v35  ;;  %v942_v55 = vrot.slane %v940_v15, 4  ;;  %v951_v46 = vshrl.u32 %v11551_v62, 16  ;;  %v954_v3 = vshll.u32 %v11551_v62, 16  ;;  %v11581_v35 = vld [vmem:[%s11263_s14 + $0xb8] sm:$0xf] }
 0x156   : > { %9275 = vmatmul.mubr.msk.bf16.gmra.mrb[24].mxu1 %vm480_vm1, %v8261_v39  ;;  %v915_v23 = vsel %vm11333_vm4, %v910_v43, %v914_v56  ;;  %v925_v63 = vsel %vm11333_vm4, %v920_v48, %v924_v29  ;;  %v960_v11 = vshll.u32 %v11559_v13, 16  ;;  %v948_v34 = vrot.slane %v946_v53, 5  ;;  %v11585_v43 = vld [vmem:[%s11263_s14 + $0xbc] sm:$0x1] }
 0x157   : > { %v8262_v20 = vcombine.low %v915_v23, %v925_v63  ;;  %v934_v22 = vrot.slane %v933_v38, 4  ;;  %v943_v8 = vor.u32 %v942_v55, %v938_v6  ;;  %v953_v28 = vrot.slane %v951_v46, 4 }
 0x158   : > { %v956_v15 = vrot.slane %v954_v3, 5  ;;  %v962_v39 = vrot.slane %v960_v11, 5  ;;  %v964_v56 = vshrl.u32 %v11559_v13, 16  ;;  %v970_v23 = vshll.u32 %v11566_v31, 16 }
 0x159   : > { %9278 = vmatprep.mubr.msk.bf16.mxu1 %vm480_vm1, %v8262_v20  ;;  %v939_v29 = vsel %vm11333_vm4, %v934_v22, %v938_v6  ;;  %v944_v48 = vrot.slane %v943_v8, 4  ;;  %v975_v38 = vshrl.u32 %v11578_v12, 16  ;;  %v978_v46 = vshll.u32 %v11578_v12, 16 }
 0x15a   : > { %v957_v55 = vor.u32 %v956_v15, %v953_v28  ;;  %v966_v53 = vrot.slane %v964_v56, 4  ;;  %v984_v63 = vshll.u32 %v11581_v35, 16  ;;  %v972_v11 = vrot.slane %v970_v23, 5 }
 0x15b   : > { %v949_v3 = vsel %vm11333_vm4, %v944_v48, %v948_v34  ;;  %v977_v58 = vrot.slane %v975_v38, 4  ;;  %v988_v20 = vshrl.u32 %v11581_v35, 16  ;;  %v980_v8 = vrot.slane %v978_v46, 5  ;;  %v1567_v46 = vld [vmem:[%s11263_s14 + $0xb4] sm:$0xe] }
 0x15c   : > { %v8263_v60 = vcombine.low %v939_v29, %v949_v3  ;;  %v958_v6 = vrot.slane %v957_v55, 4  ;;  %v967_v22 = vor.u32 %v966_v53, %v962_v39  ;;  %v986_v31 = vrot.slane %v984_v63, 5 }
 0x15d   : > { %v990_v30 = vrot.slane %v988_v20, 4  ;;  %v994_v28 = vshll.u32 %v11585_v43, 16  ;;  %v981_v61 = vor.u32 %v980_v8, %v977_v58  ;;  %v8282_v23 = vcombine.low %v11299_v5, %v11305_v7  ;;  %v11659_v8 = vld [vmem:[#allocation12 + $0x6] sm:$0x3] }
 0x15e   : > { %9279 = vmatmul.mubr.msk.bf16.gmra.mrb[28].mxu1 %vm480_vm1, %v8263_v60  ;;  %v963_v15 = vsel %vm11333_vm4, %v958_v6, %v962_v39  ;;  %v968_v56 = vrot.slane %v967_v22, 4  ;;  %v8285_v29 = vcombine.low %v11343_v47, %v11351_v59  ;;  %v8286_v60 = vcombine.low %v11364_v2, %v11371_v17 }
 0x15f   : > { %v991_v34 = vor.u32 %v990_v30, %v986_v31  ;;  %v996_v48 = vrot.slane %v994_v28, 5  ;;  %v982_v55 = vrot.slane %v981_v61, 4  ;;  %v8287_v39 = vcombine.low %v11381_v25, %v11389_v40  ;;  %v1555_v28 = vld [vmem:[%s11263_s14 + $0x24] sm:$0xe] }
 0x160   : > { %v973_v38 = vsel %vm11333_vm4, %v968_v56, %v972_v11  ;;  %v8288_v58 = vcombine.low %v11400_v52, %v11407_v57  ;;  %v8289_v5 = vcombine.low %v11421_v19, %v11427_v26  ;;  %vm1601_vm6 = vcmask 1046532   ;;  %v1564_v11 = vld [vmem:[%s11263_s14 + $0x90] sm:$0xe] }
 0x161   : > { %v8264_v53 = vcombine.low %v963_v15, %v973_v38  ;;  %v992_v30 = vrot.slane %v991_v34, 4  ;;  %v987_v7 = vsel %vm11333_vm4, %v982_v55, %v986_v31  ;;  %v1556_v15 = vld [vmem:[%s11263_s14 + $0x30] sm:$0xe]  ;;  %v8317_v56 = vrot.slane %v1555_v28, 9  ;;  %vm11642_vm7 = vmor %vm1600_vm5, %vm1601_vm6  ;;  %v1563_v31 = vld [vmem:[%s11263_s14 + $0x84] sm:$0xe] }
 0x162   : > { %v1626_v34 = vrot.slane %v11351_v59, 5  ;;  %v1629_v55 = vrot.slane %v11360_v0, 5  ;;  %v8284_v28 = vcombine.low %v11326_v27, %v11329_v32  ;;  %v8318_v0 = vrot.slane %v1556_v15, 9  ;;  %v10570_v38 = vld [vmem:[%s11271_s10] sm:$0xff]  }
 0x163   : > { %9282 = vmatprep.mubr.msk.bf16.mxu1 %vm480_vm1, %v8264_v53  ;;  %v997_v3 = vsel %vm11333_vm4, %v992_v30, %v996_v48  ;;  %v1557_v48 = vld [vmem:[%s11263_s14 + $0x3c] sm:$0xe]  ;;  %v1558_v53 = vld [vmem:[%s11263_s14 + $0x48] sm:$0xe]  ;;  %v8283_v30 = vcombine.low %v11313_v14, %v11317_v16  ;;  %v1633_v22 = vrot.slane %v11371_v17, 5  ;;  %v1636_v16 = vrot.slane %v11378_v24, 5  ;;  %9244 = vmatprep.mubr.msk.bf16.mxu0 %vm480_vm1, %v10570_v38 }
 0x164   : > { %v8265_v6 = vcombine.low %v987_v7, %v997_v3  ;;  %v1814_v7 = vsel %vm493_vm0, %v11462_v10, 0  ;;  %v1628_v3 = vrot.slane %v1626_v34, 4  ;;  %v8319_v10 = vrot.slane %v1557_v48, 9 }
 0x165   : > { %v11671_v27 = vsel %vm11642_vm7, %v8318_v0, %v1633_v22  ;;  %v1635_v32 = vrot.slane %v1633_v22, 4  ;;  %v1640_v15 = vrot.slane %v11389_v40, 5  ;;  %v1647_v24 = vrot.slane %v11407_v57, 5 }
 0x166   : > { %9283 = vmatmul.mubr.msk.bf16.gmra.mrb[32].mxu1 %vm480_vm1, %v8265_v6  ;;  %v1559_v6 = vld [vmem:[%s11263_s14 + $0x54] sm:$0xe]  ;;  %v11664_v14 = vsel %vm11642_vm7, %v1628_v3, %v1629_v55  ;;  %v8320_v55 = vrot.slane %v1558_v53, 9  ;;  %v1650_v48 = vrot.slane %v11413_v4, 5  ;;  %v1560_v3 = vld [vmem:[%s11263_s14 + $0x60] sm:$0xe]  ;;  %v13771_v19 = vcombine.low %v11499_v1, %v11504_v21 }
 0x167   : > { %9288 = vmatprep.mubr.msk.bf16.mxu1 %vm480_vm1, %v8282_v23  ;;  %v11654_v23 = vsel %vm11642_vm7, %v8317_v56, %v1626_v34  ;;  %v1643_v34 = vrot.slane %v11396_v45, 5  ;;  %v11682_v0 = vsel %vm11642_vm7, %v1635_v32, %v1636_v16  ;;  %v11686_v22 = vsel %vm11642_vm7, %v8319_v10, %v1640_v15  ;;  %v1561_v53 = vld [vmem:[%s11263_s14 + $0x6c] sm:$0xe]  ;;  %v1562_v10 = vld [vmem:[%s11263_s14 + $0x78] sm:$0xe] }
 0x168   : > { %v8321_v45 = vrot.slane %v1559_v6, 9  ;;  %v1654_v16 = vrot.slane %v11427_v26, 5  ;;  %v1657_v32 = vrot.slane %v11432_v36, 5  ;;  %v1661_v56 = vrot.slane %v11445_v51, 5 }
 0x169   : > { %v1689_v2 = vrot.slane %v11520_v50, 5  ;;  %v1713_v25 = vrot.slane %v11585_v43, 5  ;;  %v13772_v26 = vcombine.low %v11515_v42, %v11520_v50  ;;  %v13773_v1 = vcombine.low %v11541_v37, %v11544_v54  ;;  %v10574_v42 = vld [vmem:[%s11263_s14 + $0x10] sm:$0xf]  ;;  %v1554_v37 = vld [vmem:[%s11263_s14 + $0x18] sm:$0xe] }
 0x16a   : > { %v1656_v20 = vrot.slane %v1654_v16, 4  ;;  %v1612_v50 = vrot.slane %v10574_v42, 5  ;;  %vm5222_vm8 = vcmask 64512   ;;  %vm5225_vm9 = vcmask 58368  }
 0x16b   : > { %vm5458_vm10 = vcmask 1043456  }
 0x16e   : > { %9289 = vmatmul.mubr.msk.bf16.vlgmr.msra.gmra.mrb[4].mxu1 %vm480_vm1, %v8283_v30  ;;  %v1642_v30 = vrot.slane %v1640_v15, 4  ;;  %v8322_v15 = vrot.slane %v1560_v3, 9  ;;  %v1663_v3 = vrot.slane %v1661_v56, 4 }
 0x16f   : > { %9321 = vmatpush3.bf16.msra.mxu1 %v1814_v7  ;;  %9292 = vmatprep.mubr.msk.bf16.mxu1 %vm480_vm1, %v8284_v28  ;;  %v11695_v7 = vsel %vm11642_vm7, %v8320_v55, %v1647_v24  ;;  %v1649_v28 = vrot.slane %v1647_v24, 4  ;;  %v11713_v24 = vsel %vm11642_vm7, %v8321_v45, %v1654_v16  ;;  %v8323_v45 = vrot.slane %v1561_v53, 9  ;;  %v13762_v16 = vld [vmem:[#allocation27_spill] sm:$0xff] }
 0x170   : > { %10383 = vmatprep.subr.msk.bf16.mxu1 %vm493_vm0, %v11659_v8  ;;  %v11701_v6 = vsel %vm11642_vm7, %v1642_v30, %v1643_v34  ;;  %v11720_v36 = vsel %vm11642_vm7, %v8322_v15, %v1661_v56  ;;  %v13761_v30 = vld [vmem:[#allocation26_spill] sm:$0xff]  ;;  %v1671_v63 = vrot.slane %v13762_v16, 5  ;;  %v8324_v56 = vrot.slane %v1562_v10, 9  ;;  %v13763_v16 = vld [vmem:[#allocation28_spill] sm:$0xff]  ;;  %v13766_v34 = vld [vmem:[#allocation31_spill] sm:$0xff] }
 0x171   : > { %v11709_v55 = vsel %vm11642_vm7, %v1649_v28, %v1650_v48  ;;  %v1664_v4 = vrot.slane %v13761_v30, 5  ;;  %v11726_v48 = vsel %vm11642_vm7, %v1656_v20, %v1657_v32  ;;  %v1668_v28 = vrot.slane %v11465_v18, 5 }
 0x172   : > { %v1675_v30 = vrot.slane %v11486_v49, 5  ;;  %v1682_v10 = vrot.slane %v11504_v21, 5  ;;  %v8326_v20 = vrot.slane %v1564_v11, 9  ;;  %v13774_v21 = vcombine.low %v11551_v62, %v11559_v13 }
 0x173   : > { %v11734_v15 = vsel %vm11642_vm7, %v1663_v3, %v1664_v4  ;;  %v11745_v53 = vsel %vm11642_vm7, %v8323_v45, %v1668_v28  ;;  %v1670_v32 = vrot.slane %v1668_v28, 4  ;;  %v1678_v4 = vrot.slane %v13763_v16, 5  ;;  %v1565_v3 = vld [vmem:[%s11263_s14 + $0x9c] sm:$0xe]  ;;  %v13764_v28 = vld [vmem:[#allocation29_spill] sm:$0xff] }
 0x174   : > { %v11755_v47 = vsel %vm11642_vm7, %v8324_v56, %v1675_v30  ;;  %v1677_v59 = vrot.slane %v1675_v30, 4  ;;  %v1685_v16 = vrot.slane %v13764_v28, 5  ;;  %v1684_v56 = vrot.slane %v1682_v10, 4  ;;  %v13765_v28 = vld [vmem:[#allocation30_spill] sm:$0xff] }
 0x175   : > { %v11760_v45 = vsel %vm11642_vm7, %v1670_v32, %v1671_v63  ;;  %v1566_v63 = vld [vmem:[%s11263_s14 + $0xa8] sm:$0xe]  ;;  %v11779_v11 = vsel %vm11642_vm7, %v8326_v20, %v1689_v2  ;;  %v1691_v32 = vrot.slane %v1689_v2, 4  ;;  %v1692_v17 = vrot.slane %v13765_v28, 5 }
 0x176   : > { %9293 = vmatmul.mubr.msk.bf16.gmra.mrb[8].mxu1 %vm480_vm1, %v8285_v29  ;;  %v8325_v29 = vrot.slane %v1563_v31, 9  ;;  %v8328_v2 = vrot.slane %v1566_v63, 9  ;;  %v1703_v28 = vrot.slane %v11559_v13, 5  ;;  %v1614_v62 = vrot.slane %v1612_v50, 4 }
 0x177   : > { %9296 = vmatprep.mubr.msk.bf16.mxu1 %vm480_vm1, %v8286_v60  ;;  %v11768_v60 = vsel %vm11642_vm7, %v1677_v59, %v1678_v4  ;;  %v11784_v4 = vsel %vm11642_vm7, %v1684_v56, %v1685_v16  ;;  %v8327_v59 = vrot.slane %v1565_v3, 9  ;;  %v11793_v20 = vsel %vm11642_vm7, %v1691_v32, %v1692_v17 }
 0x178   : > { %v11772_v31 = vsel %vm11642_vm7, %v8325_v29, %v1682_v10  ;;  %v1696_v29 = vrot.slane %v11544_v54, 5  ;;  %v1699_v10 = vrot.slane %v13766_v34, 5  ;;  %v13767_v34 = vld [vmem:[#allocation32_spill] sm:$0xff]  ;;  %v11809_v17 = vsel %vm11642_vm7, %v8328_v2, %v1703_v28  ;;  %v10576_v54 = vld [vmem:[%s11263_s14 + $0x14] sm:$0x1] }
 0x179   : > { %v8341_v30 = vcombine.low %v11772_v31, %v11784_v4  ;;  %v1706_v61 = vrot.slane %v13767_v34, 5  ;;  %v1705_v63 = vrot.slane %v1703_v28, 4  ;;  %v8329_v32 = vrot.slane %v1567_v46, 9  ;;  %v11968_v31 = vld [vmem:[%s11263_s14 + $0x4c] sm:$0xf] }
 0x17a   : > { %v11800_v3 = vsel %vm11642_vm7, %v8327_v59, %v1696_v29  ;;  %v1698_v56 = vrot.slane %v1696_v29, 4  ;;  %v1710_v16 = vrot.slane %v11581_v35, 5  ;;  %v13769_v29 = vcombine.low %v11460_v9, %v11465_v18  ;;  %v1552_v9 = vld [vmem:[%s11263_s14] sm:$0xe] }
 0x17b   : > { %v8314_v18 = vrot.slane %v1552_v9, 9  ;;  %v8316_v13 = vrot.slane %v1554_v37, 9  ;;  %v13779_v9 = vcombine.low %v11695_v7, %v11709_v55  ;;  %v10538_v7 = vld [vmem:[%s11263_s14 + $0xc] sm:$0xff]   ;;  %v10540_v55 = vld [vmem:[%s11263_s14 + $0x24] sm:$0xff]   ;;  %v3195_v4 = vrot.slane %v11968_v31, 5 }
 0x17c   : > { %v11818_v59 = vsel %vm11642_vm7, %v1698_v56, %v1699_v10  ;;  %v11829_v52 = vsel %vm11642_vm7, %v8329_v32, %v1710_v16  ;;  %v1712_v57 = vrot.slane %v1710_v16, 4  ;;  %v13770_v10 = vcombine.low %v11483_v41, %v11486_v49  ;;  %v10573_v49 = vld [vmem:[%s11263_s14 + $0x8] sm:$0x1]  ;;  %v1553_v16 = vld [vmem:[%s11263_s14 + $0xc] sm:$0xe] }
 0x17d   : > { %v8343_v40 = vcombine.low %v11800_v3, %v11818_v59  ;;  %v10575_v56 = vld [vmem:[%s11263_s14 + $0x1c] sm:$0xf]  ;;  %v8315_v32 = vrot.slane %v1553_v16, 9  ;;  %v3197_v59 = vrot.slane %v3195_v4, 4  ;;  %v8426_v16 = vld [vmem:[%s11263_s14 + $0xc] sm:$0xf] }
 0x17e   : > { %9297 = vmatmul.mubr.msk.bf16.gmra.mrb[12].mxu1 %vm480_vm1, %v8287_v39  ;;  %v11825_v39 = vsel %vm11642_vm7, %v1705_v63, %v1706_v61  ;;  %v1714_v43 = vsel %vm11642_vm7, %v1712_v57, %v1713_v25  ;;  %v13768_v61 = vcombine.low %v11442_v44, %v11445_v51  ;;  %v10572_v44 = vld [vmem:[%s11263_s14 + $0x4] sm:$0xf]  ;;  %v1619_v34 = vrot.slane %v10575_v56, 5  ;;  %v12003_v56 = vld [vmem:[%s11263_s14 + $0x10] sm:$0xf] }
 0x17f   : > { %9300 = vmatprep.mubr.msk.bf16.mxu1 %vm480_vm1, %v8288_v58  ;;  %v8344_v58 = vcombine.low %v11809_v17, %v11825_v39  ;;  %v8345_v46 = vcombine.low %v11829_v52, %v1714_v43  ;;  %v1605_v51 = vrot.slane %v10572_v44, 5  ;;  %v1615_v17 = vrot.slane %v10576_v54, 5  ;;  %v10577_v39 = vld [vmem:[%s11263_s14 + $0x20] sm:$0x1]  ;;  %v10546_v37 = vld [vmem:[%s11263_s14 + $0x6c] sm:$0xff]  }
 0x180   : > { %v1621_v25 = vrot.slane %v1619_v34, 4  ;;  %v1622_v52 = vrot.slane %v10577_v39, 5  ;;  %v13775_v57 = vcombine.low %v11578_v12, %v11581_v35  ;;  %v1613_v43 = vsel %vm11642_vm7, %v8315_v32, %v1612_v50  ;;  %v2801_v35 = vld [vmem:[#allocation12 + $0x8] sm:$0x3]  ;;  %v8429_v54 = vld [vmem:[%s11263_s14 + $0x18] sm:$0xf] }
 0x181   : > { %v1607_v41 = vrot.slane %v1605_v51, 4  ;;  %v1606_v2 = vsel %vm11642_vm7, %v8314_v18, %v1605_v51  ;;  %v2173_v12 = vsel %vm493_vm0, %v11659_v8, 0  ;;  %v13776_v44 = vcombine.low %v11654_v23, %v11664_v14 }
 0x182   : > { %v13777_v51 = vcombine.low %v11671_v27, %v11682_v0  ;;  %v13778_v8 = vcombine.low %v11686_v22, %v11701_v6  ;;  %v13780_v23 = vcombine.low %v11713_v24, %v11726_v48  ;;  %v13781_v14 = vcombine.low %v11720_v36, %v11734_v15  ;;  %v10539_v6 = vld [vmem:[%s11263_s14 + $0x18] sm:$0xff]  }
 0x183   : > { %v13782_v27 = vcombine.low %v11745_v53, %v11760_v45  ;;  %v13783_v0 = vcombine.low %v11755_v47, %v11768_v60  ;;  %v13784_v22 = vcombine.low %v11779_v11, %v11793_v20  ;;  %v2899_v24 = vsel %vm493_vm0, %v2801_v35, 0  ;;  %v11950_v36 = vld [vmem:[#allocation12 + $0xa] sm:$0x3]  ;;  %v10541_v53 = vld [vmem:[%s11263_s14 + $0x30] sm:$0xff]   ;;  %v8511_v11 = vld [vmem:[%s11263_s14 + $0x48] sm:$0xe] }
 0x184   : > { %v10542_v60 = vld [vmem:[%s11263_s14 + $0x3c] sm:$0xff]   ;;  %v8527_v3 = vrot.slane %v8511_v11, 9  ;;  %v2417_v32 = vshrl.u32 %v8426_v16, 16  ;;  %v2441_v39 = vshrl.u32 %v8429_v54, 16 }
 0x185   : > { %v12054_v11 = vld [vmem:[%s11263_s14 + $0x20] sm:$0x1] }
 0x186   : > { %9301 = vmatmul.mubr.msk.bf16.gmra.mrb[16].mxu1 %vm480_vm1, %v8289_v5  ;;  %v1608_v5 = vrot.slane %v10573_v49, 5  ;;  %v11991_v49 = vld [vmem:[%s11263_s14 + $0x64] sm:$0xf] }
 0x187   : > { %9304 = vmatprep.mubr.msk.bf16.mxu1 %vm480_vm1, %v13768_v61  ;;  %v1616_v61 = vsel %vm11642_vm7, %v1614_v62, %v1615_v17  ;;  %v2420_v62 = vshll.u32 %v8426_v16, 16 }
 0x188   : > { %v1609_v28 = vsel %vm11642_vm7, %v1607_v41, %v1608_v5  ;;  %v11994_v5 = vld [vmem:[%s11263_s14 + $0x68] sm:$0x1] }
 0x189   : > { %v8330_v63 = vcombine.low %v1606_v2, %v1609_v28  ;;  %v3212_v42 = vrot.slane %v11994_v5, 5  ;;  %v10545_v28 = vld [vmem:[%s11263_s14 + $0x60] sm:$0xff]  }
 0x18e   : > { %9305 = vmatmul.mubr.msk.bf16.gmra.mrb[20].mxu1 %vm480_vm1, %v13769_v29  ;;  %v1620_v29 = vsel %vm11642_vm7, %v8316_v13, %v1619_v34  ;;  %v2426_v13 = vshll.u32 %v12003_v56, 16 }
 0x18f   : > { %9308 = vmatprep.mubr.msk.bf16.mxu1 %vm480_vm1, %v13770_v10  ;;  %v1623_v10 = vsel %vm11642_vm7, %v1621_v25, %v1622_v52  ;;  %v2430_v25 = vshrl.u32 %v12003_v56, 16  ;;  %v2444_v52 = vshll.u32 %v8429_v54, 16 }
 0x196   : > { %9309 = vmatmul.mubr.msk.bf16.gmra.mrb[24].mxu1 %vm480_vm1, %v13771_v19  ;;  %v8331_v19 = vcombine.low %v1613_v43, %v1616_v61  ;;  %v12024_v43 = vld [vmem:[%s11263_s14 + $0x80] sm:$0x1]  ;;  %v8515_v61 = vld [vmem:[%s11263_s14 + $0x78] sm:$0xe] }
 0x197   : > { %9312 = vmatprep.mubr.msk.bf16.mxu1 %vm480_vm1, %v13772_v26  ;;  %v8332_v26 = vcombine.low %v1620_v29, %v1623_v10  ;;  %v3226_v10 = vrot.slane %v12024_v43, 5 }
 0x19e   : > { %9313 = vmatmul.mubr.msk.bf16.gmra.mrb[28].mxu1 %vm480_vm1, %v13773_v1  ;;  %v8513_v1 = vld [vmem:[%s11263_s14 + $0x60] sm:$0xe] }
 0x19f   : > { %9316 = vmatprep.mubr.msk.bf16.mxu1 %vm480_vm1, %v13774_v21  ;;  %v3209_v21 = vrot.slane %v11991_v49, 5  ;;  %v8529_v50 = vrot.slane %v8513_v1, 9 }
 0x1a1   : > { %v3211_v2 = vrot.slane %v3209_v21, 4  ;;  %v12007_v34 = vsel %vm11642_vm7, %v8529_v50, %v3209_v21 }
 0x1a3   : > { %v12013_v17 = vsel %vm11642_vm7, %v3211_v2, %v3212_v42  ;;  %v8517_v42 = vld [vmem:[%s11263_s14 + $0x90] sm:$0xe] }
 0x1a4   : > { %13789 = vst [vmem:[#allocation30_spill] sm:$0xff] %v12013_v17  ;;  %v8533_v54 = vrot.slane %v8517_v42, 9  ;;  %v12110_v42 = vld [vmem:[%s11263_s14 + $0xb0] sm:$0x1] }
 0x1a6   : > { %9317 = vmatmul.mubr.msk.bf16.gmra.mrb[32].mxu1 %vm480_vm1, %v13775_v57  ;;  %v12021_v57 = vld [vmem:[%s11263_s14 + $0x7c] sm:$0xf] }
 0x1a7   : > { %9322 = vmatprep.mubr.msk.bf16.mxu1 %vm480_vm1, %v8330_v63  ;;  %v3223_v29 = vrot.slane %v12021_v57, 5 }
 0x1ae   : > { %9323 = vmatmul.mubr.msk.bf16.vlgmr.msra.gmra.mrb[4].mxu1 %vm480_vm1, %v8331_v19  ;;  %v12031_v19 = vld [vmem:[%s11263_s14 + $0x1c] sm:$0xf] }
 0x1af   : > { %9355 = vmatpush3.bf16.msra.mxu1 %v2173_v12  ;;  %9326 = vmatprep.mubr.msk.bf16.mxu1 %vm480_vm1, %v8332_v26  ;;  %v8531_v26 = vrot.slane %v8515_v61, 9  ;;  %v2419_v12 = vrot.slane %v2417_v32, 4  ;;  %v10549_v32 = vld [vmem:[%s11263_s14 + $0x90] sm:$0xff]  }
 0x1b0   : > { %10384 = vmatprep.subr.msk.bf16.mxu1 %vm493_vm0, %v2801_v35  ;;  %v2422_v35 = vrot.slane %v2420_v62, 5  ;;  %v8435_v61 = vld [vmem:[%s11263_s14 + $0x30] sm:$0xf] }
 0x1b6   : > { %9327 = vmatmul.mubr.msk.bf16.gmra.mrb[8].mxu1 %vm480_vm1, %v13776_v44  ;;  %v12033_v44 = vrot.slane %v2426_v13, 5 }
 0x1b7   : > { %9330 = vmatprep.mubr.msk.bf16.mxu1 %vm480_vm1, %v13777_v51  ;;  %v3225_v51 = vrot.slane %v3223_v29, 4 }
 0x1be   : > { %9331 = vmatmul.mubr.msk.bf16.gmra.mrb[12].mxu1 %vm480_vm1, %v13778_v8  ;;  %v10547_v8 = vld [vmem:[%s11263_s14 + $0x78] sm:$0xff]  }
 0x1bf   : > { %9334 = vmatprep.mubr.msk.bf16.mxu1 %vm480_vm1, %v13779_v9  ;;  %v12037_v9 = vld [vmem:[%s11263_s14 + $0x14] sm:$0x1] }
 0x1c6   : > { %9335 = vmatmul.mubr.msk.bf16.gmra.mrb[16].mxu1 %vm480_vm1, %v13780_v23  ;;  %v2432_v23 = vrot.slane %v2430_v25, 4 }
 0x1c7   : > { %9338 = vmatprep.mubr.msk.bf16.mxu1 %vm480_vm1, %v13781_v14  ;;  %v2443_v14 = vrot.slane %v2441_v39, 4 }
 0x1ce   : > { %9339 = vmatmul.mubr.msk.bf16.gmra.mrb[20].mxu1 %vm480_vm1, %v13782_v27  ;;  %v2446_v27 = vrot.slane %v2444_v52, 5 }
 0x1cf   : > { %9342 = vmatprep.mubr.msk.bf16.mxu1 %vm480_vm1, %v13783_v0  ;;  %v12041_v0 = vsel %vm11642_vm7, %v8531_v26, %v3223_v29  ;;  %v12080_v29 = vld [vmem:[%s11263_s14 + $0x34] sm:$0xf]  ;;  %v10550_v26 = vld [vmem:[%s11263_s14 + $0x9c] sm:$0xff]  }
 0x1d0   : > { %13790 = vst [vmem:[#allocation31_spill] sm:$0xff] %v12041_v0 }
 0x1d6   : > { %9343 = vmatmul.mubr.msk.bf16.gmra.mrb[24].mxu1 %vm480_vm1, %v8341_v30  ;;  %v11971_v30 = vld [vmem:[%s11263_s14 + $0x50] sm:$0x1] }
 0x1d7   : > { %9346 = vmatprep.mubr.msk.bf16.mxu1 %vm480_vm1, %v13784_v22  ;;  %v3198_v20 = vrot.slane %v11971_v30, 5  ;;  %v10548_v22 = vld [vmem:[%s11263_s14 + $0x84] sm:$0xff]  }
 0x1d9   : > { %v11985_v18 = vsel %vm11642_vm7, %v3197_v59, %v3198_v20  ;;  %v2433_v20 = vor.u32 %v2432_v23, %v12033_v44  ;;  %v12060_v59 = vld [vmem:[%s11263_s14 + $0x28] sm:$0xf] }
 0x1da   : > { %v2474_v13 = vshll.u32 %v12060_v59, 16  ;;  %v2478_v52 = vshrl.u32 %v12060_v59, 16 }
 0x1db   : > { %v2434_v39 = vrot.slane %v2433_v20, 4 }
 0x1dc   : > { %v2480_v20 = vrot.slane %v2478_v52, 4  ;;  %v12126_v52 = vld [vmem:[%s11263_s14 + $0x40] sm:$0xf] }
 0x1de   : > { %9347 = vmatmul.mubr.msk.bf16.gmra.mrb[28].mxu1 %vm480_vm1, %v8343_v40  ;;  %v10543_v40 = vld [vmem:[%s11263_s14 + $0x48] sm:$0xff]  }
 0x1df   : > { %9350 = vmatprep.mubr.msk.bf16.mxu1 %vm480_vm1, %v8344_v58  ;;  %v11980_v58 = vsel %vm11642_vm7, %v8527_v3, %v3195_v4  ;;  %v8432_v4 = vld [vmem:[%s11263_s14 + $0x24] sm:$0xf]  ;;  %v2447_v3 = vor.u32 %v2446_v27, %v2443_v14 }
 0x1e0   : > { %v2465_v16 = vshrl.u32 %v8432_v4, 16 }
 0x1e2   : > { %v2467_v14 = vrot.slane %v2465_v16, 4  ;;  %v8519_v16 = vld [vmem:[%s11263_s14 + $0xa8] sm:$0xe] }
 0x1e6   : > { %9351 = vmatmul.mubr.msk.bf16.gmra.mrb[32].mxu1 %vm480_vm1, %v8345_v46  ;;  %v10544_v46 = vld [vmem:[%s11263_s14 + $0x54] sm:$0xff]  }
 0x1e7   : > { %9356 = vmatprep.mubr.msk.bf16.mxu1 %vm480_vm1, %v10538_v7  ;;  %v2450_v7 = vshll.u32 %v12031_v19, 16 }
 0x1e9   : > { %v12069_v1 = vrot.slane %v2450_v7, 5  ;;  %v12099_v7 = vld [vmem:[%s11263_s14 + $0x2c] sm:$0x1] }
 0x1ee   : > { %9357 = vmatmul.mubr.msk.bf16.vlgmr.msra.gmra.mrb[4].mxu1 %vm480_vm1, %v10539_v6  ;;  %v2454_v6 = vshrl.u32 %v12031_v19, 16 }
 0x1ef   : > { %9389 = vmatpush3.bf16.msra.mxu1 %v2899_v24  ;;  %9360 = vmatprep.mubr.msk.bf16.mxu1 %vm480_vm1, %v10540_v55  ;;  %v12048_v55 = vsel %vm11642_vm7, %v3225_v51, %v3226_v10  ;;  %v12133_v24 = vld [vmem:[%s11263_s14 + $0x38] sm:$0x1] }
 0x1f0   : > { %10385 = vmatprep.subr.msk.bf16.mxu1 %vm493_vm0, %v11950_v36  ;;  %13791 = vst [vmem:[#allocation32_spill] sm:$0xff] %v12048_v55  ;;  %v2456_v21 = vrot.slane %v2454_v6, 4  ;;  %v12101_v6 = vrot.slane %v2474_v13, 5  ;;  %v12245_v55 = vld [vmem:[#allocation12 + $0xc] sm:$0x3] }
 0x1f1   : > { %v11954_v48 = vpop.f32.mrb[0].mxu1 }
 0x1f2   : > { %13785 = vst [vmem:[#allocation26_spill] sm:$0xff] %v11954_v48  ;;  %v11958_v15 = vpop.f32.mrb[1].mxu1  ;;  %v2457_v51 = vor.u32 %v2456_v21, %v12069_v1  ;;  %v12107_v21 = vld [vmem:[%s11263_s14 + $0xac] sm:$0xf]  ;;  %v10553_v48 = vld [vmem:[%s11263_s14 + $0xc0] sm:$0xff]  }
 0x1f3   : > { %13786 = vst [vmem:[#allocation27_spill] sm:$0xff] %v11958_v15  ;;  %v11961_v47 = vpop.f32.mrb[2].mxu1 }
 0x1f4   : > { %13787 = vst [vmem:[#allocation28_spill] sm:$0xff] %v11961_v47  ;;  %v11963_v45 = vpop.f32.mrb[3].mxu1 }
 0x1f5   : > { %13788 = vst [vmem:[#allocation29_spill] sm:$0xff] %v11963_v45 }
 0x1f6   : > { %9361 = vmatmul.mubr.msk.bf16.gmra.mrb[8].mxu1 %vm480_vm1, %v10541_v53  ;;  %v2423_v53 = vor.u32 %v2422_v35, %v2419_v12  ;;  %v12087_v35 = vrot.slane %v2447_v3, 4  ;;  %v2502_v3 = vshrl.u32 %v12080_v29, 16 }
 0x1f7   : > { %9364 = vmatprep.mubr.msk.bf16.mxu1 %vm480_vm1, %v10542_v60  ;;  %v2436_v60 = vshll.u32 %v12037_v9, 16 }
 0x1f8   : > { %v2424_v62 = vrot.slane %v2423_v53, 4  ;;  %v2489_v53 = vshrl.u32 %v8435_v61, 16  ;;  %v2504_v63 = vrot.slane %v2502_v3, 4  ;;  %v2526_v3 = vshrl.u32 %v12126_v52, 16 }
 0x1f9   : > { %v2438_v12 = vrot.slane %v2436_v60, 5  ;;  %v2492_v60 = vshll.u32 %v8435_v61, 16  ;;  %v8535_v61 = vrot.slane %v8519_v16, 9  ;;  %v12161_v16 = vld [vmem:[%s11263_s14 + $0xc4] sm:$0xf] }
 0x1fe   : > { %9365 = vmatmul.mubr.msk.bf16.gmra.mrb[12].mxu1 %vm480_vm1, %v10543_v40  ;;  %v12063_v40 = vld [vmem:[%s11263_s14 + $0x94] sm:$0xf] }
 0x1ff   : > { %9368 = vmatprep.mubr.msk.bf16.mxu1 %vm480_vm1, %v10544_v46  ;;  %v12066_v46 = vld [vmem:[%s11263_s14 + $0x98] sm:$0x1]  ;;  %v3237_v50 = vrot.slane %v12063_v40, 5 }
 0x200   : > { %v3240_v2 = vrot.slane %v12066_v46, 5 }
 0x201   : > { %v3239_v25 = vrot.slane %v3237_v50, 4  ;;  %v12084_v10 = vsel %vm11642_vm7, %v8533_v54, %v3237_v50  ;;  %v2429_v50 = vsel %vm11333_vm4, %v2424_v62, %v12033_v44  ;;  %v3254_v54 = vrot.slane %v12110_v42, 5 }
 0x202   : > { %13792 = vst [vmem:[#allocation33_spill] sm:$0xff] %v12084_v10  ;;  %v2491_v44 = vrot.slane %v2489_v53, 4  ;;  %v2494_v62 = vrot.slane %v2492_v60, 5  ;;  %v2522_v53 = vshll.u32 %v12126_v52, 16 }
 0x206   : > { %9369 = vmatmul.mubr.msk.bf16.gmra.mrb[16].mxu1 %vm480_vm1, %v10545_v28  ;;  %v2460_v28 = vshll.u32 %v12054_v11, 16 }
 0x207   : > { %9372 = vmatprep.mubr.msk.bf16.mxu1 %vm480_vm1, %v10546_v37  ;;  %v2468_v37 = vshll.u32 %v8432_v4, 16  ;;  %v2498_v4 = vshll.u32 %v12080_v29, 16 }
 0x208   : > { %v12094_v23 = vrot.slane %v2460_v28, 5  ;;  %v8438_v28 = vld [vmem:[%s11263_s14 + $0x3c] sm:$0xf] }
 0x209   : > { %v2470_v27 = vrot.slane %v2468_v37, 5  ;;  %v3251_v37 = vrot.slane %v12107_v21, 5  ;;  %v2516_v41 = vshll.u32 %v8438_v28, 16 }
 0x20b   : > { %v2471_v13 = vor.u32 %v2470_v27, %v2467_v14  ;;  %v12137_v14 = vsel %vm11642_vm7, %v8535_v61, %v3251_v37  ;;  %v10552_v27 = vld [vmem:[%s11263_s14 + $0xb4] sm:$0xff]   ;;  %v2495_v61 = vor.u32 %v2494_v62, %v2491_v44  ;;  %v12167_v44 = vrot.slane %v2522_v53, 5  ;;  %v8521_v62 = vld [vmem:[%s11263_s14 + $0xc0] sm:$0xe] }
 0x20c   : > { %13794 = vst [vmem:[#allocation35_spill] sm:$0xff] %v12137_v14  ;;  %v8537_v47 = vrot.slane %v8521_v62, 9  ;;  %v8444_v14 = vld [vmem:[%s11263_s14 + $0x54] sm:$0xf] }
 0x20e   : > { %9373 = vmatmul.mubr.msk.bf16.gmra.mrb[20].mxu1 %vm480_vm1, %v10547_v8  ;;  %v12092_v8 = vsel %vm11642_vm7, %v3239_v25, %v3240_v2  ;;  %v2439_v2 = vsel %vm11333_vm4, %v2434_v39, %v2438_v12  ;;  %v2484_v25 = vshll.u32 %v12099_v7, 16  ;;  %v3253_v39 = vrot.slane %v3251_v37, 4  ;;  %v10551_v12 = vld [vmem:[%s11263_s14 + $0xa8] sm:$0xff]  }
 0x20f   : > { %9376 = vmatprep.mubr.msk.bf16.mxu1 %vm480_vm1, %v10548_v22  ;;  %13793 = vst [vmem:[#allocation34_spill] sm:$0xff] %v12092_v8  ;;  %v2481_v22 = vor.u32 %v2480_v20, %v12101_v6  ;;  %v2453_v20 = vsel %vm11333_vm4, %v12087_v35, %v12069_v1 }
 0x210   : > { %v12143_v60 = vsel %vm11642_vm7, %v3253_v39, %v3254_v54  ;;  %v2486_v37 = vrot.slane %v2484_v25, 5  ;;  %v2508_v54 = vshll.u32 %v12133_v24, 16  ;;  %v8441_v39 = vld [vmem:[%s11263_s14 + $0x48] sm:$0xf]  ;;  %v2518_v25 = vrot.slane %v2516_v41, 5 }
 0x211   : > { %13795 = vst [vmem:[#allocation36_spill] sm:$0xff] %v12143_v60  ;;  %v2482_v35 = vrot.slane %v2481_v22, 4  ;;  %v12173_v22 = vld [vmem:[%s11263_s14 + $0x44] sm:$0x1]  ;;  %v2546_v60 = vshll.u32 %v11968_v31, 16 }
 0x212   : > { %v12181_v53 = vrot.slane %v2508_v54, 5 }
 0x213   : > { %v2487_v15 = vsel %vm11333_vm4, %v2482_v35, %v2486_v37 }
 0x216   : > { %9377 = vmatmul.mubr.msk.bf16.gmra.mrb[24].mxu1 %vm480_vm1, %v10549_v32  ;;  %v12122_v32 = vrot.slane %v2457_v51, 4  ;;  %v2513_v51 = vshrl.u32 %v8438_v28, 16  ;;  %v2472_v28 = vrot.slane %v2471_v13, 4  ;;  %v12164_v13 = vld [vmem:[%s11263_s14 + $0xc8] sm:$0x1] }
 0x217   : > { %9380 = vmatprep.mubr.msk.bf16.mxu1 %vm480_vm1, %v10550_v26  ;;  %v12128_v26 = vrot.slane %v2498_v4, 5  ;;  %v8474_v4 = vcombine.low %v2429_v50, %v2439_v2 }
 0x218   : > { %v2463_v1 = vsel %vm11333_vm4, %v12122_v32, %v12094_v23  ;;  %v2515_v2 = vrot.slane %v2513_v51, 4  ;;  %v3268_v23 = vrot.slane %v12164_v13, 5  ;;  %v2537_v32 = vshrl.u32 %v8441_v39, 16 }
 0x219   : > { %v2505_v50 = vor.u32 %v2504_v63, %v12128_v26  ;;  %v2528_v63 = vrot.slane %v2526_v3, 4  ;;  %v2540_v51 = vshll.u32 %v8441_v39, 16  ;;  %v2477_v41 = vsel %vm11333_vm4, %v2472_v28, %v12101_v6  ;;  %v12189_v39 = vld [vmem:[%s11263_s14 + $0x58] sm:$0xf] }
 0x21a   : > { %v2550_v3 = vshrl.u32 %v11968_v31, 16  ;;  %v2519_v28 = vor.u32 %v2518_v25, %v2515_v2  ;;  %v2539_v35 = vrot.slane %v2537_v32, 4  ;;  %v2574_v2 = vshrl.u32 %v12189_v39, 16 }
 0x21b   : > { %v12195_v6 = vrot.slane %v2505_v50, 4  ;;  %v2529_v37 = vor.u32 %v2528_v63, %v12167_v44  ;;  %v2542_v31 = vrot.slane %v2540_v51, 5  ;;  %v2570_v50 = vshll.u32 %v12189_v39, 16 }
 0x21c   : > { %v3369_v25 = vsel %vm493_vm0, %v11950_v36, 0  ;;  %v2552_v63 = vrot.slane %v2550_v3, 4  ;;  %v8476_v32 = vcombine.low %v2477_v41, %v2487_v15  ;;  %v8447_v36 = vld [vmem:[%s11263_s14 + $0x60] sm:$0xf]  ;;  %v8450_v15 = vld [vmem:[%s11263_s14 + $0x6c] sm:$0xf] }
 0x21d   : > { %v2530_v51 = vrot.slane %v2529_v37, 4  ;;  %v2543_v3 = vor.u32 %v2542_v31, %v2539_v35  ;;  %v2598_v37 = vshrl.u32 %v11991_v49, 16  ;;  %v2612_v35 = vshll.u32 %v8450_v15, 16 }
 0x21e   : > { %9381 = vmatmul.mubr.msk.bf16.gmra.mrb[28].mxu1 %vm480_vm1, %v10551_v12  ;;  %v3265_v12 = vrot.slane %v12161_v16, 5 }
 0x21f   : > { %9384 = vmatprep.mubr.msk.bf16.mxu1 %vm480_vm1, %v10552_v27  ;;  %v12179_v27 = vrot.slane %v2495_v61, 4  ;;  %v2532_v61 = vshll.u32 %v12173_v22, 16 }
 0x220   : > { %v3267_v45 = vrot.slane %v3265_v12, 4  ;;  %v12193_v62 = vsel %vm11642_vm7, %v8537_v47, %v3265_v12  ;;  %v2561_v47 = vshrl.u32 %v8444_v14, 16  ;;  %v2564_v12 = vshll.u32 %v8444_v14, 16 }
 0x221   : > { %13796 = vst [vmem:[#allocation37_spill] sm:$0xff] %v12193_v62  ;;  %v2501_v14 = vsel %vm11333_vm4, %v12179_v27, %v12128_v26  ;;  %v2576_v26 = vrot.slane %v2574_v2, 4  ;;  %v12230_v27 = vld [vmem:[%s11263_s14 + $0x70] sm:$0xf]  ;;  %v2544_v2 = vrot.slane %v2543_v3, 4 }
 0x222   : > { %v12200_v54 = vsel %vm11642_vm7, %v3267_v45, %v3268_v23  ;;  %v8475_v45 = vcombine.low %v2453_v20, %v2463_v1  ;;  %v12210_v23 = vrot.slane %v2546_v60, 5  ;;  %v2534_v20 = vrot.slane %v2532_v61, 5  ;;  %v12222_v1 = vld [vmem:[%s11263_s14 + $0x5c] sm:$0x1] }
 0x223   : > { %13797 = vst [vmem:[#allocation38_spill] sm:$0xff] %v12200_v54  ;;  %v2520_v60 = vrot.slane %v2519_v28, 4  ;;  %v2563_v41 = vrot.slane %v2561_v47, 4  ;;  %v2566_v8 = vrot.slane %v2564_v12, 5  ;;  %v12227_v54 = vrot.slane %v2570_v50, 5 }
 0x224   : > { %v2553_v62 = vor.u32 %v2552_v63, %v12210_v23  ;;  %v2588_v61 = vshll.u32 %v8447_v36, 16  ;;  %v2594_v28 = vshll.u32 %v11991_v49, 16  ;;  %v2535_v47 = vsel %vm11333_vm4, %v2530_v51, %v2534_v20  ;;  %v8453_v49 = vld [vmem:[%s11263_s14 + $0x78] sm:$0xf] }
 0x225   : > { %v2525_v31 = vsel %vm11333_vm4, %v2520_v60, %v12167_v44  ;;  %v2618_v12 = vshll.u32 %v12230_v27, 16  ;;  %v2622_v50 = vshrl.u32 %v12230_v27, 16  ;;  %v2577_v10 = vor.u32 %v2576_v26, %v12227_v54 }
 0x226   : > { %9385 = vmatmul.mubr.msk.bf16.gmra.mrb[32].mxu1 %vm480_vm1, %v10553_v48  ;;  %v2511_v48 = vsel %vm11333_vm4, %v12195_v6, %v12181_v53  ;;  %v2580_v53 = vshll.u32 %v12222_v1, 16  ;;  %v2585_v6 = vshrl.u32 %v8447_v36, 16  ;;  %v2567_v36 = vor.u32 %v2566_v8, %v2563_v41  ;;  %v12252_v8 = vld [vmem:[%s11263_s14 + $0x74] sm:$0x1] }
 0x227   : > { %9390 = vmatprep.mubr.msk.bf16.mxu1 %vm480_vm1, %v8474_v4  ;;  %v2556_v4 = vshll.u32 %v11971_v30, 16  ;;  %v2609_v30 = vshrl.u32 %v8450_v15, 16  ;;  %v2554_v15 = vrot.slane %v2553_v62, 4  ;;  %v2590_v0 = vrot.slane %v2588_v61, 5 }
 0x228   : > { %v2582_v44 = vrot.slane %v2580_v53, 5  ;;  %v2587_v60 = vrot.slane %v2585_v6, 4  ;;  %v12249_v20 = vrot.slane %v2594_v28, 5  ;;  %v2600_v51 = vrot.slane %v2598_v37, 4 }
 0x229   : > { %v2558_v63 = vrot.slane %v2556_v4, 5  ;;  %v2611_v3 = vrot.slane %v2609_v30, 4  ;;  %v2614_v4 = vrot.slane %v2612_v35, 5  ;;  %v12254_v41 = vrot.slane %v2618_v12, 5 }
 0x22a   : > { %v2624_v26 = vrot.slane %v2622_v50, 4  ;;  %v2633_v17 = vshrl.u32 %v8453_v49, 16  ;;  %v2636_v62 = vshll.u32 %v8453_v49, 16  ;;  %v2646_v53 = vshrl.u32 %v12021_v57, 16  ;;  %v8456_v50 = vld [vmem:[%s11263_s14 + $0x84] sm:$0xf] }
 0x22b   : > { %v8477_v6 = vcombine.low %v2501_v14, %v2511_v48  ;;  %v8478_v61 = vcombine.low %v2525_v31, %v2535_v47  ;;  %v2549_v28 = vsel %vm11333_vm4, %v2544_v2, %v12210_v23  ;;  %v2559_v37 = vsel %vm11333_vm4, %v2554_v15, %v2558_v63 }
 0x22c   : > { %v2591_v30 = vor.u32 %v2590_v0, %v2587_v60  ;;  %v2601_v35 = vor.u32 %v2600_v51, %v12249_v20  ;;  %v2604_v12 = vshll.u32 %v11994_v5, 16  ;;  %v2625_v14 = vor.u32 %v2624_v26, %v12254_v41 }
 0x22d   : > { %v2635_v48 = vrot.slane %v2633_v17, 4  ;;  %v2638_v31 = vrot.slane %v2636_v62, 5  ;;  %v2648_v5 = vrot.slane %v2646_v53, 4  ;;  %v2657_v2 = vshrl.u32 %v8456_v50, 16  ;;  %v8459_v62 = vld [vmem:[%s11263_s14 + $0x90] sm:$0xf] }
 0x22e   : > { %9391 = vmatmul.mubr.msk.bf16.vlgmr.msra.gmra.mrb[4].mxu1 %vm480_vm1, %v8475_v45  ;;  %v2568_v45 = vrot.slane %v2567_v36, 4  ;;  %v12270_v36 = vld [vmem:[%s11263_s14 + $0x88] sm:$0xf]  ;;  %v2660_v63 = vshll.u32 %v8456_v50, 16  ;;  %v2592_v15 = vrot.slane %v2591_v30, 4  ;;  %v2606_v60 = vrot.slane %v2604_v12, 5 }
 0x22f   : > { %9423 = vmatpush3.bf16.msra.mxu1 %v3369_v25  ;;  %9394 = vmatprep.mubr.msk.bf16.mxu1 %vm480_vm1, %v8476_v32  ;;  %v2578_v25 = vrot.slane %v2577_v10, 4  ;;  %v2642_v32 = vshll.u32 %v12021_v57, 16  ;;  %v2628_v10 = vshll.u32 %v12252_v8, 16  ;;  %v2615_v57 = vor.u32 %v2614_v4, %v2611_v3  ;;  %v12288_v53 = vld [vmem:[%s11263_s14 + $0x8c] sm:$0x1] }
 0x230   : > { %10386 = vmatprep.subr.msk.bf16.mxu1 %vm493_vm0, %v12245_v55  ;;  %v2573_v23 = vsel %vm11333_vm4, %v2568_v45, %v12227_v54  ;;  %v2666_v49 = vshll.u32 %v12270_v36, 16  ;;  %v2670_v17 = vshrl.u32 %v12270_v36, 16  ;;  %v2602_v54 = vrot.slane %v2601_v35, 4 }
 0x231   : > { %v2583_v0 = vsel %vm11333_vm4, %v2578_v25, %v2582_v44  ;;  %v12278_v47 = vrot.slane %v2642_v32, 5  ;;  %v2630_v51 = vrot.slane %v2628_v10, 5  ;;  %v2616_v44 = vrot.slane %v2615_v57, 4 }
 0x232   : > { %v2626_v3 = vrot.slane %v2625_v14, 4  ;;  %v2639_v4 = vor.u32 %v2638_v31, %v2635_v48  ;;  %v2652_v26 = vshll.u32 %v12024_v43, 16  ;;  %v8479_v45 = vcombine.low %v2549_v28, %v2559_v37  ;;  %v8462_v28 = vld [vmem:[%s11263_s14 + $0x9c] sm:$0xf]  ;;  %v12299_v37 = vld [vmem:[%s11263_s14 + $0xa0] sm:$0xf] }
 0x233   : > { %v8480_v25 = vcombine.low %v2573_v23, %v2583_v0  ;;  %v2649_v32 = vor.u32 %v2648_v5, %v12278_v47  ;;  %v12290_v30 = vrot.slane %v2666_v49, 5  ;;  %v2672_v35 = vrot.slane %v2670_v17, 4 }
 0x234   : > { %v2597_v12 = vsel %vm11333_vm4, %v2592_v15, %v12249_v20  ;;  %v2607_v10 = vsel %vm11333_vm4, %v2602_v54, %v2606_v60  ;;  %v2681_v43 = vshrl.u32 %v8459_v62, 16  ;;  %v2684_v50 = vshll.u32 %v8459_v62, 16 }
 0x235   : > { %v2621_v57 = vsel %vm11333_vm4, %v2616_v44, %v12254_v41  ;;  %v2631_v14 = vsel %vm11333_vm4, %v2626_v3, %v2630_v51  ;;  %v2640_v48 = vrot.slane %v2639_v4, 4  ;;  %v2654_v31 = vrot.slane %v2652_v26, 5 }
 0x236   : > { %9395 = vmatmul.mubr.msk.bf16.gmra.mrb[8].mxu1 %vm480_vm1, %v8477_v6  ;;  %v2659_v6 = vrot.slane %v2657_v2, 4  ;;  %v2650_v23 = vrot.slane %v2649_v32, 4  ;;  %v2676_v20 = vshll.u32 %v12288_v53, 16  ;;  %v2690_v0 = vshll.u32 %v12063_v40, 16 }
 0x237   : > { %9398 = vmatprep.mubr.msk.bf16.mxu1 %vm480_vm1, %v8478_v61  ;;  %v2662_v61 = vrot.slane %v2660_v63, 5  ;;  %v2694_v5 = vshrl.u32 %v12063_v40, 16  ;;  %v2705_v2 = vshrl.u32 %v8462_v28, 16  ;;  %v2708_v63 = vshll.u32 %v8462_v28, 16 }
 0x238   : > { %v2714_v49 = vshll.u32 %v12299_v37, 16  ;;  %v2718_v41 = vshrl.u32 %v12299_v37, 16  ;;  %v2673_v15 = vor.u32 %v2672_v35, %v12290_v30  ;;  %v2683_v54 = vrot.slane %v2681_v43, 4  ;;  %v8465_v35 = vld [vmem:[%s11263_s14 + $0xa8] sm:$0xf] }
 0x239   : > { %v2663_v17 = vor.u32 %v2662_v61, %v2659_v6  ;;  %v2686_v60 = vrot.slane %v2684_v50, 5  ;;  %v8481_v51 = vcombine.low %v2597_v12, %v2607_v10  ;;  %v8482_v44 = vcombine.low %v2621_v57, %v2631_v14 }
 0x23a   : > { %v2645_v40 = vsel %vm11333_vm4, %v2640_v48, %v12278_v47  ;;  %v2655_v3 = vsel %vm11333_vm4, %v2650_v23, %v2654_v31  ;;  %v2678_v4 = vrot.slane %v2676_v20, 5  ;;  %v12319_v26 = vrot.slane %v2690_v0, 5  ;;  %v8468_v31 = vld [vmem:[%s11263_s14 + $0xb4] sm:$0xf]  ;;  %v12330_v23 = vld [vmem:[%s11263_s14 + $0xb8] sm:$0xf] }
 0x23b   : > { %v2696_v62 = vrot.slane %v2694_v5, 4  ;;  %v2710_v32 = vrot.slane %v2708_v63, 5  ;;  %v2716_v6 = vrot.slane %v2714_v49, 5  ;;  %v2720_v61 = vrot.slane %v2718_v41, 4 }
 0x23c   : > { %v2664_v12 = vrot.slane %v2663_v17, 4  ;;  %v2674_v10 = vrot.slane %v2673_v15, 4  ;;  %v2687_v43 = vor.u32 %v2686_v60, %v2683_v54  ;;  %v2700_v47 = vshll.u32 %v12066_v46, 16 }
 0x23d   : > { %v8483_v28 = vcombine.low %v2645_v40, %v2655_v3  ;;  %v2697_v57 = vor.u32 %v2696_v62, %v12319_v26  ;;  %v2729_v14 = vshrl.u32 %v8465_v35, 16  ;;  %v2732_v48 = vshll.u32 %v8465_v35, 16 }
 0x23e   : > { %9399 = vmatmul.mubr.msk.bf16.gmra.mrb[12].mxu1 %vm480_vm1, %v8479_v45  ;;  %v12322_v45 = vld [vmem:[%s11263_s14 + $0xa4] sm:$0x1]  ;;  %v2721_v0 = vor.u32 %v2720_v61, %v2716_v6  ;;  %v2738_v5 = vshll.u32 %v12107_v21, 16  ;;  %v2669_v46 = vsel %vm11333_vm4, %v2664_v12, %v12290_v30  ;;  %v2679_v63 = vsel %vm11333_vm4, %v2674_v10, %v2678_v4  ;;  %v8471_v10 = vld [vmem:[%s11263_s14 + $0xc0] sm:$0xf] }
 0x23f   : > { %9402 = vmatprep.mubr.msk.bf16.mxu1 %vm480_vm1, %v8480_v25  ;;  %v2707_v25 = vrot.slane %v2705_v2, 4  ;;  %v2724_v50 = vshll.u32 %v12322_v45, 16  ;;  %v2742_v2 = vshrl.u32 %v12107_v21, 16  ;;  %v2688_v49 = vrot.slane %v2687_v43, 4 }
 0x240   : > { %v2702_v41 = vrot.slane %v2700_v47, 5  ;;  %v2753_v17 = vshrl.u32 %v8468_v31, 16  ;;  %v2756_v15 = vshll.u32 %v8468_v31, 16  ;;  %v2762_v54 = vshll.u32 %v12330_v23, 16 }
 0x241   : > { %v2711_v20 = vor.u32 %v2710_v32, %v2707_v25  ;;  %v2766_v60 = vshrl.u32 %v12330_v23, 16  ;;  %v2726_v21 = vrot.slane %v2724_v50, 5  ;;  %v2734_v40 = vrot.slane %v2732_v48, 5 }
 0x242   : > { %v2722_v62 = vrot.slane %v2721_v0, 4  ;;  %v2740_v30 = vrot.slane %v2738_v5, 5  ;;  %v2744_v25 = vrot.slane %v2742_v2, 4  ;;  %v8484_v32 = vcombine.low %v2669_v46, %v2679_v63 }
 0x243   : > { %v2712_v3 = vrot.slane %v2711_v20, 4  ;;  %v2755_v4 = vrot.slane %v2753_v17, 4  ;;  %v2758_v61 = vrot.slane %v2756_v15, 5  ;;  %v2764_v35 = vrot.slane %v2762_v54, 5 }
 0x244   : > { %v2768_v12 = vrot.slane %v2766_v60, 4  ;;  %v2693_v43 = vsel %vm11333_vm4, %v2688_v49, %v12319_v26  ;;  %v2727_v48 = vsel %vm11333_vm4, %v2722_v62, %v2726_v21  ;;  %v2745_v31 = vor.u32 %v2744_v25, %v2740_v30 }
 0x245   : > { %v2748_v20 = vshll.u32 %v12110_v42, 16  ;;  %v2777_v26 = vshrl.u32 %v8471_v10, 16  ;;  %v2780_v0 = vshll.u32 %v8471_v10, 16  ;;  %v2786_v5 = vshll.u32 %v12161_v16, 16  ;;  %v8506_v10 = vld [vmem:[%s11263_s14 + $0xc] sm:$0xe] }
 0x246   : > { %9403 = vmatmul.mubr.msk.bf16.gmra.mrb[16].mxu1 %vm480_vm1, %v8481_v51  ;;  %v2698_v51 = vrot.slane %v2697_v57, 4  ;;  %v12350_v57 = vld [vmem:[%s11263_s14 + $0xbc] sm:$0x1]  ;;  %v2790_v2 = vshrl.u32 %v12161_v16, 16  ;;  %v2759_v46 = vor.u32 %v2758_v61, %v2755_v4  ;;  %v2769_v63 = vor.u32 %v2768_v12, %v2764_v35 }
 0x247   : > { %9406 = vmatprep.mubr.msk.bf16.mxu1 %vm480_vm1, %v8482_v44  ;;  %v2731_v44 = vrot.slane %v2729_v14, 4  ;;  %v2717_v14 = vsel %vm11333_vm4, %v2712_v3, %v2716_v6  ;;  %v2746_v17 = vrot.slane %v2745_v31, 4  ;;  %v2750_v15 = vrot.slane %v2748_v20, 5 }
 0x248   : > { %v2703_v47 = vsel %vm11333_vm4, %v2698_v51, %v2702_v41  ;;  %v8486_v6 = vcombine.low %v2717_v14, %v2727_v48  ;;  %v2779_v54 = vrot.slane %v2777_v26, 4  ;;  %v2782_v60 = vrot.slane %v2780_v0, 5 }
 0x249   : > { %v2735_v50 = vor.u32 %v2734_v40, %v2731_v44  ;;  %v8485_v49 = vcombine.low %v2693_v43, %v2703_v47  ;;  %v2788_v42 = vrot.slane %v2786_v5, 5  ;;  %v2792_v51 = vrot.slane %v2790_v2, 4  ;;  %v8507_v5 = vld [vmem:[%s11263_s14 + $0x18] sm:$0xe]  ;;  %v8508_v2 = vld [vmem:[%s11263_s14 + $0x24] sm:$0xe] }
 0x24a   : > { %v2760_v21 = vrot.slane %v2759_v46, 4  ;;  %v2770_v44 = vrot.slane %v2769_v63, 4  ;;  %v2751_v3 = vsel %vm11333_vm4, %v2746_v17, %v2750_v15  ;;  %v2783_v62 = vor.u32 %v2782_v60, %v2779_v54 }
 0x24b   : > { %v2736_v41 = vrot.slane %v2735_v50, 4  ;;  %v2793_v25 = vor.u32 %v2792_v51, %v2788_v42  ;;  %v3160_v12 = vrot.slane %v12003_v56, 5  ;;  %v8522_v48 = vrot.slane %v8506_v10, 9  ;;  %v8510_v51 = vld [vmem:[%s11263_s14 + $0x3c] sm:$0xe] }
 0x24c   : > { %v2765_v4 = vsel %vm11333_vm4, %v2760_v21, %v2764_v35  ;;  %v2784_v47 = vrot.slane %v2783_v62, 4  ;;  %v3167_v20 = vrot.slane %v12031_v19, 5  ;;  %v3177_v17 = vrot.slane %v12099_v7, 5 }
 0x24d   : > { %v2741_v16 = vsel %vm11333_vm4, %v2736_v41, %v2740_v30  ;;  %v2794_v50 = vrot.slane %v2793_v25, 4  ;;  %v3162_v31 = vrot.slane %v3160_v12, 4  ;;  %v3161_v26 = vsel %vm11642_vm7, %v8522_v48, %v3160_v12  ;;  %v8512_v12 = vld [vmem:[%s11263_s14 + $0x54] sm:$0xe] }
 0x24e   : > { %9407 = vmatmul.mubr.msk.bf16.gmra.mrb[20].mxu1 %vm480_vm1, %v8483_v28  ;;  %v2772_v28 = vshll.u32 %v12350_v57, 16  ;;  %v8487_v30 = vcombine.low %v2741_v16, %v2751_v3  ;;  %v2789_v35 = vsel %vm11333_vm4, %v2784_v47, %v2788_v42  ;;  %v8524_v41 = vrot.slane %v8508_v2, 9  ;;  %v8509_v42 = vld [vmem:[%s11263_s14 + $0x30] sm:$0xe] }
 0x24f   : > { %9410 = vmatprep.mubr.msk.bf16.mxu1 %vm480_vm1, %v8484_v32  ;;  %v2796_v32 = vshll.u32 %v12164_v13, 16  ;;  %v3163_v13 = vrot.slane %v12037_v9, 5  ;;  %v3174_v9 = vrot.slane %v12060_v59, 5  ;;  %v3181_v54 = vrot.slane %v12080_v29, 5 }
 0x250   : > { %v2774_v40 = vrot.slane %v2772_v28, 5  ;;  %v8523_v28 = vrot.slane %v8507_v5, 9  ;;  %v3188_v7 = vrot.slane %v12126_v52, 5  ;;  %v3184_v3 = vrot.slane %v12133_v24, 5  ;;  %v8516_v5 = vld [vmem:[%s11263_s14 + $0x84] sm:$0xe] }
 0x251   : > { %v2798_v14 = vrot.slane %v2796_v32, 5  ;;  %v3164_v0 = vsel %vm11642_vm7, %v3162_v31, %v3163_v13  ;;  %v3176_v19 = vrot.slane %v3174_v9, 4  ;;  %v3175_v60 = vsel %vm11642_vm7, %v8524_v41, %v3174_v9  ;;  %v8514_v31 = vld [vmem:[%s11263_s14 + $0x6c] sm:$0xe] }
 0x252   : > { %v2775_v61 = vsel %vm11333_vm4, %v2770_v44, %v2774_v40  ;;  %v8538_v63 = vcombine.low %v3161_v26, %v3164_v0  ;;  %v3168_v59 = vsel %vm11642_vm7, %v8523_v28, %v3167_v20  ;;  %v8525_v40 = vrot.slane %v8509_v42, 9 }
 0x253   : > { %v8488_v43 = vcombine.low %v2765_v4, %v2775_v61  ;;  %v2799_v56 = vsel %vm11333_vm4, %v2794_v50, %v2798_v14  ;;  %v3183_v16 = vrot.slane %v3181_v54, 4  ;;  %v3728_v29 = vsel %vm493_vm0, %v12245_v55, 0  ;;  %v12410_v4 = vld [vmem:[#allocation12 + $0xe] sm:$0x3] }
 0x254   : > { %v8489_v46 = vcombine.low %v2789_v35, %v2799_v56  ;;  %v8526_v62 = vrot.slane %v8510_v51, 9  ;;  %v3190_v25 = vrot.slane %v3188_v7, 4  ;;  %v3191_v32 = vrot.slane %v12173_v22, 5  ;;  %v13804_v51 = vld [vmem:[#allocation33_spill] sm:$0xff] }
 0x255   : > { %v3182_v52 = vsel %vm11642_vm7, %v8525_v40, %v3181_v54  ;;  %v3185_v24 = vsel %vm11642_vm7, %v3183_v16, %v3184_v3  ;;  %v3202_v61 = vrot.slane %v12189_v39, 5  ;;  %v3205_v50 = vrot.slane %v12222_v1, 5  ;;  %v13807_v3 = vld [vmem:[#allocation35_spill] sm:$0xff] }
 0x256   : > { %9411 = vmatmul.mubr.msk.bf16.gmra.mrb[24].mxu1 %vm480_vm1, %v8485_v49  ;;  %v3169_v49 = vrot.slane %v3167_v20, 4  ;;  %v3189_v55 = vsel %vm11642_vm7, %v8526_v62, %v3188_v7  ;;  %v3192_v22 = vsel %vm11642_vm7, %v3190_v25, %v3191_v32  ;;  %v8541_v10 = vcombine.low %v3182_v52, %v3185_v24  ;;  %v13810_v25 = vld [vmem:[#allocation37_spill] sm:$0xff]  ;;  %v13811_v32 = vld [vmem:[#allocation38_spill] sm:$0xff] }
 0x257   : > { %9414 = vmatprep.mubr.msk.bf16.mxu1 %vm480_vm1, %v8486_v6  ;;  %v3170_v6 = vrot.slane %v12054_v11, 5  ;;  %v3178_v11 = vsel %vm11642_vm7, %v3176_v19, %v3177_v17  ;;  %v3204_v47 = vrot.slane %v3202_v61, 4  ;;  %v3216_v48 = vrot.slane %v12230_v27, 5  ;;  %v13802_v17 = vld [vmem:[#allocation32_spill] sm:$0xff] }
 0x258   : > { %v8540_v44 = vcombine.low %v3175_v60, %v3178_v11  ;;  %v8530_v35 = vrot.slane %v8514_v31, 9  ;;  %v3219_v20 = vrot.slane %v12252_v8, 5  ;;  %v13798_v1 = vcombine.low %v11980_v58, %v11985_v18  ;;  %v13799_v58 = vld [vmem:[#allocation30_spill] sm:$0xff]  ;;  %v10555_v24 = vld [vmem:[%s11263_s14 + $0x24] sm:$0xff]  }
 0x259   : > { %v3171_v15 = vsel %vm11642_vm7, %v3169_v49, %v3170_v6  ;;  %v3206_v39 = vsel %vm11642_vm7, %v3204_v47, %v3205_v50  ;;  %v3218_v56 = vrot.slane %v3216_v48, 4  ;;  %v3230_v0 = vrot.slane %v12270_v36, 5  ;;  %v8518_v49 = vld [vmem:[%s11263_s14 + $0x9c] sm:$0xe]  ;;  %v8520_v60 = vld [vmem:[%s11263_s14 + $0xb4] sm:$0xe] }
 0x25a   : > { %v8539_v21 = vcombine.low %v3168_v59, %v3171_v15  ;;  %v3217_v26 = vsel %vm11642_vm7, %v8530_v35, %v3216_v48  ;;  %v8532_v2 = vrot.slane %v8516_v5, 9  ;;  %v13800_v18 = vcombine.low %v12007_v34, %v13799_v58  ;;  %v13801_v34 = vld [vmem:[#allocation31_spill] sm:$0xff] }
 0x25b   : > { %v3220_v27 = vsel %vm11642_vm7, %v3218_v56, %v3219_v20  ;;  %v3232_v8 = vrot.slane %v3230_v0, 4  ;;  %v3244_v28 = vrot.slane %v12299_v37, 5  ;;  %v8534_v41 = vrot.slane %v8518_v49, 9  ;;  %v10559_v48 = vld [vmem:[%s11263_s14 + $0x54] sm:$0xff]   ;;  %v12529_v20 = vld [vmem:[%s11263_s14 + $0x70] sm:$0xf] }
 0x25c   : > { %v8546_v9 = vcombine.low %v3217_v26, %v3220_v27  ;;  %v3247_v19 = vrot.slane %v12322_v45, 5  ;;  %v13803_v59 = vcombine.low %v13801_v34, %v13802_v17  ;;  %v3258_v54 = vrot.slane %v12330_v23, 5  ;;  %v8721_v26 = vld [vmem:[%s11263_s14 + $0x6c] sm:$0xe]  ;;  %v12559_v17 = vld [vmem:[%s11263_s14 + $0x88] sm:$0xf] }
 0x25d   : > { %v3245_v15 = vsel %vm11642_vm7, %v8534_v41, %v3244_v28  ;;  %v8536_v11 = vrot.slane %v8520_v60, 9  ;;  %v3261_v7 = vrot.slane %v12350_v57, 5  ;;  %v10554_v57 = vld [vmem:[%s11263_s14 + $0x18] sm:$0xff]   ;;  %v13812_v52 = vcombine.low %v13810_v25, %v13811_v32  ;;  %v12569_v60 = vld [vmem:[%s11263_s14 + $0x28] sm:$0xf]  ;;  %v10569_v32 = vld [vmem:[%s11263_s14 + $0xcc] sm:$0xff]  }
 0x25e   : > { %9415 = vmatmul.mubr.msk.bf16.gmra.mrb[28].mxu1 %vm480_vm1, %v8487_v30  ;;  %v8542_v30 = vcombine.low %v3189_v55, %v3192_v22  ;;  %v3260_v42 = vrot.slane %v3258_v54, 4  ;;  %v10556_v55 = vld [vmem:[%s11263_s14 + $0x30] sm:$0xff]   ;;  %v4454_v22 = vsel %vm493_vm0, %v12410_v4, 0  ;;  %v4764_v27 = vrot.slane %v12529_v20, 5 }
 0x25f   : > { %9418 = vmatprep.mubr.msk.bf16.mxu1 %vm480_vm1, %v8488_v43  ;;  %v8528_v43 = vrot.slane %v8512_v12, 9  ;;  %v3259_v40 = vsel %vm11642_vm7, %v8536_v11, %v3258_v54  ;;  %v10557_v12 = vld [vmem:[%s11263_s14 + $0x3c] sm:$0xff]   ;;  %v8737_v5 = vrot.slane %v8721_v26, 9 }
 0x260   : > { %v3262_v23 = vsel %vm11642_vm7, %v3260_v42, %v3261_v7 }
 0x261   : > { %v3203_v14 = vsel %vm11642_vm7, %v8528_v43, %v3202_v61  ;;  %v8552_v16 = vcombine.low %v3259_v40, %v3262_v23  ;;  %v12496_v61 = vld [vmem:[#allocation12 + $0x10] sm:$0x3]  ;;  %v8719_v43 = vld [vmem:[%s11263_s14 + $0x54] sm:$0xe]  ;;  %v12545_v58 = vsel %vm11642_vm7, %v8737_v5, %v4764_v27 }
 0x262   : > { %v8544_v13 = vcombine.low %v3203_v14, %v3206_v39  ;;  %v8735_v14 = vrot.slane %v8719_v43, 9  ;;  %v12598_v43 = vld [vmem:[%s11263_s14 + $0x34] sm:$0xf] }
 0x266   : > { %9419 = vmatmul.mubr.msk.bf16.gmra.mrb[32].mxu1 %vm480_vm1, %v8489_v46  ;;  %v3233_v46 = vrot.slane %v12288_v53, 5  ;;  %v3246_v53 = vrot.slane %v3244_v28, 4 }
 0x267   : > { %9424 = vmatprep.mubr.msk.bf16.mxu1 %vm480_vm1, %v8538_v63  ;;  %v3231_v63 = vsel %vm11642_vm7, %v8532_v2, %v3230_v0  ;;  %v10561_v2 = vld [vmem:[%s11263_s14 + $0x6c] sm:$0xff]  }
 0x268   : > { %v3234_v36 = vsel %vm11642_vm7, %v3232_v8, %v3233_v46  ;;  %v3248_v37 = vsel %vm11642_vm7, %v3246_v53, %v3247_v19  ;;  %v8634_v8 = vld [vmem:[%s11263_s14 + $0x18] sm:$0xf]  ;;  %v12541_v46 = vld [vmem:[%s11263_s14 + $0x1c] sm:$0xf] }
 0x269   : > { %v8548_v6 = vcombine.low %v3231_v63, %v3234_v36  ;;  %v8550_v45 = vcombine.low %v3245_v15, %v3248_v37  ;;  %v8637_v63 = vld [vmem:[%s11263_s14 + $0x24] sm:$0xf]  ;;  %v3972_v49 = vshrl.u32 %v8634_v8, 16  ;;  %v3981_v41 = vshll.u32 %v12541_v46, 16 }
 0x26a   : > { %v3985_v53 = vshrl.u32 %v12541_v46, 16  ;;  %v3996_v19 = vshrl.u32 %v8637_v63, 16  ;;  %v3999_v34 = vshll.u32 %v8637_v63, 16  ;;  %v8723_v15 = vld [vmem:[%s11263_s14 + $0x84] sm:$0xe]  ;;  %v4778_v37 = vrot.slane %v12559_v17, 5 }
 0x26b   : > { %v3974_v11 = vrot.slane %v3972_v49, 4  ;;  %v12571_v7 = vrot.slane %v3981_v41, 5  ;;  %v8643_v41 = vld [vmem:[%s11263_s14 + $0x3c] sm:$0xf] }
 0x26c   : > { %v3987_v40 = vrot.slane %v3985_v53, 4  ;;  %v3998_v23 = vrot.slane %v3996_v19, 4  ;;  %v12618_v53 = vld [vmem:[%s11263_s14 + $0x40] sm:$0xf] }
 0x26e   : > { %9425 = vmatmul.mubr.msk.bf16.vlgmr.msra.gmra.mrb[4].mxu1 %vm480_vm1, %v8539_v21  ;;  %v13805_v21 = vld [vmem:[#allocation34_spill] sm:$0xff] }
 0x26f   : > { %9457 = vmatpush3.bf16.msra.mxu1 %v3728_v29  ;;  %9428 = vmatprep.mubr.msk.bf16.mxu1 %vm480_vm1, %v8540_v44  ;;  %v13806_v44 = vcombine.low %v13804_v51, %v13805_v21  ;;  %v13808_v29 = vld [vmem:[#allocation36_spill] sm:$0xff]  ;;  %v4780_v51 = vrot.slane %v4778_v37, 4 }
 0x270   : > { %10387 = vmatprep.subr.msk.bf16.mxu1 %vm493_vm0, %v12410_v4  ;;  %v13809_v62 = vcombine.low %v13807_v3, %v13808_v29  ;;  %v12509_v4 = vld [vmem:[%s11263_s14 + $0x5c] sm:$0x1]  ;;  %v10563_v21 = vld [vmem:[%s11263_s14 + $0x84] sm:$0xff]   ;;  %v10564_v29 = vld [vmem:[%s11263_s14 + $0x90] sm:$0xff]  }
 0x271   : > { %v4753_v50 = vrot.slane %v12509_v4, 5 }
 0x276   : > { %9429 = vmatmul.mubr.msk.bf16.gmra.mrb[8].mxu1 %vm480_vm1, %v8541_v10  ;;  %v10558_v10 = vld [vmem:[%s11263_s14 + $0x48] sm:$0xff]  }
 0x277   : > { %9432 = vmatprep.mubr.msk.bf16.mxu1 %vm480_vm1, %v8542_v30  ;;  %v12506_v30 = vld [vmem:[%s11263_s14 + $0x58] sm:$0xf] }
 0x278   : > { %v4750_v47 = vrot.slane %v12506_v30, 5 }
 0x27a   : > { %v4752_v39 = vrot.slane %v4750_v47, 4  ;;  %v12518_v31 = vsel %vm11642_vm7, %v8735_v14, %v4750_v47  ;;  %v12601_v47 = vld [vmem:[%s11263_s14 + $0xa0] sm:$0xf] }
 0x27c   : > { %v12523_v35 = vsel %vm11642_vm7, %v4752_v39, %v4753_v50  ;;  %v12604_v50 = vld [vmem:[%s11263_s14 + $0xa4] sm:$0x1] }
 0x27d   : > { %v4795_v26 = vrot.slane %v12604_v50, 5 }
 0x27e   : > { %9433 = vmatmul.mubr.msk.bf16.gmra.mrb[12].mxu1 %vm480_vm1, %v13798_v1  ;;  %v12532_v1 = vld [vmem:[%s11263_s14 + $0x74] sm:$0x1] }
 0x27f   : > { %9436 = vmatprep.mubr.msk.bf16.mxu1 %vm480_vm1, %v8544_v13  ;;  %v10560_v13 = vld [vmem:[%s11263_s14 + $0x60] sm:$0xff]   ;;  %v4767_v0 = vrot.slane %v12532_v1, 5 }
 0x286   : > { %9437 = vmatmul.mubr.msk.bf16.gmra.mrb[16].mxu1 %vm480_vm1, %v13800_v18  ;;  %v10562_v18 = vld [vmem:[%s11263_s14 + $0x78] sm:$0xff]  }
 0x287   : > { %9440 = vmatprep.mubr.msk.bf16.mxu1 %vm480_vm1, %v8546_v9  ;;  %v4766_v9 = vrot.slane %v4764_v27, 4 }
 0x289   : > { %v12551_v36 = vsel %vm11642_vm7, %v4766_v9, %v4767_v0 }
 0x28a   : > { %13813 = vst [vmem:[#allocation30_spill] sm:$0xff] %v12551_v36  ;;  %v12788_v36 = vld [vmem:[%s11263_s14 + $0x80] sm:$0x1] }
 0x28e   : > { %9441 = vmatmul.mubr.msk.bf16.gmra.mrb[20].mxu1 %vm480_vm1, %v13803_v59  ;;  %v12562_v59 = vld [vmem:[%s11263_s14 + $0x8c] sm:$0x1] }
 0x28f   : > { %9444 = vmatprep.mubr.msk.bf16.mxu1 %vm480_vm1, %v8548_v6  ;;  %v3975_v6 = vshll.u32 %v8634_v8, 16  ;;  %v4781_v54 = vrot.slane %v12562_v59, 5 }
 0x291   : > { %v3977_v42 = vrot.slane %v3975_v6, 5  ;;  %v12586_v25 = vsel %vm11642_vm7, %v4780_v51, %v4781_v54  ;;  %v4033_v6 = vshrl.u32 %v12598_v43, 16 }
 0x292   : > { %13815 = vst [vmem:[#allocation32_spill] sm:$0xff] %v12586_v25 }
 0x296   : > { %9445 = vmatmul.mubr.msk.bf16.gmra.mrb[24].mxu1 %vm480_vm1, %v13806_v44  ;;  %v12575_v44 = vld [vmem:[%s11263_s14 + $0x20] sm:$0x1] }
 0x297   : > { %9448 = vmatprep.mubr.msk.bf16.mxu1 %vm480_vm1, %v8550_v45  ;;  %v8739_v45 = vrot.slane %v8723_v15, 9 }
 0x299   : > { %v12579_v3 = vsel %vm11642_vm7, %v8739_v45, %v4778_v37 }
 0x29a   : > { %13814 = vst [vmem:[#allocation31_spill] sm:$0xff] %v12579_v3 }
 0x29e   : > { %9449 = vmatmul.mubr.msk.bf16.gmra.mrb[28].mxu1 %vm480_vm1, %v13809_v62  ;;  %v4005_v62 = vshll.u32 %v12569_v60, 16 }
 0x29f   : > { %9452 = vmatprep.mubr.msk.bf16.mxu1 %vm480_vm1, %v8552_v16  ;;  %v4001_v16 = vrot.slane %v3999_v34, 5  ;;  %v10566_v34 = vld [vmem:[%s11263_s14 + $0xa8] sm:$0xff]  }
 0x2a0   : > { %v12607_v14 = vrot.slane %v4005_v62, 5  ;;  %v4053_v62 = vshll.u32 %v12618_v53, 16 }
 0x2a6   : > { %9453 = vmatmul.mubr.msk.bf16.gmra.mrb[32].mxu1 %vm480_vm1, %v13812_v52  ;;  %v3978_v52 = vor.u32 %v3977_v42, %v3974_v11 }
 0x2a7   : > { %9458 = vmatprep.mubr.msk.bf16.mxu1 %vm480_vm1, %v10554_v57  ;;  %v4009_v57 = vshrl.u32 %v12569_v60, 16 }
 0x2a8   : > { %v3979_v8 = vrot.slane %v3978_v52, 4  ;;  %v4057_v52 = vshrl.u32 %v12618_v53, 16 }
 0x2a9   : > { %v4011_v39 = vrot.slane %v4009_v57, 4  ;;  %v4035_v57 = vrot.slane %v4033_v6, 4 }
 0x2ab   : > { %v4012_v54 = vor.u32 %v4011_v39, %v12607_v14  ;;  %v8646_v39 = vld [vmem:[%s11263_s14 + $0x48] sm:$0xf] }
 0x2ae   : > { %9459 = vmatmul.mubr.msk.bf16.vlgmr.msra.gmra.mrb[4].mxu1 %vm480_vm1, %v10555_v24  ;;  %v3991_v24 = vshll.u32 %v12575_v44, 16 }
 0x2af   : > { %9491 = vmatpush3.bf16.msra.mxu1 %v4454_v22  ;;  %9462 = vmatprep.mubr.msk.bf16.mxu1 %vm480_vm1, %v10556_v55  ;;  %v12592_v55 = vld [vmem:[%s11263_s14 + $0x2c] sm:$0x1]  ;;  %v8640_v22 = vld [vmem:[%s11263_s14 + $0x30] sm:$0xf] }
 0x2b0   : > { %10388 = vmatprep.subr.msk.bf16.mxu1 %vm493_vm0, %v12496_v61  ;;  %v4015_v27 = vshll.u32 %v12592_v55, 16  ;;  %v4020_v0 = vshrl.u32 %v8640_v22, 16  ;;  %v4023_v5 = vshll.u32 %v8640_v22, 16  ;;  %v3993_v15 = vrot.slane %v3991_v24, 5  ;;  %v12645_v24 = vld [vmem:[%s11263_s14 + $0xb8] sm:$0xf] }
 0x2b1   : > { %v12648_v22 = vld [vmem:[%s11263_s14 + $0xbc] sm:$0x1]  ;;  %v4725_v33 = vrot.slane %v12592_v55, 5 }
 0x2b2   : > { %v12632_v11 = vrot.slane %v4015_v27, 5  ;;  %v4022_v42 = vrot.slane %v4020_v0, 4  ;;  %v4025_v51 = vrot.slane %v4023_v5, 5  ;;  %v12660_v27 = vrot.slane %v4012_v54, 4 }
 0x2b4   : > { %v4026_v0 = vor.u32 %v4025_v51, %v4022_v42  ;;  %v10568_v42 = vld [vmem:[%s11263_s14 + $0xc0] sm:$0xff]   ;;  %v4071_v51 = vshll.u32 %v8646_v39, 16 }
 0x2b6   : > { %9463 = vmatmul.mubr.msk.bf16.gmra.mrb[8].mxu1 %vm480_vm1, %v10557_v12  ;;  %v3988_v12 = vor.u32 %v3987_v40, %v12571_v7  ;;  %v12637_v40 = vld [vmem:[%s11263_s14 + $0x38] sm:$0x1] }
 0x2b7   : > { %9466 = vmatprep.mubr.msk.bf16.mxu1 %vm480_vm1, %v10558_v10  ;;  %v4002_v10 = vor.u32 %v4001_v16, %v3998_v23  ;;  %v4044_v16 = vshrl.u32 %v8643_v41, 16  ;;  %v4039_v5 = vshll.u32 %v12637_v40, 16 }
 0x2b8   : > { %v3989_v49 = vrot.slane %v3988_v12, 4  ;;  %v3984_v12 = vsel %vm11333_vm4, %v3979_v8, %v12571_v7 }
 0x2b9   : > { %v12625_v37 = vrot.slane %v4002_v10, 4  ;;  %v4046_v7 = vrot.slane %v4044_v16, 4 }
 0x2ba   : > { %v3994_v10 = vsel %vm11333_vm4, %v3989_v49, %v3993_v15  ;;  %v10567_v49 = vld [vmem:[%s11263_s14 + $0xb4] sm:$0xff]   ;;  %v4068_v15 = vshrl.u32 %v8646_v39, 16  ;;  %v4027_v39 = vrot.slane %v4026_v0, 4 }
 0x2bb   : > { %v12702_v0 = vld [vmem:[%s11263_s14 + $0xd4] sm:$0x1] }
 0x2be   : > { %9467 = vmatmul.mubr.msk.bf16.gmra.mrb[12].mxu1 %vm480_vm1, %v10559_v48  ;;  %v8725_v48 = vld [vmem:[%s11263_s14 + $0x9c] sm:$0xe] }
 0x2bf   : > { %9470 = vmatprep.mubr.msk.bf16.mxu1 %vm480_vm1, %v10560_v13  ;;  %v4792_v13 = vrot.slane %v12601_v47, 5  ;;  %v8741_v9 = vrot.slane %v8725_v48, 9  ;;  %v8727_v48 = vld [vmem:[%s11263_s14 + $0xb4] sm:$0xe] }
 0x2c1   : > { %v4794_v63 = vrot.slane %v4792_v13, 4  ;;  %v12622_v19 = vsel %vm11642_vm7, %v8741_v9, %v4792_v13  ;;  %v4806_v13 = vrot.slane %v12645_v24, 5  ;;  %v12664_v9 = vld [vmem:[%s11263_s14 + $0x4c] sm:$0xf] }
 0x2c2   : > { %13816 = vst [vmem:[#allocation33_spill] sm:$0xff] %v12622_v19  ;;  %v4077_v16 = vshll.u32 %v12664_v9, 16 }
 0x2c3   : > { %v12630_v45 = vsel %vm11642_vm7, %v4794_v63, %v4795_v26  ;;  %v4809_v26 = vrot.slane %v12648_v22, 5  ;;  %v4808_v63 = vrot.slane %v4806_v13, 4 }
 0x2c4   : > { %13817 = vst [vmem:[#allocation34_spill] sm:$0xff] %v12630_v45 }
 0x2c6   : > { %9471 = vmatmul.mubr.msk.bf16.gmra.mrb[16].mxu1 %vm480_vm1, %v10561_v2  ;;  %v10565_v2 = vld [vmem:[%s11263_s14 + $0x9c] sm:$0xff]  }
 0x2c7   : > { %9474 = vmatprep.mubr.msk.bf16.mxu1 %vm480_vm1, %v10562_v18  ;;  %v4029_v18 = vshll.u32 %v12598_v43, 16 }
 0x2c9   : > { %v12639_v23 = vrot.slane %v4029_v18, 5  ;;  %v12666_v18 = vrot.slane %v4053_v62, 5  ;;  %v8682_v62 = vcombine.low %v3984_v12, %v3994_v10  ;;  %v4070_v10 = vrot.slane %v4068_v15, 4 }
 0x2cb   : > { %v4036_v6 = vor.u32 %v4035_v57, %v12639_v23  ;;  %v4008_v57 = vsel %vm11333_vm4, %v12625_v37, %v12607_v14  ;;  %v4018_v14 = vsel %vm11333_vm4, %v12660_v27, %v12632_v11  ;;  %v4823_v11 = vrot.slane %v12702_v0, 5  ;;  %v12711_v27 = vld [vmem:[%s11263_s14 + $0x50] sm:$0x1] }
 0x2cd   : > { %v4037_v37 = vrot.slane %v4036_v6, 4 }
 0x2ce   : > { %9475 = vmatmul.mubr.msk.bf16.gmra.mrb[20].mxu1 %vm480_vm1, %v10563_v21 }
 0x2cf   : > { %9478 = vmatprep.mubr.msk.bf16.mxu1 %vm480_vm1, %v10564_v29  ;;  %v4047_v29 = vshll.u32 %v8643_v41, 16  ;;  %v12671_v41 = vld [vmem:[%s11263_s14 + $0x44] sm:$0x1] }
 0x2d1   : > { %v4049_v8 = vrot.slane %v4047_v29, 5  ;;  %v12681_v29 = vsel %vm11642_vm7, %v4808_v63, %v4809_v26  ;;  %v4063_v26 = vshll.u32 %v12671_v41, 16  ;;  %v8649_v63 = vld [vmem:[%s11263_s14 + $0x54] sm:$0xf] }
 0x2d2   : > { %13819 = vst [vmem:[#allocation36_spill] sm:$0xff] %v12681_v29  ;;  %v4095_v15 = vshll.u32 %v8649_v63, 16  ;;  %v4101_v29 = vshll.u32 %v12506_v30, 16 }
 0x2d6   : > { %9479 = vmatmul.mubr.msk.bf16.gmra.mrb[24].mxu1 %vm480_vm1, %v10565_v2  ;;  %v8743_v2 = vrot.slane %v8727_v48, 9  ;;  %v12699_v48 = vld [vmem:[%s11263_s14 + $0xd0] sm:$0xf] }
 0x2d7   : > { %9482 = vmatprep.mubr.msk.bf16.mxu1 %vm480_vm1, %v10566_v34  ;;  %v4059_v34 = vrot.slane %v4057_v52, 4  ;;  %v4081_v52 = vshrl.u32 %v12664_v9, 16 }
 0x2d8   : > { %v12675_v54 = vsel %vm11642_vm7, %v8743_v2, %v4806_v13  ;;  %v4041_v13 = vrot.slane %v4039_v5, 5  ;;  %v4050_v2 = vor.u32 %v4049_v8, %v4046_v7  ;;  %v4073_v5 = vrot.slane %v4071_v51, 5  ;;  %v8729_v8 = vld [vmem:[%s11263_s14 + $0xcc] sm:$0xe] }
 0x2d9   : > { %13818 = vst [vmem:[#allocation35_spill] sm:$0xff] %v12675_v54  ;;  %v4060_v12 = vor.u32 %v4059_v34, %v12666_v18  ;;  %v12705_v7 = vrot.slane %v4077_v16, 5  ;;  %v4083_v6 = vrot.slane %v4081_v52, 4  ;;  %v4092_v34 = vshrl.u32 %v8649_v63, 16  ;;  %v8652_v54 = vld [vmem:[%s11263_s14 + $0x60] sm:$0xf] }
 0x2da   : > { %v8745_v21 = vrot.slane %v8729_v8, 9  ;;  %v12717_v51 = vrot.slane %v4050_v2, 4  ;;  %v12719_v16 = vrot.slane %v4063_v26, 5  ;;  %v4042_v56 = vsel %vm11333_vm4, %v4037_v37, %v4041_v13  ;;  %v12727_v63 = vld [vmem:[%s11263_s14 + $0x64] sm:$0xf] }
 0x2db   : > { %v4105_v52 = vshrl.u32 %v12506_v30, 16  ;;  %v4087_v2 = vshll.u32 %v12711_v27, 16  ;;  %v4084_v13 = vor.u32 %v4083_v6, %v12705_v7  ;;  %v4094_v37 = vrot.slane %v4092_v34, 4 }
 0x2dc   : > { %v4097_v30 = vrot.slane %v4095_v15, 5 }
 0x2dd   : > { %v4107_v6 = vrot.slane %v4105_v52, 4  ;;  %v4085_v15 = vrot.slane %v4084_v13, 4  ;;  %v4153_v13 = vshrl.u32 %v12529_v20, 16 }
 0x2de   : > { %9483 = vmatmul.mubr.msk.bf16.gmra.mrb[28].mxu1 %vm480_vm1, %v10567_v49  ;;  %v4820_v49 = vrot.slane %v12699_v48, 5  ;;  %v4098_v52 = vor.u32 %v4097_v30, %v4094_v37 }
 0x2df   : > { %9486 = vmatprep.mubr.msk.bf16.mxu1 %vm480_vm1, %v10568_v42  ;;  %v4032_v42 = vsel %vm11333_vm4, %v4027_v39, %v12639_v23  ;;  %v12733_v23 = vrot.slane %v4060_v12, 4  ;;  %v4074_v39 = vor.u32 %v4073_v5, %v4070_v10  ;;  %v4125_v12 = vshll.u32 %v12727_v63, 16 }
 0x2e0   : > { %v4822_v28 = vrot.slane %v4820_v49, 4  ;;  %v12731_v8 = vsel %vm11642_vm7, %v8745_v21, %v4820_v49  ;;  %v4116_v21 = vshrl.u32 %v8652_v54, 16  ;;  %v4119_v49 = vshll.u32 %v8652_v54, 16 }
 0x2e1   : > { %13820 = vst [vmem:[#allocation37_spill] sm:$0xff] %v12731_v8  ;;  %v4129_v10 = vshrl.u32 %v12727_v63, 16  ;;  %v4924_v5 = vsel %vm493_vm0, %v12496_v61, 0  ;;  %v8684_v34 = vcombine.low %v4032_v42, %v4042_v56  ;;  %v4056_v54 = vsel %vm11333_vm4, %v12717_v51, %v12666_v18  ;;  %v8655_v61 = vld [vmem:[%s11263_s14 + $0x6c] sm:$0xf] }
 0x2e2   : > { %v12738_v26 = vsel %vm11642_vm7, %v4822_v28, %v4823_v11  ;;  %v8683_v28 = vcombine.low %v4008_v57, %v4018_v14  ;;  %v12748_v11 = vrot.slane %v4101_v29, 5  ;;  %v4089_v57 = vrot.slane %v4087_v2, 5  ;;  %v12760_v14 = vld [vmem:[%s11263_s14 + $0x68] sm:$0x1]  ;;  %v8658_v56 = vld [vmem:[%s11263_s14 + $0x78] sm:$0xf] }
 0x2e3   : > { %13821 = vst [vmem:[#allocation38_spill] sm:$0xff] %v12738_v26  ;;  %v4075_v29 = vrot.slane %v4074_v39, 4  ;;  %v4118_v42 = vrot.slane %v4116_v21, 4  ;;  %v4121_v45 = vrot.slane %v4119_v49, 5  ;;  %v12765_v26 = vrot.slane %v4125_v12, 5 }
 0x2e4   : > { %v4131_v18 = vrot.slane %v4129_v10, 4  ;;  %v12768_v51 = vld [vmem:[%s11263_s14 + $0x7c] sm:$0xf]  ;;  %v4108_v8 = vor.u32 %v4107_v6, %v12748_v11  ;;  %v4143_v2 = vshll.u32 %v8655_v61, 16  ;;  %v4149_v39 = vshll.u32 %v12529_v20, 16 }
 0x2e5   : > { %v4167_v37 = vshll.u32 %v8658_v56, 16  ;;  %v4080_v30 = vsel %vm11333_vm4, %v4075_v29, %v12705_v7  ;;  %v4090_v21 = vsel %vm11333_vm4, %v4085_v15, %v4089_v57  ;;  %v4173_v49 = vshll.u32 %v12768_v51, 16  ;;  %v8661_v20 = vld [vmem:[%s11263_s14 + $0x84] sm:$0xf] }
 0x2e6   : > { %9487 = vmatmul.mubr.msk.bf16.gmra.mrb[32].mxu1 %vm480_vm1, %v10569_v32  ;;  %v4066_v32 = vsel %vm11333_vm4, %v12733_v23, %v12719_v16  ;;  %v4135_v16 = vshll.u32 %v12760_v14, 16  ;;  %v4140_v23 = vshrl.u32 %v8655_v61, 16  ;;  %v4177_v12 = vshrl.u32 %v12768_v51, 16 }
 0x2e7   : > { %9492 = vmatprep.mubr.msk.bf16.mxu1 %vm480_vm1, %v8682_v62  ;;  %v4111_v62 = vshll.u32 %v12509_v4, 16  ;;  %v4164_v4 = vshrl.u32 %v8658_v56, 16  ;;  %v4099_v10 = vrot.slane %v4098_v52, 4  ;;  %v4122_v61 = vor.u32 %v4121_v45, %v4118_v42 }
 0x2e8   : > { %v4132_v19 = vor.u32 %v4131_v18, %v12765_v26  ;;  %v4109_v56 = vrot.slane %v4108_v8, 4  ;;  %v4137_v25 = vrot.slane %v4135_v16, 5  ;;  %v4142_v3 = vrot.slane %v4140_v23, 4 }
 0x2e9   : > { %v4113_v6 = vrot.slane %v4111_v62, 5  ;;  %v4145_v7 = vrot.slane %v4143_v2, 5  ;;  %v12785_v57 = vrot.slane %v4149_v39, 5  ;;  %v4155_v29 = vrot.slane %v4153_v13, 4 }
 0x2ea   : > { %v4166_v15 = vrot.slane %v4164_v4, 4  ;;  %v4169_v52 = vrot.slane %v4167_v37, 5  ;;  %v12790_v45 = vrot.slane %v4173_v49, 5  ;;  %v4179_v62 = vrot.slane %v4177_v12, 4  ;;  %v8664_v49 = vld [vmem:[%s11263_s14 + $0x90] sm:$0xf] }
 0x2eb   : > { %v4191_v8 = vshll.u32 %v8661_v20, 16  ;;  %v4123_v42 = vrot.slane %v4122_v61, 4  ;;  %v4133_v18 = vrot.slane %v4132_v19, 4  ;;  %v8685_v16 = vcombine.low %v4056_v54, %v4066_v32  ;;  %v12804_v12 = vld [vmem:[%s11263_s14 + $0x94] sm:$0xf] }
 0x2ec   : > { %v8686_v23 = vcombine.low %v4080_v30, %v4090_v21  ;;  %v4104_v2 = vsel %vm11333_vm4, %v4099_v10, %v12748_v11  ;;  %v4114_v39 = vsel %vm11333_vm4, %v4109_v56, %v4113_v6  ;;  %v4146_v13 = vor.u32 %v4145_v7, %v4142_v3 }
 0x2ed   : > { %v4156_v4 = vor.u32 %v4155_v29, %v12785_v57  ;;  %v4159_v37 = vshll.u32 %v12532_v1, 16  ;;  %v4183_v19 = vshll.u32 %v12788_v36, 16  ;;  %v4180_v54 = vor.u32 %v4179_v62, %v12790_v45 }
 0x2ee   : > { %9493 = vmatmul.mubr.msk.bf16.vlgmr.msra.gmra.mrb[4].mxu1 %vm480_vm1, %v8683_v28  ;;  %v4188_v28 = vshrl.u32 %v8661_v20, 16  ;;  %v4193_v30 = vrot.slane %v4191_v8, 5  ;;  %v4128_v11 = vsel %vm11333_vm4, %v4123_v42, %v12765_v26  ;;  %v4138_v3 = vsel %vm11333_vm4, %v4133_v18, %v4137_v25 }
 0x2ef   : > { %9525 = vmatpush3.bf16.msra.mxu1 %v4924_v5  ;;  %9496 = vmatprep.mubr.msk.bf16.mxu1 %vm480_vm1, %v8684_v34  ;;  %v4197_v5 = vshll.u32 %v12559_v17, 16  ;;  %v4201_v34 = vshrl.u32 %v12559_v17, 16  ;;  %v4170_v17 = vor.u32 %v4169_v52, %v4166_v15  ;;  %v4212_v10 = vshrl.u32 %v8664_v49, 16 }
 0x2f0   : > { %v4190_v32 = vrot.slane %v4188_v28, 4  ;;  %v4215_v6 = vshll.u32 %v8664_v49, 16  ;;  %v4221_v61 = vshll.u32 %v12804_v12, 16  ;;  %v4225_v20 = vshrl.u32 %v12804_v12, 16  ;;  %v8667_v28 = vld [vmem:[%s11263_s14 + $0x9c] sm:$0xf] }
 0x2f1   : > { %v12812_v21 = vrot.slane %v4197_v5, 5  ;;  %v4203_v1 = vrot.slane %v4201_v34, 4  ;;  %v4147_v56 = vrot.slane %v4146_v13, 4  ;;  %v4157_v26 = vrot.slane %v4156_v4, 4  ;;  %v12822_v5 = vld [vmem:[%s11263_s14 + $0x98] sm:$0x1] }
 0x2f2   : > { %v4161_v7 = vrot.slane %v4159_v37, 5  ;;  %v4185_v29 = vrot.slane %v4183_v19, 5  ;;  %v4171_v25 = vrot.slane %v4170_v17, 4  ;;  %v4181_v15 = vrot.slane %v4180_v54, 4 }
 0x2f3   : > { %v4194_v52 = vor.u32 %v4193_v30, %v4190_v32  ;;  %v4207_v62 = vshll.u32 %v12562_v59, 16  ;;  %v8687_v8 = vcombine.low %v4104_v2, %v4114_v39  ;;  %v8688_v42 = vcombine.low %v4128_v11, %v4138_v3  ;;  %v8670_v2 = vld [vmem:[%s11263_s14 + $0xa8] sm:$0xf]  ;;  %v12833_v39 = vld [vmem:[%s11263_s14 + $0xac] sm:$0xf] }
 0x2f4   : > { %v4204_v18 = vor.u32 %v4203_v1, %v12812_v21  ;;  %v4214_v34 = vrot.slane %v4212_v10, 4  ;;  %v4227_v13 = vrot.slane %v4225_v20, 4  ;;  %v4152_v4 = vsel %vm11333_vm4, %v4147_v56, %v12785_v57 }
 0x2f5   : > { %v4162_v37 = vsel %vm11333_vm4, %v4157_v26, %v4161_v7  ;;  %v4236_v59 = vshrl.u32 %v8667_v28, 16  ;;  %v4239_v19 = vshll.u32 %v8667_v28, 16  ;;  %v4176_v49 = vsel %vm11333_vm4, %v4171_v25, %v12790_v45  ;;  %v12856_v28 = vld [vmem:[%s11263_s14 + $0xb0] sm:$0x1] }
 0x2f6   : > { %9497 = vmatmul.mubr.msk.bf16.gmra.mrb[8].mxu1 %vm480_vm1, %v8685_v16  ;;  %v4217_v16 = vrot.slane %v4215_v6, 5  ;;  %v4186_v17 = vsel %vm11333_vm4, %v4181_v15, %v4185_v29  ;;  %v4195_v54 = vrot.slane %v4194_v52, 4  ;;  %v4209_v32 = vrot.slane %v4207_v62, 5 }
 0x2f7   : > { %9500 = vmatprep.mubr.msk.bf16.mxu1 %vm480_vm1, %v8686_v23  ;;  %v12824_v23 = vrot.slane %v4221_v61, 5  ;;  %v4205_v30 = vrot.slane %v4204_v18, 4  ;;  %v4231_v57 = vshll.u32 %v12822_v5, 16  ;;  %v4245_v11 = vshll.u32 %v12601_v47, 16 }
 0x2f8   : > { %v4249_v3 = vshrl.u32 %v12601_v47, 16  ;;  %v4260_v1 = vshrl.u32 %v8670_v2, 16  ;;  %v4263_v10 = vshll.u32 %v8670_v2, 16  ;;  %v4269_v6 = vshll.u32 %v12833_v39, 16 }
 0x2f9   : > { %v4273_v45 = vshrl.u32 %v12833_v39, 16  ;;  %v4218_v61 = vor.u32 %v4217_v16, %v4214_v34  ;;  %v4228_v20 = vor.u32 %v4227_v13, %v12824_v23  ;;  %v4238_v56 = vrot.slane %v4236_v59, 4  ;;  %v8673_v16 = vld [vmem:[%s11263_s14 + $0xb4] sm:$0xf] }
 0x2fa   : > { %v4241_v26 = vrot.slane %v4239_v19, 5  ;;  %v8689_v7 = vcombine.low %v4152_v4, %v4162_v37  ;;  %v8690_v29 = vcombine.low %v4176_v49, %v4186_v17  ;;  %v4200_v47 = vsel %vm11333_vm4, %v4195_v54, %v12812_v21  ;;  %v8676_v54 = vld [vmem:[%s11263_s14 + $0xc0] sm:$0xf] }
 0x2fb   : > { %v4210_v25 = vsel %vm11333_vm4, %v4205_v30, %v4209_v32  ;;  %v4233_v15 = vrot.slane %v4231_v57, 5  ;;  %v12853_v52 = vrot.slane %v4245_v11, 5  ;;  %v4251_v62 = vrot.slane %v4249_v3, 4  ;;  %v12864_v32 = vld [vmem:[%s11263_s14 + $0xc4] sm:$0xf] }
 0x2fc   : > { %v4271_v18 = vrot.slane %v4269_v6, 5  ;;  %v4275_v34 = vrot.slane %v4273_v45, 4  ;;  %v4219_v13 = vrot.slane %v4218_v61, 4  ;;  %v4229_v4 = vrot.slane %v4228_v20, 4 }
 0x2fd   : > { %v4242_v37 = vor.u32 %v4241_v26, %v4238_v56  ;;  %v4255_v21 = vshll.u32 %v12604_v50, 16  ;;  %v4279_v59 = vshll.u32 %v12856_v28, 16  ;;  %v8691_v19 = vcombine.low %v4200_v47, %v4210_v25 }
 0x2fe   : > { %9501 = vmatmul.mubr.msk.bf16.gmra.mrb[12].mxu1 %vm480_vm1, %v8687_v8  ;;  %v4262_v8 = vrot.slane %v4260_v1, 4  ;;  %v4252_v2 = vor.u32 %v4251_v62, %v12853_v52  ;;  %v4284_v49 = vshrl.u32 %v8673_v16, 16  ;;  %v4287_v17 = vshll.u32 %v8673_v16, 16 }
 0x2ff   : > { %9504 = vmatprep.mubr.msk.bf16.mxu1 %vm480_vm1, %v8688_v42  ;;  %v4265_v42 = vrot.slane %v4263_v10, 5  ;;  %v4276_v57 = vor.u32 %v4275_v34, %v4271_v18  ;;  %v4293_v11 = vshll.u32 %v12645_v24, 16  ;;  %v4297_v3 = vshrl.u32 %v12645_v24, 16 }
 0x300   : > { %v4224_v50 = vsel %vm11333_vm4, %v4219_v13, %v12824_v23  ;;  %v4234_v1 = vsel %vm11333_vm4, %v4229_v4, %v4233_v15  ;;  %v4243_v10 = vrot.slane %v4242_v37, 4  ;;  %v4257_v6 = vrot.slane %v4255_v21, 5  ;;  %v8679_v13 = vld [vmem:[%s11263_s14 + $0xcc] sm:$0xf] }
 0x301   : > { %v4266_v30 = vor.u32 %v4265_v42, %v4262_v8  ;;  %v4308_v45 = vshrl.u32 %v8676_v54, 16  ;;  %v4311_v61 = vshll.u32 %v8676_v54, 16  ;;  %v4317_v20 = vshll.u32 %v12864_v32, 16 }
 0x302   : > { %v4321_v56 = vshrl.u32 %v12864_v32, 16  ;;  %v4253_v26 = vrot.slane %v4252_v2, 4  ;;  %v4281_v24 = vrot.slane %v4279_v59, 5  ;;  %v4277_v25 = vrot.slane %v4276_v57, 4  ;;  %v12884_v59 = vld [vmem:[%s11263_s14 + $0xc8] sm:$0x1] }
 0x303   : > { %v4267_v47 = vrot.slane %v4266_v30, 4  ;;  %v4295_v23 = vrot.slane %v4293_v11, 5  ;;  %v4299_v62 = vrot.slane %v4297_v3, 4  ;;  %v8692_v8 = vcombine.low %v4224_v50, %v4234_v1 }
 0x304   : > { %v4310_v15 = vrot.slane %v4308_v45, 4  ;;  %v4313_v42 = vrot.slane %v4311_v61, 5  ;;  %v4319_v34 = vrot.slane %v4317_v20, 5  ;;  %v4323_v16 = vrot.slane %v4321_v56, 4 }
 0x305   : > { %v4248_v4 = vsel %vm11333_vm4, %v4243_v10, %v12853_v52  ;;  %v4258_v37 = vsel %vm11333_vm4, %v4253_v26, %v4257_v6  ;;  %v4272_v2 = vsel %vm11333_vm4, %v4267_v47, %v4271_v18  ;;  %v4303_v54 = vshll.u32 %v12648_v22, 16 }
 0x306   : > { %9505 = vmatmul.mubr.msk.bf16.gmra.mrb[16].mxu1 %vm480_vm1, %v8689_v7  ;;  %v4286_v7 = vrot.slane %v4284_v49, 4  ;;  %v4282_v49 = vsel %vm11333_vm4, %v4277_v25, %v4281_v24  ;;  %v4332_v52 = vshrl.u32 %v8679_v13, 16  ;;  %v4335_v30 = vshll.u32 %v8679_v13, 16 }
 0x307   : > { %9508 = vmatprep.mubr.msk.bf16.mxu1 %vm480_vm1, %v8690_v29  ;;  %v4289_v29 = vrot.slane %v4287_v17, 5  ;;  %v4300_v17 = vor.u32 %v4299_v62, %v4295_v23  ;;  %v4341_v57 = vshll.u32 %v12699_v48, 16  ;;  %v4345_v11 = vshrl.u32 %v12699_v48, 16 }
 0x308   : > { %v4314_v3 = vor.u32 %v4313_v42, %v4310_v15  ;;  %v4324_v50 = vor.u32 %v4323_v16, %v4319_v34  ;;  %v8693_v1 = vcombine.low %v4248_v4, %v4258_v37  ;;  %v8694_v18 = vcombine.low %v4272_v2, %v4282_v49  ;;  %v8714_v16 = vld [vmem:[%s11263_s14 + $0x18] sm:$0xe] }
 0x309   : > { %v4290_v21 = vor.u32 %v4289_v29, %v4286_v7  ;;  %v4301_v6 = vrot.slane %v4300_v17, 4  ;;  %v4305_v45 = vrot.slane %v4303_v54, 5  ;;  %v4334_v61 = vrot.slane %v4332_v52, 4 }
 0x30a   : > { %v4337_v20 = vrot.slane %v4335_v30, 5  ;;  %v4343_v22 = vrot.slane %v4341_v57, 5  ;;  %v4347_v56 = vrot.slane %v4345_v11, 4  ;;  %v4315_v26 = vrot.slane %v4314_v3, 4  ;;  %v8715_v30 = vld [vmem:[%s11263_s14 + $0x24] sm:$0xe] }
 0x30b   : > { %v4291_v10 = vrot.slane %v4290_v21, 4  ;;  %v4325_v24 = vrot.slane %v4324_v50, 4  ;;  %v4306_v29 = vsel %vm11333_vm4, %v4301_v6, %v4305_v45  ;;  %v4351_v62 = vshll.u32 %v12702_v0, 16  ;;  %v8716_v57 = vld [vmem:[%s11263_s14 + $0x30] sm:$0xe] }
 0x30c   : > { %v4338_v47 = vor.u32 %v4337_v20, %v4334_v61  ;;  %v4348_v25 = vor.u32 %v4347_v56, %v4343_v22  ;;  %v4715_v42 = vrot.slane %v12541_v46, 5  ;;  %v8730_v2 = vrot.slane %v8714_v16, 9  ;;  %v8717_v61 = vld [vmem:[%s11263_s14 + $0x3c] sm:$0xe]  ;;  %v8718_v20 = vld [vmem:[%s11263_s14 + $0x48] sm:$0xe] }
 0x30d   : > { %v4296_v48 = vsel %vm11333_vm4, %v4291_v10, %v4295_v23  ;;  %v4353_v21 = vrot.slane %v4351_v62, 5  ;;  %v4718_v0 = vrot.slane %v12575_v44, 5  ;;  %v4722_v17 = vrot.slane %v12569_v60, 5 }
 0x30e   : > { %9509 = vmatmul.mubr.msk.bf16.gmra.mrb[20].mxu1 %vm480_vm1, %v8691_v19  ;;  %v4327_v19 = vshll.u32 %v12884_v59, 16  ;;  %v8695_v23 = vcombine.low %v4296_v48, %v4306_v29  ;;  %v4339_v4 = vrot.slane %v4338_v47, 4  ;;  %v4349_v37 = vrot.slane %v4348_v25, 4 }
 0x30f   : > { %9512 = vmatprep.mubr.msk.bf16.mxu1 %vm480_vm1, %v8692_v8  ;;  %v4320_v8 = vsel %vm11333_vm4, %v4315_v26, %v4319_v34  ;;  %v4717_v49 = vrot.slane %v4715_v42, 4  ;;  %v4716_v54 = vsel %vm11642_vm7, %v8730_v2, %v4715_v42  ;;  %v4729_v44 = vrot.slane %v12598_v43, 5 }
 0x310   : > { %v4329_v7 = vrot.slane %v4327_v19, 5  ;;  %v4344_v34 = vsel %vm11333_vm4, %v4339_v4, %v4343_v22  ;;  %v4354_v46 = vsel %vm11333_vm4, %v4349_v37, %v4353_v21  ;;  %v8731_v50 = vrot.slane %v8715_v30, 9  ;;  %v8722_v37 = vld [vmem:[%s11263_s14 + $0x78] sm:$0xe] }
 0x311   : > { %v4719_v52 = vsel %vm11642_vm7, %v4717_v49, %v4718_v0  ;;  %v8697_v11 = vcombine.low %v4344_v34, %v4354_v46  ;;  %v4724_v19 = vrot.slane %v4722_v17, 4  ;;  %v4731_v60 = vrot.slane %v4729_v44, 4 }
 0x312   : > { %v4330_v15 = vsel %vm11333_vm4, %v4325_v24, %v4329_v7  ;;  %v8746_v3 = vcombine.low %v4716_v54, %v4719_v52  ;;  %v4723_v43 = vsel %vm11642_vm7, %v8731_v50, %v4722_v17  ;;  %v4736_v6 = vrot.slane %v12618_v53, 5  ;;  %v8724_v17 = vld [vmem:[%s11263_s14 + $0x90] sm:$0xe] }
 0x313   : > { %v8696_v13 = vcombine.low %v4320_v8, %v4330_v15  ;;  %v4726_v10 = vsel %vm11642_vm7, %v4724_v19, %v4725_v33  ;;  %v8733_v26 = vrot.slane %v8717_v61, 9  ;;  %v4739_v7 = vrot.slane %v12671_v41, 5  ;;  %v13826_v33 = vld [vmem:[#allocation32_spill] sm:$0xff]  ;;  %v13829_v61 = vld [vmem:[#allocation34_spill] sm:$0xff] }
 0x314   : > { %v8747_v22 = vcombine.low %v4723_v43, %v4726_v10  ;;  %v4738_v24 = vrot.slane %v4736_v6, 4  ;;  %v8734_v48 = vrot.slane %v8718_v20, 9  ;;  %v4746_v53 = vrot.slane %v12711_v27, 5  ;;  %v8720_v27 = vld [vmem:[%s11263_s14 + $0x60] sm:$0xe] }
 0x315   : > { %v4737_v47 = vsel %vm11642_vm7, %v8733_v26, %v4736_v6  ;;  %v4757_v62 = vrot.slane %v12727_v63, 5  ;;  %v8736_v42 = vrot.slane %v8720_v27, 9  ;;  %v4771_v63 = vrot.slane %v12768_v51, 5  ;;  %v8728_v43 = vld [vmem:[%s11263_s14 + $0xc0] sm:$0xe] }
 0x316   : > { %9513 = vmatmul.mubr.msk.bf16.gmra.mrb[24].mxu1 %vm480_vm1, %v8693_v1  ;;  %v8732_v1 = vrot.slane %v8716_v57, 9  ;;  %v8738_v2 = vrot.slane %v8722_v37, 9  ;;  %v4774_v0 = vrot.slane %v12788_v36, 5  ;;  %v4785_v46 = vrot.slane %v12804_v12, 5  ;;  %v13832_v26 = vld [vmem:[#allocation36_spill] sm:$0xff] }
 0x317   : > { %9516 = vmatprep.mubr.msk.bf16.mxu1 %vm480_vm1, %v8694_v18  ;;  %v4732_v18 = vrot.slane %v12637_v40, 5  ;;  %v4743_v40 = vrot.slane %v12664_v9, 5  ;;  %v4740_v9 = vsel %vm11642_vm7, %v4738_v24, %v4739_v7  ;;  %v4759_v16 = vrot.slane %v4757_v62, 4  ;;  %v13835_v7 = vld [vmem:[#allocation38_spill] sm:$0xff]  ;;  %v5359_v27 = vld [vmem:[#allocation15] sm:$0xf] }
 0x318   : > { %v4730_v45 = vsel %vm11642_vm7, %v8732_v1, %v4729_v44  ;;  %v8749_v8 = vcombine.low %v4737_v47, %v4740_v9  ;;  %v4773_v49 = vrot.slane %v4771_v63, 4  ;;  %v4772_v34 = vsel %vm11642_vm7, %v8738_v2, %v4771_v63  ;;  %v5409_v47 = vld [vmem:[#allocation15 + $0x4] sm:$0xf] }
 0x319   : > { %v4733_v55 = vsel %vm11642_vm7, %v4731_v60, %v4732_v18  ;;  %v4745_v29 = vrot.slane %v4743_v40, 4  ;;  %v4744_v25 = vsel %vm11642_vm7, %v8734_v48, %v4743_v40  ;;  %v8740_v52 = vrot.slane %v8724_v17, 9  ;;  %10389 = vmatprep.subr.msk.bf16.mxu0 %vm5458_vm10, %v5409_v47 }
 0x31a   : > { %v8748_v56 = vcombine.low %v4730_v45, %v4733_v55  ;;  %v4775_v51 = vsel %vm11642_vm7, %v4773_v49, %v4774_v0  ;;  %v4787_v36 = vrot.slane %v4785_v46, 4  ;;  %v4788_v30 = vrot.slane %v12822_v5, 5  ;;  %v13828_v55 = vld [vmem:[#allocation33_spill] sm:$0xff] }
 0x31b   : > { %v4747_v41 = vsel %vm11642_vm7, %v4745_v29, %v4746_v53  ;;  %v8754_v54 = vcombine.low %v4772_v34, %v4775_v51  ;;  %v4786_v44 = vsel %vm11642_vm7, %v8740_v52, %v4785_v46  ;;  %v4799_v57 = vrot.slane %v12833_v39, 5  ;;  %v10571_v53 = vld [vmem:[%s11271_s10 + $0x8] sm:$0xff]  }
 0x31c   : > { %v8750_v15 = vcombine.low %v4744_v25, %v4747_v41  ;;  %v4789_v12 = vsel %vm11642_vm7, %v4787_v36, %v4788_v30  ;;  %v4802_v19 = vrot.slane %v12856_v28, 5  ;;  %v4813_v39 = vrot.slane %v12864_v32, 5  ;;  %9245 = vmatmul.mubr.msk.bf16.vlgmr.msra.gmra.mrb[0].mxu0 %vm480_vm1, %v10571_v53 }
 0x31d   : > { %v4801_v5 = vrot.slane %v4799_v57, 4  ;;  %v8744_v6 = vrot.slane %v8728_v43, 9  ;;  %v4816_v28 = vrot.slane %v12884_v59, 5  ;;  %v13830_v40 = vcombine.low %v13828_v55, %v13829_v61  ;;  %v13834_v59 = vld [vmem:[#allocation37_spill] sm:$0xff] }
 0x31e   : > { %9517 = vmatmul.mubr.msk.bf16.gmra.mrb[28].mxu1 %vm480_vm1, %v8695_v23  ;;  %v4760_v23 = vrot.slane %v12760_v14, 5  ;;  %v13822_v14 = vcombine.low %v12518_v31, %v12523_v35  ;;  %v13823_v31 = vld [vmem:[#allocation30_spill] sm:$0xff]  ;;  %v4815_v45 = vrot.slane %v4813_v39, 4  ;;  %v13836_v48 = vcombine.low %v13834_v59, %v13835_v7 }
 0x31f   : > { %9520 = vmatprep.mubr.msk.bf16.mxu1 %vm480_vm1, %v8696_v13  ;;  %v4758_v13 = vsel %vm11642_vm7, %v8736_v42, %v4757_v62  ;;  %v13824_v35 = vcombine.low %v12545_v58, %v13823_v31  ;;  %v13825_v58 = vld [vmem:[#allocation31_spill] sm:$0xff]  ;;  %v4803_v18 = vsel %vm11642_vm7, %v4801_v5, %v4802_v19  ;;  %v4814_v20 = vsel %vm11642_vm7, %v8744_v6, %v4813_v39 }
 0x320   : > { %v4761_v4 = vsel %vm11642_vm7, %v4759_v16, %v4760_v23  ;;  %v13827_v1 = vcombine.low %v13825_v58, %v13826_v33  ;;  %v10906_v29 = vmov 0.0   ;;  %v5460_v9 = vsel %vm5458_vm10, %v5409_v47, 0 }
 0x321   : > { %v8752_v21 = vcombine.low %v4758_v13, %v4761_v4  ;;  %5230 = vst.msk [vmem:[#allocation2 + $0x30] sm:$0xff] %vm5222_vm8, %v10906_v29  ;;  %5231 = vst.msk [vmem:[#allocation2 + $0x38] sm:$0xff] %vm5222_vm8, %v10906_v29  ;;  %9559 = vmatpush3.bf16.msra.mxu0 %v5460_v9  ;;  %v5672_v55 = vsel %vm5458_vm10, %v5359_v27, 0 }
 0x322   : > { %5223 = vst.msk [vmem:[#allocation2] sm:$0xff] %vm5222_vm8, %v10906_v29  ;;  %5224 = vst.msk [vmem:[#allocation2 + $0x8] sm:$0xff] %vm5222_vm8, %v10906_v29  ;;  %10390 = vmatprep.subr.msk.bf16.mxu0 %vm5458_vm10, %v5359_v27 }
 0x323   : > { %5227 = vst.msk [vmem:[#allocation2 + $0x18] sm:$0xff] %vm5222_vm8, %v10906_v29  ;;  %5228 = vst.msk [vmem:[#allocation2 + $0x20] sm:$0xff] %vm5222_vm8, %v10906_v29 }
 0x324   : > { %5233 = vst.msk [vmem:[#allocation2 + $0x48] sm:$0xff] %vm5222_vm8, %v10906_v29  ;;  %5234 = vst.msk [vmem:[#allocation2 + $0x50] sm:$0xff] %vm5222_vm8, %v10906_v29 }
 0x325   : > { %5236 = vst.msk [vmem:[#allocation2 + $0x60] sm:$0xff] %vm5222_vm8, %v10906_v29  ;;  %5237 = vst.msk [vmem:[#allocation2 + $0x68] sm:$0xff] %vm5222_vm8, %v10906_v29 }
 0x326   : > { %9521 = vmatmul.mubr.msk.bf16.gmra.mrb[32].mxu1 %vm480_vm1, %v8697_v11  ;;  %v8726_v11 = vld [vmem:[%s11263_s14 + $0xa8] sm:$0xe]  ;;  %5239 = vst.msk [vmem:[#allocation2 + $0x78] sm:$0xff] %vm5222_vm8, %v10906_v29  ;;  %5240 = vst.msk [vmem:[#allocation2 + $0x80] sm:$0xff] %vm5222_vm8, %v10906_v29 }
 0x327   : > { %9526 = vmatprep.mubr.msk.bf16.mxu1 %vm480_vm1, %v8746_v3  ;;  %v8756_v3 = vcombine.low %v4786_v44, %v4789_v12  ;;  %v8742_v50 = vrot.slane %v8726_v11, 9  ;;  %5242 = vst.msk [vmem:[#allocation2 + $0x90] sm:$0xff] %vm5222_vm8, %v10906_v29  ;;  %5243 = vst.msk [vmem:[#allocation2 + $0x98] sm:$0xff] %vm5222_vm8, %v10906_v29 }
 0x328   : > { %5245 = vst.msk [vmem:[#allocation2 + $0xa8] sm:$0xff] %vm5222_vm8, %v10906_v29  ;;  %5246 = vst.msk [vmem:[#allocation2 + $0xb0] sm:$0xff] %vm5222_vm8, %v10906_v29 }
 0x329   : > { %v4800_v60 = vsel %vm11642_vm7, %v8742_v50, %v4799_v57  ;;  %5248 = vst.msk [vmem:[#allocation2 + $0xc0] sm:$0xff] %vm5222_vm8, %v10906_v29  ;;  %5249 = vst.msk [vmem:[#allocation2 + $0xc8] sm:$0xff] %vm5222_vm8, %v10906_v29  ;;  %v5360_v25 = vld [vmem:[#allocation2 + $0x1] sm:$0xff] }
 0x32a   : > { %v8758_v10 = vcombine.low %v4800_v60, %v4803_v18  ;;  %5251 = vst.msk [vmem:[#allocation2 + $0xd8] sm:$0xff] %vm5222_vm8, %v10906_v29  ;;  %5252 = vst.msk [vmem:[#allocation2 + $0xe0] sm:$0xff] %vm5222_vm8, %v10906_v29 }
 0x32b   : > { %5254 = vst.msk [vmem:[#allocation2 + $0xf0] sm:$0xff] %vm5222_vm8, %v10906_v29  ;;  %5255 = vst.msk [vmem:[#allocation2 + $0xf8] sm:$0xff] %vm5222_vm8, %v10906_v29 }
 0x32c   : > { %5257 = vst.msk [vmem:[#allocation2 + $0x108] sm:$0xff] %vm5222_vm8, %v10906_v29  ;;  %5258 = vst.msk [vmem:[#allocation2 + $0x110] sm:$0xff] %vm5222_vm8, %v10906_v29 }
 0x32d   : > { %5260 = vst.msk [vmem:[#allocation2 + $0x120] sm:$0xff] %vm5222_vm8, %v10906_v29  ;;  %5261 = vst.msk [vmem:[#allocation2 + $0x128] sm:$0xff] %vm5222_vm8, %v10906_v29 }
 0x32e   : > { %9527 = vmatmul.mubr.msk.bf16.vlgmr.msra.gmra.mrb[4].mxu1 %vm480_vm1, %v8747_v22  ;;  %v4817_v22 = vsel %vm11642_vm7, %v4815_v45, %v4816_v28  ;;  %5263 = vst.msk [vmem:[#allocation2 + $0x138] sm:$0xff] %vm5222_vm8, %v10906_v29  ;;  %5264 = vst.msk [vmem:[#allocation2 + $0x140] sm:$0xff] %vm5222_vm8, %v10906_v29 }
 0x32f   : > { %9530 = vmatprep.mubr.msk.bf16.mxu1 %vm480_vm1, %v8748_v56  ;;  %v8760_v32 = vcombine.low %v4814_v20, %v4817_v22  ;;  %v13831_v56 = vld [vmem:[#allocation35_spill] sm:$0xff]  ;;  %5266 = vst.msk [vmem:[#allocation2 + $0x150] sm:$0xff] %vm5222_vm8, %v10906_v29  ;;  %5267 = vst.msk [vmem:[#allocation2 + $0x158] sm:$0xff] %vm5222_vm8, %v10906_v29 }
 0x330   : > { %v13833_v24 = vcombine.low %v13831_v56, %v13832_v26  ;;  %5269 = vst.msk [vmem:[#allocation2 + $0x168] sm:$0xff] %vm5222_vm8, %v10906_v29  ;;  %5270 = vst.msk [vmem:[#allocation2 + $0x170] sm:$0xff] %vm5222_vm8, %v10906_v29 }
 0x331   : > { %5272 = vst.msk [vmem:[#allocation2 + $0x180] sm:$0xff] %vm5222_vm8, %v10906_v29  ;;  %5273 = vst.msk [vmem:[#allocation2 + $0x188] sm:$0xff] %vm5222_vm8, %v10906_v29 }
 0x332   : > { %5275 = vst.msk [vmem:[#allocation2 + $0x198] sm:$0xff] %vm5222_vm8, %v10906_v29  ;;  %5276 = vst.msk [vmem:[#allocation2 + $0x1a0] sm:$0xff] %vm5222_vm8, %v10906_v29 }
 0x333   : > { %5232 = vst.msk [vmem:[#allocation2 + $0x40] sm:$0x3] %vm5225_vm9, %v10906_v29  ;;  %5226 = vst.msk [vmem:[#allocation2 + $0x10] sm:$0x3] %vm5225_vm9, %v10906_v29 }
 0x334   : > { %5229 = vst.msk [vmem:[#allocation2 + $0x28] sm:$0x3] %vm5225_vm9, %v10906_v29  ;;  %5235 = vst.msk [vmem:[#allocation2 + $0x58] sm:$0x3] %vm5225_vm9, %v10906_v29 }
 0x335   : > { %5238 = vst.msk [vmem:[#allocation2 + $0x70] sm:$0x3] %vm5225_vm9, %v10906_v29  ;;  %5241 = vst.msk [vmem:[#allocation2 + $0x88] sm:$0x3] %vm5225_vm9, %v10906_v29 }
 0x336   : > { %9531 = vmatmul.mubr.msk.bf16.gmra.mrb[8].mxu1 %vm480_vm1, %v8749_v8  ;;  %5244 = vst.msk [vmem:[#allocation2 + $0xa0] sm:$0x3] %vm5225_vm9, %v10906_v29  ;;  %5247 = vst.msk [vmem:[#allocation2 + $0xb8] sm:$0x3] %vm5225_vm9, %v10906_v29  ;;  %v13080_v8 = vld [vmem:[#allocation13] ss:$0 sm:$0xff] }
 0x337   : > { %9534 = vmatprep.mubr.msk.bf16.mxu1 %vm480_vm1, %v8750_v15  ;;  %5250 = vst.msk [vmem:[#allocation2 + $0xd0] sm:$0x3] %vm5225_vm9, %v10906_v29  ;;  %5253 = vst.msk [vmem:[#allocation2 + $0xe8] sm:$0x3] %vm5225_vm9, %v10906_v29 }
 0x338   : > { %5256 = vst.msk [vmem:[#allocation2 + $0x100] sm:$0x3] %vm5225_vm9, %v10906_v29  ;;  %5259 = vst.msk [vmem:[#allocation2 + $0x118] sm:$0x3] %vm5225_vm9, %v10906_v29 }
 0x339   : > { %5262 = vst.msk [vmem:[#allocation2 + $0x130] sm:$0x3] %vm5225_vm9, %v10906_v29  ;;  %5265 = vst.msk [vmem:[#allocation2 + $0x148] sm:$0x3] %vm5225_vm9, %v10906_v29 }
 0x33a   : > { %5268 = vst.msk [vmem:[#allocation2 + $0x160] sm:$0x3] %vm5225_vm9, %v10906_v29  ;;  %5271 = vst.msk [vmem:[#allocation2 + $0x178] sm:$0x3] %vm5225_vm9, %v10906_v29  ;;  %v5361_v41 = vld [vmem:[#allocation2 + $0x9] sm:$0xff] }
 0x33b   : > { %5274 = vst.msk [vmem:[#allocation2 + $0x190] sm:$0x3] %vm5225_vm9, %v10906_v29  ;;  %5277 = vst.msk [vmem:[#allocation2 + $0x1a8] sm:$0x3] %vm5225_vm9, %v10906_v29  ;;  %v5392_v62 = vpack.c.bf16 %v5361_v41, %v5360_v25 }
 0x33d   : > { %9560 = vmatprep.mubr.msk.bf16.mxu0 %vm5222_vm8, %v5392_v62 }
 0x33e   : > { %9535 = vmatmul.mubr.msk.bf16.gmra.mrb[12].mxu1 %vm480_vm1, %v13822_v14 }
 0x33f   : > { %9538 = vmatprep.mubr.msk.bf16.mxu1 %vm480_vm1, %v8752_v21 }
 0x346   : > { %9539 = vmatmul.mubr.msk.bf16.gmra.mrb[16].mxu1 %vm480_vm1, %v13824_v35 }
 0x347   : > { %9542 = vmatprep.mubr.msk.bf16.mxu1 %vm480_vm1, %v8754_v54 }
 0x34e   : > { %9543 = vmatmul.mubr.msk.bf16.gmra.mrb[20].mxu1 %vm480_vm1, %v13827_v1 }
 0x34f   : > { %9546 = vmatprep.mubr.msk.bf16.mxu1 %vm480_vm1, %v8756_v3 }
 0x356   : > { %9547 = vmatmul.mubr.msk.bf16.gmra.mrb[24].mxu1 %vm480_vm1, %v13830_v40 }
 0x357   : > { %9550 = vmatprep.mubr.msk.bf16.mxu1 %vm480_vm1, %v8758_v10 }
 0x35e   : > { %9551 = vmatmul.mubr.msk.bf16.gmra.mrb[28].mxu1 %vm480_vm1, %v13833_v24 }
 0x35f   : > { %9554 = vmatprep.mubr.msk.bf16.mxu1 %vm480_vm1, %v8760_v32  ;;  %v13106_v32 = vld [vmem:[#allocation15 + $0x8] sm:$0xf] }
 0x366   : > { %9555 = vmatmul.mubr.msk.bf16.gmra.mrb[32].mxu1 %vm480_vm1, %v13836_v48 }
 0x401   : > { %v9528_v15 = vpop.f32.mrb[4].mxu1 }
 0x402   : > { %v5128_v42 = vadd.f32 %v9528_v15, %v13080_v8  ;;  %v4960_v16 = vpop.f32.mrb[5].mxu1 }
 0x403   : > { %v5126_v23 = vadd.f32 %v13080_v8, %v4960_v16  ;;  %v9529_v13 = vpop.f32.mrb[6].mxu1 }
 0x404   : > { %v5160_v4 = vmul.f32 0.01, %v5128_v42  ;;  %v5129_v63 = vadd.f32 %v9529_v13, %v13080_v8  ;;  %v4963_v37 = vpop.f32.mrb[7].mxu1 }
 0x405   : > { %v5158_v21 = vmul.f32 0.01, %v5126_v23  ;;  %v5127_v2 = vadd.f32 %v13080_v8, %v4963_v37 }
 0x406   : > { %v5192_v49 = vmax.f32 %v5128_v42, %v5160_v4  ;;  %v5161_v0 = vmul.f32 0.01, %v5129_v63 }
 0x407   : > { %v5190_v14 = vmax.f32 %v5126_v23, %v5158_v21  ;;  %v5159_v34 = vmul.f32 0.01, %v5127_v2 }
 0x408   : > { %5281 = vst.msk [vmem:[#allocation2 + $0x31] sm:$0xff] %vm5222_vm8, %v5192_v49  ;;  %v5193_v51 = vmax.f32 %v5129_v63, %v5161_v0 }
 0x409   : > { %5279 = vst.msk [vmem:[#allocation2 + $0x19] sm:$0xff] %vm5222_vm8, %v5190_v14  ;;  %v5191_v46 = vmax.f32 %v5127_v2, %v5159_v34  ;;  %v9532_v17 = vpop.f32.mrb[8].mxu1 }
 0x40a   : > { %5282 = vst.msk [vmem:[#allocation2 + $0x39] sm:$0xff] %vm5222_vm8, %v5193_v51  ;;  %v5132_v54 = vadd.f32 %v9532_v17, %v13080_v8  ;;  %v4976_v52 = vpop.f32.mrb[9].mxu1 }
 0x40b   : > { %5280 = vst.msk [vmem:[#allocation2 + $0x21] sm:$0xff] %vm5222_vm8, %v5191_v46  ;;  %v5130_v36 = vadd.f32 %v13080_v8, %v4976_v52  ;;  %v9533_v30 = vpop.f32.mrb[10].mxu1 }
 0x40c   : > { %v5164_v31 = vmul.f32 0.01, %v5132_v54  ;;  %v5133_v35 = vadd.f32 %v9533_v30, %v13080_v8  ;;  %v4979_v44 = vpop.f32.mrb[11].mxu1 }
 0x40d   : > { %v5162_v12 = vmul.f32 0.01, %v5130_v36  ;;  %v5131_v57 = vadd.f32 %v13080_v8, %v4979_v44 }
 0x40e   : > { %v5196_v11 = vmax.f32 %v5132_v54, %v5164_v31  ;;  %v5165_v3 = vmul.f32 0.01, %v5133_v35 }
 0x40f   : > { %v5194_v50 = vmax.f32 %v5130_v36, %v5162_v12  ;;  %v5163_v5 = vmul.f32 0.01, %v5131_v57  ;;  %v5364_v28 = vld [vmem:[#allocation2 + $0x31] sm:$0xff] }
 0x410   : > { %5285 = vst.msk [vmem:[#allocation2 + $0x61] sm:$0xff] %vm5222_vm8, %v5196_v11  ;;  %v5197_v19 = vmax.f32 %v5133_v35, %v5165_v3  ;;  %v5362_v39 = vld [vmem:[#allocation2 + $0x19] sm:$0xff] }
 0x411   : > { %5283 = vst.msk [vmem:[#allocation2 + $0x49] sm:$0xff] %vm5222_vm8, %v5194_v50  ;;  %v5195_v58 = vmax.f32 %v5131_v57, %v5163_v5  ;;  %v9536_v33 = vpop.f32.mrb[12].mxu1  ;;  %v5365_v1 = vld [vmem:[#allocation2 + $0x39] sm:$0xff] }
 0x412   : > { %5286 = vst.msk [vmem:[#allocation2 + $0x69] sm:$0xff] %vm5222_vm8, %v5197_v19  ;;  %v5136_v60 = vadd.f32 %v9536_v33, %v13080_v8  ;;  %v4992_v18 = vpop.f32.mrb[13].mxu1  ;;  %v5363_v43 = vld [vmem:[#allocation2 + $0x21] sm:$0xff]  ;;  %v13104_v22 = vpack.c.bf16 %v5365_v1, %v5364_v28 }
 0x413   : > { %5284 = vst.msk [vmem:[#allocation2 + $0x51] sm:$0xff] %vm5222_vm8, %v5195_v58  ;;  %v5134_v10 = vadd.f32 %v13080_v8, %v4992_v18  ;;  %v9537_v6 = vpop.f32.mrb[14].mxu1  ;;  %v13100_v45 = vpack.c.bf16 %v5363_v43, %v5362_v39 }
 0x414   : > { %v5168_v61 = vmul.f32 0.01, %v5136_v60  ;;  %v5137_v40 = vadd.f32 %v9537_v6, %v13080_v8  ;;  %v4995_v20 = vpop.f32.mrb[15].mxu1 }
 0x415   : > { %v5166_v56 = vmul.f32 0.01, %v5134_v10  ;;  %v5135_v26 = vadd.f32 %v13080_v8, %v4995_v20  ;;  %9561 = vmatmul.mubr.msk.bf16.vlgmr.msra.gmra.mrb[4].mxu0 %vm5222_vm8, %v13100_v45 }
 0x416   : > { %v5200_v24 = vmax.f32 %v5136_v60, %v5168_v61  ;;  %v5169_v59 = vmul.f32 0.01, %v5137_v40  ;;  %9564 = vmatprep.mubr.msk.bf16.mxu0 %vm5222_vm8, %v13104_v22  ;;  %9593 = vmatpush3.bf16.msra.mxu0 %v5672_v55 }
 0x417   : > { %v5198_v7 = vmax.f32 %v5134_v10, %v5166_v56  ;;  %v5167_v48 = vmul.f32 0.01, %v5135_v26  ;;  %10391 = vmatprep.subr.msk.bf16.mxu0 %vm5458_vm10, %v13106_v32  ;;  %v5368_v16 = vld [vmem:[#allocation2 + $0x61] sm:$0xff] }
 0x418   : > { %5289 = vst.msk [vmem:[#allocation2 + $0x91] sm:$0xff] %vm5222_vm8, %v5200_v24  ;;  %v5201_v29 = vmax.f32 %v5137_v40, %v5169_v59  ;;  %v5366_v41 = vld [vmem:[#allocation2 + $0x49] sm:$0xff] }
 0x419   : > { %5287 = vst.msk [vmem:[#allocation2 + $0x79] sm:$0xff] %vm5222_vm8, %v5198_v7  ;;  %v5199_v38 = vmax.f32 %v5135_v26, %v5167_v48  ;;  %v9540_v53 = vpop.f32.mrb[16].mxu1  ;;  %v5369_v47 = vld [vmem:[#allocation2 + $0x69] sm:$0xff] }
 0x41a   : > { %5290 = vst.msk [vmem:[#allocation2 + $0x99] sm:$0xff] %vm5222_vm8, %v5201_v29  ;;  %v5140_v9 = vadd.f32 %v9540_v53, %v13080_v8  ;;  %v5008_v25 = vpop.f32.mrb[17].mxu1  ;;  %v5367_v62 = vld [vmem:[#allocation2 + $0x51] sm:$0xff]  ;;  %v13124_v63 = vpack.c.bf16 %v5369_v47, %v5368_v16 }
 0x41b   : > { %5288 = vst.msk [vmem:[#allocation2 + $0x81] sm:$0xff] %vm5222_vm8, %v5199_v38  ;;  %v5138_v27 = vadd.f32 %v13080_v8, %v5008_v25  ;;  %v9541_v15 = vpop.f32.mrb[18].mxu1  ;;  %v13121_v42 = vpack.c.bf16 %v5367_v62, %v5366_v41 }
 0x41c   : > { %v5172_v23 = vmul.f32 0.01, %v5140_v9  ;;  %v5141_v13 = vadd.f32 %v9541_v15, %v13080_v8  ;;  %v5011_v4 = vpop.f32.mrb[19].mxu1 }
 0x41d   : > { %v5170_v37 = vmul.f32 0.01, %v5138_v27  ;;  %v5139_v21 = vadd.f32 %v13080_v8, %v5011_v4  ;;  %9565 = vmatmul.mubr.msk.bf16.gmra.mrb[8].mxu0 %vm5222_vm8, %v13121_v42 }
 0x41e   : > { %v5204_v2 = vmax.f32 %v5140_v9, %v5172_v23  ;;  %v5173_v49 = vmul.f32 0.01, %v5141_v13  ;;  %9568 = vmatprep.mubr.msk.bf16.mxu0 %vm5222_vm8, %v13124_v63 }
 0x41f   : > { %v5202_v0 = vmax.f32 %v5138_v27, %v5170_v37  ;;  %v5171_v14 = vmul.f32 0.01, %v5139_v21  ;;  %v5372_v12 = vld [vmem:[#allocation2 + $0x91] sm:$0xff] }
 0x420   : > { %5293 = vst.msk [vmem:[#allocation2 + $0xc1] sm:$0xff] %vm5222_vm8, %v5204_v2  ;;  %v5205_v34 = vmax.f32 %v5141_v13, %v5173_v49  ;;  %v5370_v36 = vld [vmem:[#allocation2 + $0x79] sm:$0xff] }
 0x421   : > { %5291 = vst.msk [vmem:[#allocation2 + $0xa9] sm:$0xff] %vm5222_vm8, %v5202_v0  ;;  %v5203_v51 = vmax.f32 %v5139_v21, %v5171_v14  ;;  %v9544_v46 = vpop.f32.mrb[20].mxu1  ;;  %v5373_v17 = vld [vmem:[#allocation2 + $0x99] sm:$0xff] }
 0x422   : > { %5294 = vst.msk [vmem:[#allocation2 + $0xc9] sm:$0xff] %vm5222_vm8, %v5205_v34  ;;  %v5144_v54 = vadd.f32 %v9544_v46, %v13080_v8  ;;  %v5024_v52 = vpop.f32.mrb[21].mxu1  ;;  %v5371_v30 = vld [vmem:[#allocation2 + $0x81] sm:$0xff]  ;;  %v13140_v50 = vpack.c.bf16 %v5373_v17, %v5372_v12 }
 0x423   : > { %5292 = vst.msk [vmem:[#allocation2 + $0xb1] sm:$0xff] %vm5222_vm8, %v5203_v51  ;;  %v5142_v31 = vadd.f32 %v13080_v8, %v5024_v52  ;;  %v9545_v35 = vpop.f32.mrb[22].mxu1  ;;  %v13137_v44 = vpack.c.bf16 %v5371_v30, %v5370_v36 }
 0x424   : > { %v5176_v57 = vmul.f32 0.01, %v5144_v54  ;;  %v5145_v11 = vadd.f32 %v9545_v35, %v13080_v8  ;;  %v5027_v3 = vpop.f32.mrb[23].mxu1 }
 0x425   : > { %v5174_v5 = vmul.f32 0.01, %v5142_v31  ;;  %v5143_v19 = vadd.f32 %v13080_v8, %v5027_v3  ;;  %9569 = vmatmul.mubr.msk.bf16.gmra.mrb[12].mxu0 %vm5222_vm8, %v13137_v44 }
 0x426   : > { %v5208_v58 = vmax.f32 %v5144_v54, %v5176_v57  ;;  %v5177_v33 = vmul.f32 0.01, %v5145_v11  ;;  %9572 = vmatprep.mubr.msk.bf16.mxu0 %vm5222_vm8, %v13140_v50 }
 0x427   : > { %v5206_v1 = vmax.f32 %v5142_v31, %v5174_v5  ;;  %v5175_v60 = vmul.f32 0.01, %v5143_v19  ;;  %v5376_v26 = vld [vmem:[#allocation2 + $0xc1] sm:$0xff] }
 0x428   : > { %5297 = vst.msk [vmem:[#allocation2 + $0xf1] sm:$0xff] %vm5222_vm8, %v5208_v58  ;;  %v5209_v18 = vmax.f32 %v5145_v11, %v5177_v33  ;;  %v5374_v55 = vld [vmem:[#allocation2 + $0xa9] sm:$0xff] }
 0x429   : > { %5295 = vst.msk [vmem:[#allocation2 + $0xd9] sm:$0xff] %vm5222_vm8, %v5206_v1  ;;  %v5207_v39 = vmax.f32 %v5143_v19, %v5175_v60  ;;  %v9548_v43 = vpop.f32.mrb[24].mxu1  ;;  %v5377_v10 = vld [vmem:[#allocation2 + $0xc9] sm:$0xff] }
 0x42a   : > { %5298 = vst.msk [vmem:[#allocation2 + $0xf9] sm:$0xff] %vm5222_vm8, %v5209_v18  ;;  %v5148_v6 = vadd.f32 %v9548_v43, %v13080_v8  ;;  %v5040_v28 = vpop.f32.mrb[25].mxu1  ;;  %v5375_v61 = vld [vmem:[#allocation2 + $0xb1] sm:$0xff]  ;;  %v13156_v48 = vpack.c.bf16 %v5377_v10, %v5376_v26 }
 0x42b   : > { %5296 = vst.msk [vmem:[#allocation2 + $0xe1] sm:$0xff] %vm5222_vm8, %v5207_v39  ;;  %v5146_v40 = vadd.f32 %v13080_v8, %v5040_v28  ;;  %v9549_v20 = vpop.f32.mrb[26].mxu1  ;;  %v13153_v56 = vpack.c.bf16 %v5375_v61, %v5374_v55 }
 0x42c   : > { %v5180_v24 = vmul.f32 0.01, %v5148_v6  ;;  %v5149_v59 = vadd.f32 %v9549_v20, %v13080_v8  ;;  %v5043_v7 = vpop.f32.mrb[27].mxu1 }
 0x42d   : > { %v5178_v29 = vmul.f32 0.01, %v5146_v40  ;;  %v5147_v38 = vadd.f32 %v13080_v8, %v5043_v7  ;;  %9573 = vmatmul.mubr.msk.bf16.gmra.mrb[16].mxu0 %vm5222_vm8, %v13153_v56 }
 0x42e   : > { %v5212_v53 = vmax.f32 %v5148_v6, %v5180_v24  ;;  %v5181_v47 = vmul.f32 0.01, %v5149_v59  ;;  %9576 = vmatprep.mubr.msk.bf16.mxu0 %vm5222_vm8, %v13156_v48 }
 0x42f   : > { %v5210_v9 = vmax.f32 %v5146_v40, %v5178_v29  ;;  %v5179_v25 = vmul.f32 0.01, %v5147_v38  ;;  %v5380_v49 = vld [vmem:[#allocation2 + $0xf1] sm:$0xff] }
 0x430   : > { %5301 = vst.msk [vmem:[#allocation2 + $0x121] sm:$0xff] %vm5222_vm8, %v5212_v53  ;;  %v5213_v41 = vmax.f32 %v5149_v59, %v5181_v47  ;;  %v5378_v13 = vld [vmem:[#allocation2 + $0xd9] sm:$0xff] }
 0x431   : > { %5299 = vst.msk [vmem:[#allocation2 + $0x109] sm:$0xff] %vm5222_vm8, %v5210_v9  ;;  %v5211_v62 = vmax.f32 %v5147_v38, %v5179_v25  ;;  %v9552_v27 = vpop.f32.mrb[28].mxu1  ;;  %v5381_v15 = vld [vmem:[#allocation2 + $0xf9] sm:$0xff]  ;;  %v5312_v9 = vld [vmem:[#allocation2 + $0x8] sm:$0xff] }
 0x432   : > { %5302 = vst.msk [vmem:[#allocation2 + $0x129] sm:$0xff] %vm5222_vm8, %v5213_v41  ;;  %v5152_v16 = vadd.f32 %v9552_v27, %v13080_v8  ;;  %v5056_v23 = vpop.f32.mrb[29].mxu1  ;;  %v5379_v4 = vld [vmem:[#allocation2 + $0xe1] sm:$0xff]  ;;  %v13172_v51 = vpack.c.bf16 %v5381_v15, %v5380_v49 }
 0x433   : > { %5300 = vst.msk [vmem:[#allocation2 + $0x111] sm:$0xff] %vm5222_vm8, %v5211_v62  ;;  %v5150_v37 = vadd.f32 %v13080_v8, %v5056_v23  ;;  %v9553_v21 = vpop.f32.mrb[30].mxu1  ;;  %v13169_v2 = vpack.c.bf16 %v5379_v4, %v5378_v13  ;;  %v5311_v47 = vld [vmem:[#allocation2] sm:$0xff]  ;;  %v5313_v23 = vld [vmem:[#allocation2 + $0x18] sm:$0xff]  ;;  %v5315_v4 = vld [vmem:[#allocation2 + $0x30] sm:$0xff] }
 0x434   : > { %v5184_v0 = vmul.f32 0.01, %v5152_v16  ;;  %v5153_v14 = vadd.f32 %v9553_v21, %v13080_v8  ;;  %v5059_v34 = vpop.f32.mrb[31].mxu1  ;;  %v5343_v62 = vpack.c.bf16 %v5312_v9, %v5311_v47  ;;  %v5314_v15 = vld [vmem:[#allocation2 + $0x20] sm:$0xff] }
 0x435   : > { %v5182_v46 = vmul.f32 0.01, %v5150_v37  ;;  %v5151_v17 = vadd.f32 %v13080_v8, %v5059_v34  ;;  %9577 = vmatmul.mubr.msk.bf16.gmra.mrb[20].mxu0 %vm5222_vm8, %v13169_v2  ;;  %v13212_v13 = vpack.c.bf16 %v5314_v15, %v5313_v23  ;;  %v13218_v49 = vld [vmem:[#allocation15 + $0xc] sm:$0xf]  ;;  %v5317_v34 = vld [vmem:[#allocation2 + $0x48] sm:$0xff] }
 0x436   : > { %v5216_v54 = vmax.f32 %v5152_v16, %v5184_v0  ;;  %v5185_v52 = vmul.f32 0.01, %v5153_v14  ;;  %9580 = vmatprep.mubr.msk.bf16.mxu0 %vm5222_vm8, %v13172_v51  ;;  %v5316_v16 = vld [vmem:[#allocation2 + $0x38] sm:$0xff]  ;;  %v5318_v0 = vld [vmem:[#allocation2 + $0x50] sm:$0xff] }
 0x437   : > { %v5214_v36 = vmax.f32 %v5150_v37, %v5182_v46  ;;  %v5183_v30 = vmul.f32 0.01, %v5151_v17  ;;  %v5384_v60 = vld [vmem:[#allocation2 + $0x121] sm:$0xff]  ;;  %v5934_v37 = vsel %vm5458_vm10, %v13106_v32, 0  ;;  %v13216_v21 = vpack.c.bf16 %v5316_v16, %v5315_v4  ;;  %v5836_v15 = vld [vmem:[#allocation2 + $0xa] sm:$0xff] }
 0x438   : > { %5305 = vst.msk [vmem:[#allocation2 + $0x151] sm:$0xff] %vm5222_vm8, %v5216_v54  ;;  %v5217_v31 = vmax.f32 %v5153_v14, %v5185_v52  ;;  %v5382_v5 = vld [vmem:[#allocation2 + $0x109] sm:$0xff]  ;;  %v13226_v46 = vpack.c.bf16 %v5318_v0, %v5317_v34  ;;  %v5319_v32 = vld [vmem:[#allocation2 + $0x60] sm:$0xff]  ;;  %v13232_v54 = vpop.f32.mrb[0].mxu0  ;;  %v5839_v34 = vld [vmem:[#allocation2 + $0x32] sm:$0xff] }
 0x439   : > { %5303 = vst.msk [vmem:[#allocation2 + $0x139] sm:$0xff] %vm5222_vm8, %v5214_v36  ;;  %v5215_v35 = vmax.f32 %v5151_v17, %v5183_v30  ;;  %v9556_v12 = vpop.f32.mrb[32].mxu1  ;;  %v5385_v57 = vld [vmem:[#allocation2 + $0x129] sm:$0xff]  ;;  %v13236_v52 = vpop.f32.mrb[1].mxu0  ;;  %v5322_v30 = vld [vmem:[#allocation2 + $0x80] sm:$0xff] }
 0x43a   : > { %5306 = vst.msk [vmem:[#allocation2 + $0x159] sm:$0xff] %vm5222_vm8, %v5217_v31  ;;  %v5156_v11 = vadd.f32 %v9556_v12, %v13080_v8  ;;  %v5072_v3 = vpop.f32.mrb[33].mxu1  ;;  %v5383_v19 = vld [vmem:[#allocation2 + $0x111] sm:$0xff]  ;;  %v13188_v10 = vpack.c.bf16 %v5385_v57, %v5384_v60  ;;  %v5320_v14 = vld [vmem:[#allocation2 + $0x68] sm:$0xff]  ;;  %v13238_v36 = vpop.f32.mrb[2].mxu0  ;;  %v5327_v60 = vld [vmem:[#allocation2 + $0xc0] sm:$0xff] }
 0x43b   : > { %5304 = vst.msk [vmem:[#allocation2 + $0x141] sm:$0xff] %vm5222_vm8, %v5215_v35  ;;  %v5154_v58 = vadd.f32 %v13080_v8, %v5072_v3  ;;  %v9557_v33 = vpop.f32.mrb[34].mxu1  ;;  %v13185_v1 = vpack.c.bf16 %v5383_v19, %v5382_v5  ;;  %v13228_v17 = vpack.c.bf16 %v5320_v14, %v5319_v32  ;;  %v13240_v31 = vpop.f32.mrb[3].mxu0  ;;  %v5324_v35 = vld [vmem:[#allocation2 + $0x98] sm:$0xff]  ;;  %v5326_v5 = vld [vmem:[#allocation2 + $0xb0] sm:$0xff]  ;;  %v5328_v19 = vld [vmem:[#allocation2 + $0xc8] sm:$0xff] }
 0x43c   : > { %v5188_v18 = vmul.f32 0.01, %v5156_v11  ;;  %v5157_v39 = vadd.f32 %v9557_v33, %v13080_v8  ;;  %v5075_v43 = vpop.f32.mrb[35].mxu1  ;;  %v5321_v12 = vld [vmem:[#allocation2 + $0x78] sm:$0xff]  ;;  %v5838_v14 = vld [vmem:[#allocation2 + $0x22] sm:$0xff] }
 0x43d   : > { %v5186_v6 = vmul.f32 0.01, %v5154_v58  ;;  %v5155_v28 = vadd.f32 %v13080_v8, %v5075_v43  ;;  %9581 = vmatmul.mubr.msk.bf16.gmra.mrb[24].mxu0 %vm5222_vm8, %v13185_v1  ;;  %v13242_v57 = vpack.c.bf16 %v5322_v30, %v5321_v12  ;;  %v5332_v43 = vld [vmem:[#allocation2 + $0xf8] sm:$0xff] }
 0x43e   : > { %v5220_v55 = vmax.f32 %v5156_v11, %v5188_v18  ;;  %v5189_v61 = vmul.f32 0.01, %v5157_v39  ;;  %9584 = vmatprep.mubr.msk.bf16.mxu0 %vm5222_vm8, %v13188_v10  ;;  %v5323_v11 = vld [vmem:[#allocation2 + $0x90] sm:$0xff]  ;;  %v13252_v18 = vpack.c.bf16 %v5328_v19, %v5327_v60  ;;  %v5837_v0 = vld [vmem:[#allocation2 + $0x1a] sm:$0xff] }
 0x43f   : > { %v5218_v40 = vmax.f32 %v5154_v58, %v5186_v6  ;;  %v5187_v20 = vmul.f32 0.01, %v5155_v28  ;;  %v5388_v38 = vld [vmem:[#allocation2 + $0x151] sm:$0xff]  ;;  %v13244_v3 = vpack.c.bf16 %v5324_v35, %v5323_v11  ;;  %v5325_v58 = vld [vmem:[#allocation2 + $0xa8] sm:$0xff]  ;;  %v5840_v32 = vld [vmem:[#allocation2 + $0x3a] sm:$0xff]  ;;  %v13287_v30 = vpack.c.bf16 %v5838_v14, %v5837_v0 }
 0x440   : > { %5309 = vst.msk [vmem:[#allocation2 + $0x181] sm:$0xff] %vm5222_vm8, %v5220_v55  ;;  %v5221_v26 = vmax.f32 %v5157_v39, %v5189_v61  ;;  %v5386_v8 = vld [vmem:[#allocation2 + $0x139] sm:$0xff]  ;;  %v13250_v33 = vpack.c.bf16 %v5326_v5, %v5325_v58  ;;  %v5331_v55 = vld [vmem:[#allocation2 + $0xf0] sm:$0xff]  ;;  %v6228_v35 = vsel %vm5458_vm10, %v13218_v49, 0  ;;  %v13291_v12 = vpack.c.bf16 %v5840_v32, %v5839_v34  ;;  %v6472_v11 = vld [vmem:[#allocation15 + $0x10] sm:$0xf] }
 0x441   : > { %5307 = vst.msk [vmem:[#allocation2 + $0x169] sm:$0xff] %vm5222_vm8, %v5218_v40  ;;  %v5219_v24 = vmax.f32 %v5155_v28, %v5187_v20  ;;  %v5389_v59 = vld [vmem:[#allocation2 + $0x159] sm:$0xff]  ;;  %v13260_v61 = vpack.c.bf16 %v5332_v43, %v5331_v55  ;;  %v5334_v40 = vld [vmem:[#allocation2 + $0x110] sm:$0xff]  ;;  %v5336_v20 = vld [vmem:[#allocation2 + $0x128] sm:$0xff] }
 0x442   : > { %5310 = vst.msk [vmem:[#allocation2 + $0x189] sm:$0xff] %vm5222_vm8, %v5221_v26  ;;  %v5387_v7 = vld [vmem:[#allocation2 + $0x141] sm:$0xff]  ;;  %v13201_v53 = vpack.c.bf16 %v5389_v59, %v5388_v38  ;;  %v5329_v6 = vld [vmem:[#allocation2 + $0xd8] sm:$0xff]  ;;  %v5841_v5 = vld [vmem:[#allocation2 + $0x4a] sm:$0xff] }
 0x443   : > { %5308 = vst.msk [vmem:[#allocation2 + $0x171] sm:$0xff] %vm5222_vm8, %v5219_v24  ;;  %v13199_v29 = vpack.c.bf16 %v5387_v7, %v5386_v8  ;;  %v5330_v39 = vld [vmem:[#allocation2 + $0xe0] sm:$0xff]  ;;  %v5333_v26 = vld [vmem:[#allocation2 + $0x108] sm:$0xff]  ;;  %v5340_v38 = vld [vmem:[#allocation2 + $0x158] sm:$0xff] }
 0x444   : > { %v13258_v28 = vpack.c.bf16 %v5330_v39, %v5329_v6  ;;  %v13266_v24 = vpack.c.bf16 %v5334_v40, %v5333_v26  ;;  %v5335_v59 = vld [vmem:[#allocation2 + $0x120] sm:$0xff]  ;;  %v5337_v47 = vld [vmem:[#allocation2 + $0x138] sm:$0xff]  ;;  %v5844_v60 = vld [vmem:[#allocation2 + $0x6a] sm:$0xff] }
 0x445   : > { %9585 = vmatmul.mubr.msk.bf16.gmra.mrb[28].mxu0 %vm5222_vm8, %v13199_v29  ;;  %v13268_v8 = vpack.c.bf16 %v5336_v20, %v5335_v59  ;;  %v5338_v7 = vld [vmem:[#allocation2 + $0x140] sm:$0xff]  ;;  %v5842_v19 = vld [vmem:[#allocation2 + $0x52] sm:$0xff]  ;;  %v5849_v59 = vld [vmem:[#allocation2 + $0xaa] sm:$0xff] }
 0x446   : > { %9588 = vmatprep.mubr.msk.bf16.mxu0 %vm5222_vm8, %v13201_v53  ;;  %v13274_v9 = vpack.c.bf16 %v5338_v7, %v5337_v47  ;;  %v5843_v58 = vld [vmem:[#allocation2 + $0x62] sm:$0xff]  ;;  %v13298_v39 = vpack.c.bf16 %v5842_v19, %v5841_v5  ;;  %v5847_v55 = vld [vmem:[#allocation2 + $0x92] sm:$0xff]  ;;  %v5848_v40 = vld [vmem:[#allocation2 + $0x9a] sm:$0xff] }
 0x447   : > { %v13300_v43 = vpack.c.bf16 %v5844_v60, %v5843_v58  ;;  %v5846_v6 = vld [vmem:[#allocation2 + $0x82] sm:$0xff]  ;;  %v13308_v26 = vpack.c.bf16 %v5848_v40, %v5847_v55  ;;  %v5850_v7 = vld [vmem:[#allocation2 + $0xb2] sm:$0xff]  ;;  %v5852_v47 = vld [vmem:[#allocation2 + $0xca] sm:$0xff] }
 0x448   : > { %v5390_v25 = vld [vmem:[#allocation2 + $0x169] sm:$0xff]  ;;  %v5858_v32 = vld [vmem:[#allocation2 + $0x112] sm:$0xff]  ;;  %v5861_v60 = vld [vmem:[#allocation2 + $0x13a] sm:$0xff] }
 0x449   : > { %v5341_v23 = vld [vmem:[#allocation2 + $0x168] sm:$0xff]  ;;  %v5864_v55 = vld [vmem:[#allocation2 + $0x15a] sm:$0xff] }
 0x44a   : > { %v5391_v41 = vld [vmem:[#allocation2 + $0x171] sm:$0xff] }
 0x44b   : > { %v13207_v27 = vpack.c.bf16 %v5391_v41, %v5390_v25  ;;  %v5339_v25 = vld [vmem:[#allocation2 + $0x150] sm:$0xff] }
 0x44c   : > { %v13276_v41 = vpack.c.bf16 %v5340_v38, %v5339_v25  ;;  %v5342_v16 = vld [vmem:[#allocation2 + $0x170] sm:$0xff]  ;;  %v5851_v38 = vld [vmem:[#allocation2 + $0xc2] sm:$0xff]  ;;  %v13314_v25 = vpack.c.bf16 %v5850_v7, %v5849_v59 }
 0x44d   : > { %9589 = vmatmul.mubr.msk.bf16.gmra.mrb[32].mxu0 %vm5222_vm8, %v13207_v27  ;;  %v5857_v34 = vld [vmem:[#allocation2 + $0x10a] sm:$0xff] }
 0x44e   : > { %9594 = vmatprep.mubr.msk.bf16.mxu0 %vm5222_vm8, %v5343_v62  ;;  %v5835_v62 = vld [vmem:[#allocation2 + $0x2] sm:$0xff]  ;;  %v5860_v5 = vld [vmem:[#allocation2 + $0x12a] sm:$0xff]  ;;  %v13330_v19 = vpack.c.bf16 %v5858_v32, %v5857_v34  ;;  %v7649_v32 = vld [vmem:[#allocation15 + $0x20] sm:$0xf] }
 0x44f   : > { %v5867_v4 = vpack.c.bf16 %v5836_v15, %v5835_v62  ;;  %v13316_v62 = vpack.c.bf16 %v5852_v47, %v5851_v38  ;;  %v5853_v15 = vld [vmem:[#allocation2 + $0xda] sm:$0xff]  ;;  %v5865_v7 = vld [vmem:[#allocation2 + $0x16a] sm:$0xff]  ;;  %v5866_v38 = vld [vmem:[#allocation2 + $0x172] sm:$0xff] }
 0x450   : > { %v13346_v47 = vpack.c.bf16 %v5866_v38, %v5865_v7  ;;  %v7061_v34 = vld [vmem:[#allocation15 + $0x18] sm:$0xf] }
 0x451   : > { %v7319_v7 = vld [vmem:[#allocation2 + $0xc9] sm:$0xff] }
 0x452   : > { %v7316_v38 = vld [vmem:[#allocation2 + $0xa9] sm:$0xff] }
 0x455   : > { %9595 = vmatmul.mubr.msk.bf16.vlgmr.msra.gmra.mrb[4].mxu0 %vm5222_vm8, %v13212_v13 }
 0x456   : > { %9598 = vmatprep.mubr.msk.bf16.mxu0 %vm5222_vm8, %v13216_v21  ;;  %9627 = vmatpush3.bf16.msra.mxu0 %v5934_v37  ;;  %v13282_v37 = vpack.c.bf16 %v5342_v16, %v5341_v23  ;;  %v5854_v16 = vld [vmem:[#allocation2 + $0xe2] sm:$0xff]  ;;  %v5855_v23 = vld [vmem:[#allocation2 + $0xf2] sm:$0xff] }
 0x457   : > { %10392 = vmatprep.subr.msk.bf16.mxu0 %vm5458_vm10, %v13218_v49  ;;  %v5845_v49 = vld [vmem:[#allocation2 + $0x7a] sm:$0xff]  ;;  %v13322_v0 = vpack.c.bf16 %v5854_v16, %v5853_v15  ;;  %v6522_v15 = vsel %vm5458_vm10, %v6472_v11, 0  ;;  %v6766_v16 = vld [vmem:[#allocation15 + $0x14] sm:$0xf] }
 0x458   : > { %v13306_v20 = vpack.c.bf16 %v5846_v6, %v5845_v49  ;;  %v5862_v49 = vld [vmem:[#allocation2 + $0x142] sm:$0xff]  ;;  %v5863_v6 = vld [vmem:[#allocation2 + $0x152] sm:$0xff] }
 0x459   : > { %v13338_v40 = vpack.c.bf16 %v5862_v49, %v5861_v60  ;;  %v13340_v59 = vpack.c.bf16 %v5864_v55, %v5863_v6  ;;  %v7314_v49 = vld [vmem:[#allocation2 + $0x91] sm:$0xff] }
 0x45a   : > { %v7317_v55 = vld [vmem:[#allocation2 + $0xb1] sm:$0xff] }
 0x45d   : > { %9599 = vmatmul.mubr.msk.bf16.gmra.mrb[8].mxu0 %vm5222_vm8, %v13226_v46 }
 0x45e   : > { %9602 = vmatprep.mubr.msk.bf16.mxu0 %vm5222_vm8, %v13228_v17 }
 0x465   : > { %9603 = vmatmul.mubr.msk.bf16.gmra.mrb[12].mxu0 %vm5222_vm8, %v13242_v57 }
 0x466   : > { %9606 = vmatprep.mubr.msk.bf16.mxu0 %vm5222_vm8, %v13244_v3 }
 0x46d   : > { %9607 = vmatmul.mubr.msk.bf16.gmra.mrb[16].mxu0 %vm5222_vm8, %v13250_v33 }
 0x46e   : > { %9610 = vmatprep.mubr.msk.bf16.mxu0 %vm5222_vm8, %v13252_v18 }
 0x475   : > { %9611 = vmatmul.mubr.msk.bf16.gmra.mrb[20].mxu0 %vm5222_vm8, %v13258_v28 }
 0x476   : > { %9614 = vmatprep.mubr.msk.bf16.mxu0 %vm5222_vm8, %v13260_v61 }
 0x47d   : > { %9615 = vmatmul.mubr.msk.bf16.gmra.mrb[24].mxu0 %vm5222_vm8, %v13266_v24 }
 0x47e   : > { %9618 = vmatprep.mubr.msk.bf16.mxu0 %vm5222_vm8, %v13268_v8 }
 0x485   : > { %9619 = vmatmul.mubr.msk.bf16.gmra.mrb[28].mxu0 %vm5222_vm8, %v13274_v9 }
 0x486   : > { %9622 = vmatprep.mubr.msk.bf16.mxu0 %vm5222_vm8, %v13276_v41 }
 0x48d   : > { %9623 = vmatmul.mubr.msk.bf16.gmra.mrb[32].mxu0 %vm5222_vm8, %v13282_v37 }
 0x48e   : > { %9628 = vmatprep.mubr.msk.bf16.mxu0 %vm5222_vm8, %v5867_v4  ;;  %v5856_v4 = vld [vmem:[#allocation2 + $0xfa] sm:$0xff] }
 0x48f   : > { %v13324_v14 = vpack.c.bf16 %v5856_v4, %v5855_v23  ;;  %v6816_v4 = vsel %vm5458_vm10, %v6766_v16, 0 }
 0x495   : > { %9629 = vmatmul.mubr.msk.bf16.vlgmr.msra.gmra.mrb[4].mxu0 %vm5222_vm8, %v13287_v30 }
 0x496   : > { %9632 = vmatprep.mubr.msk.bf16.mxu0 %vm5222_vm8, %v13291_v12  ;;  %9661 = vmatpush3.bf16.msra.mxu0 %v6228_v35  ;;  %v5859_v35 = vld [vmem:[#allocation2 + $0x122] sm:$0xff] }
 0x497   : > { %10393 = vmatprep.subr.msk.bf16.mxu0 %vm5458_vm10, %v6472_v11  ;;  %v13332_v58 = vpack.c.bf16 %v5860_v5, %v5859_v35  ;;  %v6159_v11 = vld [vmem:[#allocation2 + $0x180] sm:$0xff] }
 0x498   : > { %v7315_v35 = vld [vmem:[#allocation2 + $0x99] sm:$0xff] }
 0x499   : > { %v7312_v5 = vld [vmem:[#allocation2 + $0x79] sm:$0xff]  ;;  %v7342_v6 = vpack.c.bf16 %v7315_v35, %v7314_v49 }
 0x49d   : > { %9633 = vmatmul.mubr.msk.bf16.gmra.mrb[8].mxu0 %vm5222_vm8, %v13298_v39 }
 0x49e   : > { %9636 = vmatprep.mubr.msk.bf16.mxu0 %vm5222_vm8, %v13300_v43 }
 0x4a5   : > { %9637 = vmatmul.mubr.msk.bf16.gmra.mrb[12].mxu0 %vm5222_vm8, %v13306_v20 }
 0x4a6   : > { %9640 = vmatprep.mubr.msk.bf16.mxu0 %vm5222_vm8, %v13308_v26 }
 0x4ad   : > { %9641 = vmatmul.mubr.msk.bf16.gmra.mrb[16].mxu0 %vm5222_vm8, %v13314_v25 }
 0x4ae   : > { %9644 = vmatprep.mubr.msk.bf16.mxu0 %vm5222_vm8, %v13316_v62 }
 0x4b5   : > { %9645 = vmatmul.mubr.msk.bf16.gmra.mrb[20].mxu0 %vm5222_vm8, %v13322_v0 }
 0x4b6   : > { %9648 = vmatprep.mubr.msk.bf16.mxu0 %vm5222_vm8, %v13324_v14 }
 0x4bd   : > { %9649 = vmatmul.mubr.msk.bf16.gmra.mrb[24].mxu0 %vm5222_vm8, %v13330_v19 }
 0x4be   : > { %9652 = vmatprep.mubr.msk.bf16.mxu0 %vm5222_vm8, %v13332_v58 }
 0x4c5   : > { %9653 = vmatmul.mubr.msk.bf16.gmra.mrb[28].mxu0 %vm5222_vm8, %v13338_v40 }
 0x4c6   : > { %9656 = vmatprep.mubr.msk.bf16.mxu0 %vm5222_vm8, %v13340_v59 }
 0x4cd   : > { %9657 = vmatmul.mubr.msk.bf16.gmra.mrb[32].mxu0 %vm5222_vm8, %v13346_v47 }
 0x4ce   : > { %9662 = vmatprep.mubr.msk.bf16.mxu0 %vm5222_vm8, %v13212_v13  ;;  %v6160_v13 = vld [vmem:[#allocation2 + $0x188] sm:$0xff] }
 0x4cf   : > { %v13382_v23 = vpack.c.bf16 %v6160_v13, %v6159_v11 }
 0x4d5   : > { %9663 = vmatmul.mubr.msk.bf16.vlgmr.msra.gmra.mrb[4].mxu0 %vm5222_vm8, %v13216_v21 }
 0x4d6   : > { %9666 = vmatprep.mubr.msk.bf16.mxu0 %vm5222_vm8, %v13226_v46  ;;  %9695 = vmatpush3.bf16.msra.mxu0 %v6522_v15  ;;  %v7343_v15 = vpack.c.bf16 %v7317_v55, %v7316_v38 }
 0x4d7   : > { %10394 = vmatprep.subr.msk.bf16.mxu0 %vm5458_vm10, %v6766_v16  ;;  %v7318_v16 = vld [vmem:[#allocation2 + $0xc1] sm:$0xff] }
 0x4d8   : > { %v7344_v13 = vpack.c.bf16 %v7319_v7, %v7318_v16 }
 0x4dd   : > { %9667 = vmatmul.mubr.msk.bf16.gmra.mrb[8].mxu0 %vm5222_vm8, %v13228_v17 }
 0x4de   : > { %9670 = vmatprep.mubr.msk.bf16.mxu0 %vm5222_vm8, %v13242_v57 }
 0x4e5   : > { %9671 = vmatmul.mubr.msk.bf16.gmra.mrb[12].mxu0 %vm5222_vm8, %v13244_v3 }
 0x4e6   : > { %9674 = vmatprep.mubr.msk.bf16.mxu0 %vm5222_vm8, %v13250_v33 }
 0x4ed   : > { %9675 = vmatmul.mubr.msk.bf16.gmra.mrb[16].mxu0 %vm5222_vm8, %v13252_v18 }
 0x4ee   : > { %9678 = vmatprep.mubr.msk.bf16.mxu0 %vm5222_vm8, %v13258_v28 }
 0x4f5   : > { %9679 = vmatmul.mubr.msk.bf16.gmra.mrb[20].mxu0 %vm5222_vm8, %v13260_v61 }
 0x4f6   : > { %9682 = vmatprep.mubr.msk.bf16.mxu0 %vm5222_vm8, %v13266_v24 }
 0x4fd   : > { %9683 = vmatmul.mubr.msk.bf16.gmra.mrb[24].mxu0 %vm5222_vm8, %v13268_v8 }
 0x4fe   : > { %9686 = vmatprep.mubr.msk.bf16.mxu0 %vm5222_vm8, %v13274_v9 }
 0x505   : > { %9687 = vmatmul.mubr.msk.bf16.gmra.mrb[28].mxu0 %vm5222_vm8, %v13276_v41 }
 0x506   : > { %9690 = vmatprep.mubr.msk.bf16.mxu0 %vm5222_vm8, %v13282_v37 }
 0x50d   : > { %9691 = vmatmul.mubr.msk.bf16.gmra.mrb[32].mxu0 %vm5222_vm8, %v13382_v23 }
 0x50e   : > { %9696 = vmatprep.mubr.msk.bf16.mxu0 %vm5222_vm8, %v13100_v45  ;;  %v6454_v45 = vld [vmem:[#allocation2 + $0x189] sm:$0xff] }
 0x515   : > { %9697 = vmatmul.mubr.msk.bf16.vlgmr.msra.gmra.mrb[4].mxu0 %vm5222_vm8, %v13104_v22  ;;  %v6453_v22 = vld [vmem:[#allocation2 + $0x181] sm:$0xff] }
 0x516   : > { %9700 = vmatprep.mubr.msk.bf16.mxu0 %vm5222_vm8, %v13121_v42  ;;  %9729 = vmatpush3.bf16.msra.mxu0 %v6816_v4  ;;  %v13418_v42 = vpack.c.bf16 %v6454_v45, %v6453_v22 }
 0x517   : > { %10395 = vmatprep.subr.msk.bf16.mxu0 %vm5458_vm10, %v7061_v34 }
 0x51d   : > { %9701 = vmatmul.mubr.msk.bf16.gmra.mrb[8].mxu0 %vm5222_vm8, %v13124_v63  ;;  %v7111_v63 = vsel %vm5458_vm10, %v7061_v34, 0  ;;  %v13558_v34 = vld [vmem:[#allocation10] ss:$0 sm:$0xff] }
 0x51e   : > { %9704 = vmatprep.mubr.msk.bf16.mxu0 %vm5222_vm8, %v13137_v44  ;;  %v7355_v44 = vld [vmem:[#allocation15 + $0x1c] sm:$0xf]  ;;  %v532_v22 = vadd.f32 %v13558_v34, %v13236_v52  ;;  %v540_v55 = vadd.f32 %v13232_v54, %v13558_v34 }
 0x525   : > { %9705 = vmatmul.mubr.msk.bf16.gmra.mrb[12].mxu0 %vm5222_vm8, %v13140_v50  ;;  %v6747_v50 = vld [vmem:[#allocation2 + $0x182] sm:$0xff] }
 0x526   : > { %9708 = vmatprep.mubr.msk.bf16.mxu0 %vm5222_vm8, %v13153_v56  ;;  %v6748_v56 = vld [vmem:[#allocation2 + $0x18a] sm:$0xff] }
 0x52d   : > { %9709 = vmatmul.mubr.msk.bf16.gmra.mrb[16].mxu0 %vm5222_vm8, %v13156_v48  ;;  %v13454_v48 = vpack.c.bf16 %v6748_v56, %v6747_v50 }
 0x52e   : > { %9712 = vmatprep.mubr.msk.bf16.mxu0 %vm5222_vm8, %v13169_v2 }
 0x535   : > { %9713 = vmatmul.mubr.msk.bf16.gmra.mrb[20].mxu0 %vm5222_vm8, %v13172_v51 }
 0x536   : > { %9716 = vmatprep.mubr.msk.bf16.mxu0 %vm5222_vm8, %v13185_v1 }
 0x53d   : > { %9717 = vmatmul.mubr.msk.bf16.gmra.mrb[24].mxu0 %vm5222_vm8, %v13188_v10 }
 0x53e   : > { %9720 = vmatprep.mubr.msk.bf16.mxu0 %vm5222_vm8, %v13199_v29 }
 0x545   : > { %9721 = vmatmul.mubr.msk.bf16.gmra.mrb[28].mxu0 %vm5222_vm8, %v13201_v53 }
 0x546   : > { %9724 = vmatprep.mubr.msk.bf16.mxu0 %vm5222_vm8, %v13207_v27 }
 0x54d   : > { %9725 = vmatmul.mubr.msk.bf16.gmra.mrb[32].mxu0 %vm5222_vm8, %v13418_v42 }
 0x54e   : > { %9730 = vmatprep.mubr.msk.bf16.mxu0 %vm5222_vm8, %v13287_v30  ;;  %v7405_v30 = vsel %vm5458_vm10, %v7355_v44, 0 }
 0x555   : > { %9731 = vmatmul.mubr.msk.bf16.vlgmr.msra.gmra.mrb[4].mxu0 %vm5222_vm8, %v13291_v12 }
 0x556   : > { %9734 = vmatprep.mubr.msk.bf16.mxu0 %vm5222_vm8, %v13298_v39  ;;  %9763 = vmatpush3.bf16.msra.mxu0 %v7111_v63 }
 0x557   : > { %10396 = vmatprep.subr.msk.bf16.mxu0 %vm5458_vm10, %v7355_v44 }
 0x55d   : > { %9735 = vmatmul.mubr.msk.bf16.gmra.mrb[8].mxu0 %vm5222_vm8, %v13300_v43 }
 0x55e   : > { %9738 = vmatprep.mubr.msk.bf16.mxu0 %vm5222_vm8, %v13306_v20 }
 0x565   : > { %9739 = vmatmul.mubr.msk.bf16.gmra.mrb[12].mxu0 %vm5222_vm8, %v13308_v26 }
 0x566   : > { %9742 = vmatprep.mubr.msk.bf16.mxu0 %vm5222_vm8, %v13314_v25 }
 0x56d   : > { %9743 = vmatmul.mubr.msk.bf16.gmra.mrb[16].mxu0 %vm5222_vm8, %v13316_v62 }
 0x56e   : > { %9746 = vmatprep.mubr.msk.bf16.mxu0 %vm5222_vm8, %v13322_v0 }
 0x575   : > { %9747 = vmatmul.mubr.msk.bf16.gmra.mrb[20].mxu0 %vm5222_vm8, %v13324_v14 }
 0x576   : > { %9750 = vmatprep.mubr.msk.bf16.mxu0 %vm5222_vm8, %v13330_v19 }
 0x57d   : > { %9751 = vmatmul.mubr.msk.bf16.gmra.mrb[24].mxu0 %vm5222_vm8, %v13332_v58 }
 0x57e   : > { %9754 = vmatprep.mubr.msk.bf16.mxu0 %vm5222_vm8, %v13338_v40 }
 0x585   : > { %9755 = vmatmul.mubr.msk.bf16.gmra.mrb[28].mxu0 %vm5222_vm8, %v13340_v59 }
 0x586   : > { %9758 = vmatprep.mubr.msk.bf16.mxu0 %vm5222_vm8, %v13346_v47 }
 0x58d   : > { %9759 = vmatmul.mubr.msk.bf16.gmra.mrb[32].mxu0 %vm5222_vm8, %v13454_v48 }
 0x58e   : > { %9764 = vmatprep.mubr.msk.bf16.mxu0 %vm5222_vm8, %v13216_v21  ;;  %v7042_v21 = vld [vmem:[#allocation2 + $0x198] sm:$0xff] }
 0x595   : > { %9765 = vmatmul.mubr.msk.bf16.vlgmr.msra.gmra.mrb[4].mxu0 %vm5222_vm8, %v13226_v46  ;;  %v7043_v46 = vld [vmem:[#allocation2 + $0x1a0] sm:$0xff] }
 0x596   : > { %9768 = vmatprep.mubr.msk.bf16.mxu0 %vm5222_vm8, %v13228_v17  ;;  %9797 = vmatpush3.bf16.msra.mxu0 %v7405_v30  ;;  %v7059_v17 = vpack.c.bf16 %v7043_v46, %v7042_v21 }
 0x597   : > { %10397 = vmatprep.subr.msk.bf16.mxu0 %vm5458_vm10, %v7649_v32 }
 0x59d   : > { %9769 = vmatmul.mubr.msk.bf16.gmra.mrb[8].mxu0 %vm5222_vm8, %v13242_v57  ;;  %v7307_v57 = vld [vmem:[#allocation2 + $0x39] sm:$0xff] }
 0x59e   : > { %9772 = vmatprep.mubr.msk.bf16.mxu0 %vm5222_vm8, %v13244_v3  ;;  %v7306_v3 = vld [vmem:[#allocation2 + $0x31] sm:$0xff] }
 0x5a5   : > { %9773 = vmatmul.mubr.msk.bf16.gmra.mrb[12].mxu0 %vm5222_vm8, %v13250_v33  ;;  %v7338_v33 = vpack.c.bf16 %v7307_v57, %v7306_v3 }
 0x5a6   : > { %9776 = vmatprep.mubr.msk.bf16.mxu0 %vm5222_vm8, %v13252_v18  ;;  %v7309_v18 = vld [vmem:[#allocation2 + $0x51] sm:$0xff] }
 0x5ad   : > { %9777 = vmatmul.mubr.msk.bf16.gmra.mrb[16].mxu0 %vm5222_vm8, %v13258_v28  ;;  %v7311_v28 = vld [vmem:[#allocation2 + $0x69] sm:$0xff] }
 0x5ae   : > { %9780 = vmatprep.mubr.msk.bf16.mxu0 %vm5222_vm8, %v13260_v61  ;;  %v7308_v61 = vld [vmem:[#allocation2 + $0x49] sm:$0xff] }
 0x5b5   : > { %9781 = vmatmul.mubr.msk.bf16.gmra.mrb[20].mxu0 %vm5222_vm8, %v13266_v24  ;;  %v7339_v24 = vpack.c.bf16 %v7309_v18, %v7308_v61 }
 0x5b6   : > { %9784 = vmatprep.mubr.msk.bf16.mxu0 %vm5222_vm8, %v13268_v8  ;;  %v7310_v8 = vld [vmem:[#allocation2 + $0x61] sm:$0xff] }
 0x5bd   : > { %9785 = vmatmul.mubr.msk.bf16.gmra.mrb[24].mxu0 %vm5222_vm8, %v13274_v9  ;;  %v7699_v9 = vsel %vm5458_vm10, %v7649_v32, 0 }
 0x5be   : > { %9788 = vmatprep.mubr.msk.bf16.mxu0 %vm5222_vm8, %v13276_v41  ;;  %v7340_v41 = vpack.c.bf16 %v7311_v28, %v7310_v8 }
 0x5c5   : > { %9789 = vmatmul.mubr.msk.bf16.gmra.mrb[28].mxu0 %vm5222_vm8, %v13282_v37  ;;  %v7313_v37 = vld [vmem:[#allocation2 + $0x81] sm:$0xff] }
 0x5c6   : > { %9792 = vmatprep.mubr.msk.bf16.mxu0 %vm5222_vm8, %v13382_v23  ;;  %v7341_v60 = vpack.c.bf16 %v7313_v37, %v7312_v5 }
 0x5cd   : > { %9793 = vmatmul.mubr.msk.bf16.gmra.mrb[32].mxu0 %vm5222_vm8, %v7059_v17 }
 0x5ce   : > { %9798 = vmatprep.mubr.msk.bf16.mxu0 %vm5222_vm8, %v7338_v33  ;;  %v535_v33 = vadd.f32 %v13558_v34, %v13240_v31 }
 0x5d5   : > { %9799 = vmatmul.mubr.msk.bf16.vlgmr.msra.gmra.mrb[4].mxu0 %vm5222_vm8, %v7339_v24 }
 0x5d6   : > { %9802 = vmatprep.mubr.msk.bf16.mxu0 %vm5222_vm8, %v7340_v41  ;;  %9831 = vmatpush3.bf16.msra.mxu0 %v7699_v9 }
 0x5dd   : > { %9803 = vmatmul.mubr.msk.bf16.gmra.mrb[8].mxu0 %vm5222_vm8, %v7341_v60 }
 0x5de   : > { %9806 = vmatprep.mubr.msk.bf16.mxu0 %vm5222_vm8, %v7342_v6 }
 0x5e5   : > { %9807 = vmatmul.mubr.msk.bf16.gmra.mrb[12].mxu0 %vm5222_vm8, %v7343_v15 }
 0x5e6   : > { %9810 = vmatprep.mubr.msk.bf16.mxu0 %vm5222_vm8, %v7344_v13 }
 0x5ed   : > { %9811 = vmatmul.mubr.msk.bf16.gmra.mrb[16].mxu0 %vm5222_vm8, %v13169_v2  ;;  %v7336_v2 = vld [vmem:[#allocation2 + $0x199] sm:$0xff] }
 0x5ee   : > { %9814 = vmatprep.mubr.msk.bf16.mxu0 %vm5222_vm8, %v13172_v51  ;;  %v7337_v51 = vld [vmem:[#allocation2 + $0x1a1] sm:$0xff] }
 0x5ef   : > { %v7353_v11 = vpack.c.bf16 %v7337_v51, %v7336_v2 }
 0x5f5   : > { %9815 = vmatmul.mubr.msk.bf16.gmra.mrb[20].mxu0 %vm5222_vm8, %v13185_v1  ;;  %v7630_v1 = vld [vmem:[#allocation2 + $0x19a] sm:$0xff] }
 0x5f6   : > { %9818 = vmatprep.mubr.msk.bf16.mxu0 %vm5222_vm8, %v13188_v10  ;;  %v7631_v10 = vld [vmem:[#allocation2 + $0x1a2] sm:$0xff] }
 0x5fd   : > { %9819 = vmatmul.mubr.msk.bf16.gmra.mrb[24].mxu0 %vm5222_vm8, %v13199_v29  ;;  %v7647_v29 = vpack.c.bf16 %v7631_v10, %v7630_v1 }
 0x5fe   : > { %9822 = vmatprep.mubr.msk.bf16.mxu0 %vm5222_vm8, %v13201_v53 }
 0x605   : > { %9823 = vmatmul.mubr.msk.bf16.gmra.mrb[28].mxu0 %vm5222_vm8, %v13207_v27 }
 0x606   : > { %9826 = vmatprep.mubr.msk.bf16.mxu0 %vm5222_vm8, %v13418_v42 }
 0x60d   : > { %9827 = vmatmul.mubr.msk.bf16.gmra.mrb[32].mxu0 %vm5222_vm8, %v7353_v11 }
 0x60e   : > { %9832 = vmatprep.mubr.msk.bf16.mxu0 %vm5222_vm8, %v13291_v12 }
 0x615   : > { %9833 = vmatmul.mubr.msk.bf16.vlgmr.msra.gmra.mrb[4].mxu0 %vm5222_vm8, %v13298_v39 }
 0x616   : > { %9836 = vmatprep.mubr.msk.bf16.mxu0 %vm5222_vm8, %v13300_v43 }
 0x61d   : > { %9837 = vmatmul.mubr.msk.bf16.gmra.mrb[8].mxu0 %vm5222_vm8, %v13306_v20 }
 0x61e   : > { %9840 = vmatprep.mubr.msk.bf16.mxu0 %vm5222_vm8, %v13308_v26 }
 0x625   : > { %9841 = vmatmul.mubr.msk.bf16.gmra.mrb[12].mxu0 %vm5222_vm8, %v13314_v25 }
 0x626   : > { %9844 = vmatprep.mubr.msk.bf16.mxu0 %vm5222_vm8, %v13316_v62 }
 0x62d   : > { %9845 = vmatmul.mubr.msk.bf16.gmra.mrb[16].mxu0 %vm5222_vm8, %v13322_v0 }
 0x62e   : > { %9848 = vmatprep.mubr.msk.bf16.mxu0 %vm5222_vm8, %v13324_v14 }
 0x635   : > { %9849 = vmatmul.mubr.msk.bf16.gmra.mrb[20].mxu0 %vm5222_vm8, %v13330_v19 }
 0x636   : > { %9852 = vmatprep.mubr.msk.bf16.mxu0 %vm5222_vm8, %v13332_v58 }
 0x63d   : > { %9853 = vmatmul.mubr.msk.bf16.gmra.mrb[24].mxu0 %vm5222_vm8, %v13338_v40 }
 0x63e   : > { %9856 = vmatprep.mubr.msk.bf16.mxu0 %vm5222_vm8, %v13340_v59 }
 0x645   : > { %9857 = vmatmul.mubr.msk.bf16.gmra.mrb[28].mxu0 %vm5222_vm8, %v13346_v47  ;;  %v13555_v47 = vld [vmem:[#allocation16] ss:$0 sm:$0xff] }
 0x646   : > { %9860 = vmatprep.mubr.msk.bf16.mxu0 %vm5222_vm8, %v13454_v48 }
 0x64d   : > { %9861 = vmatmul.mubr.msk.bf16.gmra.mrb[32].mxu0 %vm5222_vm8, %v7647_v29 }
 0x6e8   : > { %v9834_v53 = vpop.f32.mrb[4].mxu0 }
 0x6e9   : > { %7896 = vst.msk [vmem:[#allocation3 + $0x10] sm:$0xff] %vm5222_vm8, %v9834_v53  ;;  %v7735_v27 = vpop.f32.mrb[5].mxu0 }
 0x6ea   : > { %7894 = vst.msk [vmem:[#allocation3] sm:$0xff] %vm5222_vm8, %v7735_v27  ;;  %v9835_v12 = vpop.f32.mrb[6].mxu0 }
 0x6eb   : > { %7897 = vst.msk [vmem:[#allocation3 + $0x18] sm:$0xff] %vm5222_vm8, %v9835_v12  ;;  %v7738_v39 = vpop.f32.mrb[7].mxu0  ;;  %v543_v12 = vadd.f32 %v13238_v36, %v13558_v34 }
 0x6ec   : > { %7895 = vst.msk [vmem:[#allocation3 + $0x8] sm:$0xff] %vm5222_vm8, %v7738_v39 }
 0x6f0   : > { %v9838_v43 = vpop.f32.mrb[8].mxu0 }
 0x6f1   : > { %7900 = vst.msk [vmem:[#allocation3 + $0x30] sm:$0xff] %vm5222_vm8, %v9838_v43  ;;  %v7751_v20 = vpop.f32.mrb[9].mxu0 }
 0x6f2   : > { %v7928_v26 = vld [vmem:[#allocation3 + $0x10] ss:$2 sm:$0xff]  ;;  %v7960_v25 = vld [vmem:[#allocation3 + $0x11] ss:$2 sm:$0xff]  ;;  %7898 = vst.msk [vmem:[#allocation3 + $0x20] sm:$0xff] %vm5222_vm8, %v7751_v20  ;;  %v9839_v62 = vpop.f32.mrb[10].mxu0 }
 0x6f3   : > { %v7990_v0 = vadd.f32 %v7960_v25, %v7928_v26  ;;  %v7926_v14 = vld [vmem:[#allocation3] ss:$2 sm:$0xff]  ;;  %v7958_v19 = vld [vmem:[#allocation3 + $0x1] ss:$2 sm:$0xff]  ;;  %7901 = vst.msk [vmem:[#allocation3 + $0x38] sm:$0xff] %vm5222_vm8, %v9839_v62  ;;  %v7754_v58 = vpop.f32.mrb[11].mxu0 }
 0x6f4   : > { %v7989_v40 = vadd.f32 %v7958_v19, %v7926_v14  ;;  %7899 = vst.msk [vmem:[#allocation3 + $0x28] sm:$0xff] %vm5222_vm8, %v7754_v58 }
 0x6f6   : > { %v8005_v59 = vadd.f32 %v7990_v0, %v7989_v40 }
 0x6f8   : > { %v8013_v23 = vmul.f32 0.25, %v8005_v59  ;;  %v9842_v4 = vpop.f32.mrb[12].mxu0 }
 0x6f9   : > { %7904 = vst.msk [vmem:[#allocation3 + $0x50] sm:$0xff] %vm5222_vm8, %v9842_v4  ;;  %v7767_v45 = vpop.f32.mrb[13].mxu0  ;;  %v13837_v4 = vld [vmem:[#allocation27_spill] sm:$0xff] }
 0x6fa   : > { %v8028_v42 = vadd.f32 %v13555_v47, %v8013_v23  ;;  %v7932_v63 = vld [vmem:[#allocation3 + $0x30] ss:$2 sm:$0xff]  ;;  %v7964_v44 = vld [vmem:[#allocation3 + $0x31] ss:$2 sm:$0xff]  ;;  %7902 = vst.msk [vmem:[#allocation3 + $0x40] sm:$0xff] %vm5222_vm8, %v7767_v45  ;;  %v9843_v50 = vpop.f32.mrb[14].mxu0  ;;  %v548_v45 = vadd.f32 %v13558_v34, %v13837_v4 }
 0x6fb   : > { %v7992_v56 = vadd.f32 %v7964_v44, %v7932_v63  ;;  %v7930_v48 = vld [vmem:[#allocation3 + $0x20] ss:$2 sm:$0xff]  ;;  %v7962_v30 = vld [vmem:[#allocation3 + $0x21] ss:$2 sm:$0xff]  ;;  %7905 = vst.msk [vmem:[#allocation3 + $0x58] sm:$0xff] %vm5222_vm8, %v9843_v50  ;;  %v7770_v32 = vpop.f32.mrb[15].mxu0 }
 0x6fc   : > { %v8036_v21 = vadd.f32 %v8028_v42, %v532_v22  ;;  %v7991_v46 = vadd.f32 %v7962_v30, %v7930_v48  ;;  %7903 = vst.msk [vmem:[#allocation3 + $0x48] sm:$0xff] %vm5222_vm8, %v7770_v32 }
 0x6fe   : > { %v8006_v17 = vadd.f32 %v7992_v56, %v7991_v46  ;;  %8044 = vst.msk [vmem:[%s13567_s2] sm:$0xff] %vm5222_vm8, %v8036_v21 }
 0x700   : > { %v8014_v52 = vmul.f32 0.25, %v8006_v17  ;;  %v9846_v57 = vpop.f32.mrb[16].mxu0 }
 0x701   : > { %7908 = vst.msk [vmem:[#allocation3 + $0x70] sm:$0xff] %vm5222_vm8, %v9846_v57  ;;  %v7783_v3 = vpop.f32.mrb[17].mxu0 }
 0x702   : > { %v8029_v18 = vadd.f32 %v13555_v47, %v8014_v52  ;;  %v7936_v28 = vld [vmem:[#allocation3 + $0x50] ss:$2 sm:$0xff]  ;;  %v7968_v61 = vld [vmem:[#allocation3 + $0x51] ss:$2 sm:$0xff]  ;;  %7906 = vst.msk [vmem:[#allocation3 + $0x60] sm:$0xff] %vm5222_vm8, %v7783_v3  ;;  %v9847_v24 = vpop.f32.mrb[18].mxu0 }
 0x703   : > { %v7994_v8 = vadd.f32 %v7968_v61, %v7936_v28  ;;  %v7934_v9 = vld [vmem:[#allocation3 + $0x40] ss:$2 sm:$0xff]  ;;  %v7966_v41 = vld [vmem:[#allocation3 + $0x41] ss:$2 sm:$0xff]  ;;  %7909 = vst.msk [vmem:[#allocation3 + $0x78] sm:$0xff] %vm5222_vm8, %v9847_v24  ;;  %v7786_v37 = vpop.f32.mrb[19].mxu0 }
 0x704   : > { %v8037_v35 = vadd.f32 %v8029_v18, %v535_v33  ;;  %v7993_v5 = vadd.f32 %v7966_v41, %v7934_v9  ;;  %7907 = vst.msk [vmem:[#allocation3 + $0x68] sm:$0xff] %vm5222_vm8, %v7786_v37  ;;  %v13838_v3 = vld [vmem:[#allocation29_spill] sm:$0xff] }
 0x705   : > { %v551_v33 = vadd.f32 %v13558_v34, %v13838_v3 }
 0x706   : > { %v8007_v60 = vadd.f32 %v7994_v8, %v7993_v5  ;;  %8045 = vst.msk [vmem:[%s13567_s2 + $0x8] sm:$0xff] %vm5222_vm8, %v8037_v35 }
 0x708   : > { %v8015_v31 = vmul.f32 0.25, %v8007_v60  ;;  %v9850_v49 = vpop.f32.mrb[20].mxu0 }
 0x709   : > { %7912 = vst.msk [vmem:[#allocation3 + $0x90] sm:$0xff] %vm5222_vm8, %v9850_v49  ;;  %v7799_v6 = vpop.f32.mrb[21].mxu0  ;;  %v13839_v49 = vld [vmem:[#allocation26_spill] sm:$0xff] }
 0x70a   : > { %v8030_v7 = vadd.f32 %v13555_v47, %v8015_v31  ;;  %v7940_v38 = vld [vmem:[#allocation3 + $0x70] ss:$2 sm:$0xff]  ;;  %v7972_v15 = vld [vmem:[#allocation3 + $0x71] ss:$2 sm:$0xff]  ;;  %7910 = vst.msk [vmem:[#allocation3 + $0x80] sm:$0xff] %vm5222_vm8, %v7799_v6  ;;  %v9851_v16 = vpop.f32.mrb[22].mxu0  ;;  %v556_v6 = vadd.f32 %v13839_v49, %v13558_v34 }
 0x70b   : > { %v7996_v13 = vadd.f32 %v7972_v15, %v7940_v38  ;;  %v7938_v2 = vld [vmem:[#allocation3 + $0x60] ss:$2 sm:$0xff]  ;;  %v7970_v51 = vld [vmem:[#allocation3 + $0x61] ss:$2 sm:$0xff]  ;;  %7913 = vst.msk [vmem:[#allocation3 + $0x98] sm:$0xff] %vm5222_vm8, %v9851_v16  ;;  %v7802_v11 = vpop.f32.mrb[23].mxu0 }
 0x70c   : > { %v8038_v1 = vadd.f32 %v8030_v7, %v540_v55  ;;  %v7995_v10 = vadd.f32 %v7970_v51, %v7938_v2  ;;  %7911 = vst.msk [vmem:[#allocation3 + $0x88] sm:$0xff] %vm5222_vm8, %v7802_v11 }
 0x70e   : > { %v8008_v29 = vadd.f32 %v7996_v13, %v7995_v10  ;;  %8046 = vst.msk [vmem:[%s13567_s2 + $0x10] sm:$0xff] %vm5222_vm8, %v8038_v1  ;;  %v13840_v10 = vld [vmem:[#allocation28_spill] sm:$0xff] }
 0x710   : > { %v8016_v54 = vmul.f32 0.25, %v8008_v29  ;;  %v9854_v53 = vpop.f32.mrb[24].mxu0  ;;  %v559_v29 = vadd.f32 %v13840_v10, %v13558_v34 }
 0x711   : > { %7916 = vst.msk [vmem:[#allocation3 + $0xb0] sm:$0xff] %vm5222_vm8, %v9854_v53  ;;  %v7815_v27 = vpop.f32.mrb[25].mxu0 }
 0x712   : > { %v8031_v39 = vadd.f32 %v13555_v47, %v8016_v54  ;;  %v7944_v43 = vld [vmem:[#allocation3 + $0x90] ss:$2 sm:$0xff]  ;;  %v7976_v20 = vld [vmem:[#allocation3 + $0x91] ss:$2 sm:$0xff]  ;;  %7914 = vst.msk [vmem:[#allocation3 + $0xa0] sm:$0xff] %vm5222_vm8, %v7815_v27  ;;  %v9855_v26 = vpop.f32.mrb[26].mxu0 }
 0x713   : > { %v7998_v25 = vadd.f32 %v7976_v20, %v7944_v43  ;;  %v7942_v62 = vld [vmem:[#allocation3 + $0x80] ss:$2 sm:$0xff]  ;;  %v7974_v0 = vld [vmem:[#allocation3 + $0x81] ss:$2 sm:$0xff]  ;;  %7917 = vst.msk [vmem:[#allocation3 + $0xb8] sm:$0xff] %vm5222_vm8, %v9855_v26  ;;  %v7818_v14 = vpop.f32.mrb[27].mxu0 }
 0x714   : > { %v8039_v19 = vadd.f32 %v8031_v39, %v543_v12  ;;  %v7997_v58 = vadd.f32 %v7974_v0, %v7942_v62  ;;  %7915 = vst.msk [vmem:[#allocation3 + $0xa8] sm:$0xff] %vm5222_vm8, %v7818_v14 }
 0x716   : > { %v8009_v40 = vadd.f32 %v7998_v25, %v7997_v58  ;;  %8047 = vst.msk [vmem:[%s13567_s2 + $0x18] sm:$0xff] %vm5222_vm8, %v8039_v19 }
 0x718   : > { %v8017_v36 = vmul.f32 0.25, %v8009_v40  ;;  %v9858_v59 = vpop.f32.mrb[28].mxu0 }
 0x719   : > { %7920 = vst.msk [vmem:[#allocation3 + $0xd0] sm:$0xff] %vm5222_vm8, %v9858_v59  ;;  %v7831_v23 = vpop.f32.mrb[29].mxu0 }
 0x71a   : > { %v8032_v22 = vadd.f32 %v13555_v47, %v8017_v36  ;;  %v7948_v42 = vld [vmem:[#allocation3 + $0xb0] ss:$2 sm:$0xff]  ;;  %v7980_v63 = vld [vmem:[#allocation3 + $0xb1] ss:$2 sm:$0xff]  ;;  %7918 = vst.msk [vmem:[#allocation3 + $0xc0] sm:$0xff] %vm5222_vm8, %v7831_v23  ;;  %v9859_v44 = vpop.f32.mrb[30].mxu0 }
 0x71b   : > { %v8000_v50 = vadd.f32 %v7980_v63, %v7948_v42  ;;  %v7946_v56 = vld [vmem:[#allocation3 + $0xa0] ss:$2 sm:$0xff]  ;;  %v7978_v48 = vld [vmem:[#allocation3 + $0xa1] ss:$2 sm:$0xff]  ;;  %7921 = vst.msk [vmem:[#allocation3 + $0xd8] sm:$0xff] %vm5222_vm8, %v9859_v44  ;;  %v7834_v30 = vpop.f32.mrb[31].mxu0 }
 0x71c   : > { %v8040_v32 = vadd.f32 %v8032_v22, %v548_v45  ;;  %v7999_v21 = vadd.f32 %v7978_v48, %v7946_v56  ;;  %7919 = vst.msk [vmem:[#allocation3 + $0xc8] sm:$0xff] %vm5222_vm8, %v7834_v30 }
 0x71e   : > { %v8010_v46 = vadd.f32 %v8000_v50, %v7999_v21  ;;  %8048 = vst.msk [vmem:[%s13567_s2 + $0x20] sm:$0xff] %vm5222_vm8, %v8040_v32 }
 0x720   : > { %v8018_v17 = vmul.f32 0.25, %v8010_v46  ;;  %v9862_v52 = vpop.f32.mrb[32].mxu0 }
 0x721   : > { %7924 = vst.msk [vmem:[#allocation3 + $0xf0] sm:$0xff] %vm5222_vm8, %v9862_v52  ;;  %v7847_v57 = vpop.f32.mrb[33].mxu0 }
 0x722   : > { %v8033_v18 = vadd.f32 %v13555_v47, %v8018_v17  ;;  %v7952_v28 = vld [vmem:[#allocation3 + $0xd0] ss:$2 sm:$0xff]  ;;  %v7984_v61 = vld [vmem:[#allocation3 + $0xd1] ss:$2 sm:$0xff]  ;;  %7922 = vst.msk [vmem:[#allocation3 + $0xe0] sm:$0xff] %vm5222_vm8, %v7847_v57  ;;  %v9863_v24 = vpop.f32.mrb[34].mxu0 }
 0x723   : > { %v8002_v8 = vadd.f32 %v7984_v61, %v7952_v28  ;;  %v7950_v9 = vld [vmem:[#allocation3 + $0xc0] ss:$2 sm:$0xff]  ;;  %v7982_v41 = vld [vmem:[#allocation3 + $0xc1] ss:$2 sm:$0xff]  ;;  %7925 = vst.msk [vmem:[#allocation3 + $0xf8] sm:$0xff] %vm5222_vm8, %v9863_v24  ;;  %v7850_v37 = vpop.f32.mrb[35].mxu0 }
 0x724   : > { %v8041_v35 = vadd.f32 %v8033_v18, %v551_v33  ;;  %v8001_v5 = vadd.f32 %v7982_v41, %v7950_v9  ;;  %7923 = vst.msk [vmem:[#allocation3 + $0xe8] sm:$0xff] %vm5222_vm8, %v7850_v37 }
 0x726   : > { %v8011_v60 = vadd.f32 %v8002_v8, %v8001_v5  ;;  %8049 = vst.msk [vmem:[%s13567_s2 + $0x28] sm:$0xff] %vm5222_vm8, %v8041_v35 }
 0x728   : > { %v8019_v31 = vmul.f32 0.25, %v8011_v60 }
 0x72a   : > { %v8034_v55 = vadd.f32 %v13555_v47, %v8019_v31  ;;  %v7956_v7 = vld [vmem:[#allocation3 + $0xf0] ss:$2 sm:$0xff]  ;;  %v7988_v38 = vld [vmem:[#allocation3 + $0xf1] ss:$2 sm:$0xff] }
 0x72b   : > { %v8004_v15 = vadd.f32 %v7988_v38, %v7956_v7  ;;  %v7954_v16 = vld [vmem:[#allocation3 + $0xe0] ss:$2 sm:$0xff]  ;;  %v7986_v13 = vld [vmem:[#allocation3 + $0xe1] ss:$2 sm:$0xff] }
 0x72c   : > { %v8042_v2 = vadd.f32 %v8034_v55, %v556_v6  ;;  %v8003_v51 = vadd.f32 %v7986_v13, %v7954_v16 }
 0x72e   : > { %v8012_v11 = vadd.f32 %v8004_v15, %v8003_v51  ;;  %8050 = vst.msk [vmem:[%s13567_s2 + $0x30] sm:$0xff] %vm5222_vm8, %v8042_v2 }
 0x730   : > { %v8020_v1 = vmul.f32 0.25, %v8012_v11 }
 0x732   : > { %v8035_v54 = vadd.f32 %v13555_v47, %v8020_v1 }
 0x734   : > { %v8043_v53 = vadd.f32 %v8035_v54, %v559_v29 }
 0x736   : > { %8051 = vst.msk [vmem:[%s13567_s2 + $0x38] sm:$0xff] %vm5222_vm8, %v8043_v53 }
 0x737   : > { %10819 = shalt.err (!%p10816_p3)
}
 0x738   : > { %s10820_s3 = scalar_lea.hbm %s13629_s25, 1024  ;;  %s10824_s0 = scalar_lea.hbm %s13685_s8, 2048 }
 0x739   : > { %p10821_p12 = scmp.ne.s32.totalorder %s13629_s25, %s10820_s3  ;;  %p10825_p0 = scmp.lt.u32.totalorder %s13629_s25, %s13685_s8 }
 0x73a   : > { %p10826_p5 = scmp.lt.u32.totalorder %s10824_s0, %s10820_s3  ;;  %p10828_p10 = scmp.lt.u32.totalorder %s10820_s3, %s13629_s25 }
 0x73b   : > { %p10822_p1 = pnand %p10821_p12, %p13841_p4 }
 0x73c   : > { %p10827_p2 = por %p10826_p5, %p10825_p0 }
 0x73d   : > { %p10823_p13 = pneg %p10822_p1 }
 0x73e   : > { %p10829_p6 = por %p10828_p10, %p10827_p2 }
 0x740   : > { %p10830_p7 = pnand %p10829_p6, %p10823_p13 }
 0x742   : > { %10833 = shalt.err (!%p10830_p7)
}
 0x743   : > { %s10908_s10 = smov 128   ;;  %s10909_s24 = smov 8  }
 0x744   : > { %10429 = dma.vmem_to_hbm [thread:$0]  (%p13841_p4), %s13631_s15, 1024, %s13629_s25, %s8053_s11, %s10908_s10, %s10908_s10, %s10909_s24  }
 0x745 PF: > { %s8081_s2 = sand.u32 1, %s10880_s27   ;;  %p13842_p9 = scmp.ne.s32.totalorder %s13735_s9, 0 }
 0x746   : > { %p13843_p8 = scmp.ge.s32.totalorder %s10892_s30, 2  ;;  %s8082_s13 = scalar_lea.sflag [#allocation6], %s8081_s2 }
 0x748   : > { %p10458_p11 = pnand %p13843_p8, %p13842_p9 }
 0x74a   : > { %10875 = dma.done.wait (!%p10458_p11), %s8082_s13, 1024  }
 0x74b   : > { %10877 = vsyncadd (!%p10458_p11), %s8082_s13, 4294966272  ;;  %p27_p3 = scmp.ge.s32.totalorder %s11139_s17, 4   ;;  %s13844_s27 = smov %s10884_s28 }
 0x74c   : > { %s13845_s28 = smov %s10888_s29  ;;  %s13846_s29 = smov %s11150_s23 }
 0x74d   : > { %s13847_s30 = smov %s11139_s17  ;;  %29 = sbr.rel (!%p27_p3) target bundleno = 17 (0x11), region = 185 }
 0x754   :  { %8087 = vsyncpa [#allocation5], 1 }
 0x755   :  { %8089 = vsyncpa [#allocation5 + $0x1], 1 }
 0x756   :  { %8090 = vsyncpa [#allocation8], 1 }
 0x757   :  { %8092 = vsyncpa [#allocation8 + $0x1], 1 }
 0x758   :  { %8093 = vsyncpa [#allocation11], 1 }
 0x759   :  { %8094 = vsyncpa [#allocation14], 1 }
 0x75a   :  { %8095 = vsyncpa [#allocation17], 1 }
 0x75b   :  { %8096 = vsyncpa [#allocation6], 1 }
 0x75c   :  { %8098 = vsyncpa [#allocation6 + $0x1], 1 }

</bundles_post_ra>
